<compile_context>
chip_gen: v5e
topology: v5e:2x2
jax: 0.10.0
libtpu: 0.0.40
codegen_flags: <defaults>
</compile_context>

<pallas_src>
import math

import jax
import jax.numpy as jnp
from jax import lax
from jax.experimental import pallas as pl
from jax.experimental.pallas import tpu as pltpu


def _layernorm(x, g, b, eps=1e-5):
    mu = jnp.mean(x, axis=-1, keepdims=True)
    var = jnp.mean((x - mu) ** 2, axis=-1, keepdims=True)
    return (x - mu) * lax.rsqrt(var + eps) * g + b


def sasrec_kernel(mask_ref, x_ref, cand_ref,
                  wqkv_ref, bqkv_ref, wo_ref, bo_ref, ln1g_ref, ln1b_ref,
                  w1_ref, b1_ref, w2_ref, b2_ref, ln2g_ref, ln2b_ref,
                  wfc_ref, bfc_ref, out_ref):
    tb, n, d = x_ref.shape
    bf16 = jnp.bfloat16

    x = x_ref[...]                                    # (TB, N, D) bf16
    x2 = x.reshape(tb * n, d)                         # flatten rows -> big MXU M dim

    # ---- fused QKV projection (one matmul instead of three) ----
    qkv = jnp.dot(x2, wqkv_ref[...], preferred_element_type=jnp.float32)
    qkv = qkv + bqkv_ref[...]                         # (TB*N, 3D) f32
    q = qkv[:, :d].astype(bf16).reshape(tb, n, d)
    k = qkv[:, d:2 * d].astype(bf16).reshape(tb, n, d)
    v = qkv[:, 2 * d:].astype(bf16).reshape(tb, n, d)

    # ---- single-head self-attention (batched over TB, f32 softmax) ----
    scores = jnp.einsum('bnd,bmd->bnm', q, k, preferred_element_type=jnp.float32)
    scores = scores * (1.0 / math.sqrt(d)) + mask_ref[...]       # shared (N, N) mask
    scores = scores - jnp.max(scores, axis=-1, keepdims=True)
    p = jnp.exp(scores)
    p = p * pl.reciprocal(jnp.sum(p, axis=-1, keepdims=True), approx=True)
    attn = jnp.einsum('bnm,bmd->bnd', p.astype(bf16), v,
                      preferred_element_type=jnp.float32)
    attn2 = jnp.dot(attn.reshape(tb * n, d).astype(bf16), wo_ref[...],
                    preferred_element_type=jnp.float32) + bo_ref[...]

    # residual + LayerNorm (post-norm), f32
    h = _layernorm(x2.astype(jnp.float32) + attn2, ln1g_ref[...], ln1b_ref[...])

    # ---- position-wise feed-forward ----
    f = jnp.dot(h.astype(bf16), w1_ref[...],
                preferred_element_type=jnp.float32) + b1_ref[...]
    f = jnp.maximum(f, 0.0)
    f = jnp.dot(f.astype(bf16), w2_ref[...],
                preferred_element_type=jnp.float32) + b2_ref[...]
    h = _layernorm(h + f, ln2g_ref[...], ln2b_ref[...])

    # ---- final fc ----
    y = jnp.dot(h.astype(bf16), wfc_ref[...],
                preferred_element_type=jnp.float32) + bfc_ref[...]   # (TB*N, D) f32
    y3 = y.reshape(tb, n, d)

    # ---- scoring: one broadcast multiply + lane reduce, one full-block store.
    # cand[b, 0, n, :] = pos embedding, cand[b, 1+j, n, :] = j-th neg embedding.
    cand = cand_ref[...].astype(jnp.float32)          # (TB, 1+K, N, D)
    out_ref[...] = jnp.sum(y3[:, None, :, :] * cand, axis=-1)   # (TB, 1+K, N)


_BF16_WEIGHTS = ("wqkv", "wo", "w1", "w2", "wfc")
_WEIGHT_ORDER = ("wqkv", "bqkv", "wo", "bo", "ln1g", "ln1b",
                 "w1", "b1", "w2", "b2", "ln2g", "ln2b", "wfc", "bfc")


def sasrec_forward(params, input_items, mask, pos_items, neg_items, *, block_b=None):
    table = params["embedding"]                       # (num_items, D), row 0 = padding
    # TODO(synk): for large vocab / K, move these gathers in-kernel via
    # PrefetchScalarGridSpec scalar-prefetched indices + DMA gather from the
    # table kept in HBM (memory_space=pl.ANY); here they stay as XLA gathers.
    x = table[input_items].astype(jnp.bfloat16)       # (B, N, D)
    pos_e = table[pos_items].astype(jnp.bfloat16)     # (B, N, D)
    neg_e = table[neg_items].astype(jnp.bfloat16)     # (B, N, K, D)
    B, N, D = x.shape
    K = neg_e.shape[2]
    mask = jnp.asarray(mask, jnp.float32)
    assert mask.shape == (N, N)

    # merged candidate slab, laid out to match the kernel's (TB, 1+K, N) output
    cand = jnp.concatenate(
        [pos_e[:, None, :, :], jnp.transpose(neg_e, (0, 2, 1, 3))], axis=1)  # (B,1+K,N,D)

    if block_b is None:
        # keep >= 2 grid steps so the megacore can shard the batch axis
        block_b = B // 2 if (B % 2 == 0 and B >= 2) else B
    assert B % block_b == 0

    # fused QKV weight/bias; matmul weights in bf16, biases & LN params in f32
    packed = dict(params)
    packed["wqkv"] = jnp.concatenate([params["wq"], params["wk"], params["wv"]], axis=1)
    packed["bqkv"] = jnp.concatenate([params["bq"], params["bk"], params["bv"]], axis=1)
    wvals = [packed[name].astype(jnp.bfloat16 if name in _BF16_WEIGHTS else jnp.float32)
             for name in _WEIGHT_ORDER]

    def blocked(*dims):
        nd = len(dims)
        return pl.BlockSpec((block_b,) + dims, lambda b: (b,) + (0,) * nd)

    def shared(a):
        return pl.BlockSpec(a.shape, lambda b: (0,) * a.ndim)

    in_specs = ([shared(mask), blocked(N, D), blocked(1 + K, N, D)]
                + [shared(w) for w in wvals])
    out_specs = pl.BlockSpec((block_b, 1 + K, N), lambda b: (b, 0, 0))

    # TODO(synk): for realistic K (~100) / N (~200) on v7x (64 MiB VMEM), tile
    # the candidate slab over an extra (1+K) grid axis instead of loading it whole.
    scores = pl.pallas_call(
        sasrec_kernel,
        grid=(B // block_b,),
        in_specs=in_specs,
        out_specs=out_specs,
        out_shape=jax.ShapeDtypeStruct((B, 1 + K, N), jnp.float32),
        compiler_params=pltpu.CompilerParams(dimension_semantics=("parallel",)),
    )(mask, x, cand, *wvals)

    pos_scores = scores[:, 0, :]                          # (B, N)
    neg_scores = jnp.swapaxes(scores[:, 1:, :], 1, 2)     # (B, N, K)
    return pos_scores, neg_scores


def init_params(key, num_items, d_model, d_ff):
    ks = jax.random.split(key, 8)

    def lin(k, din, dout):
        return jax.random.normal(k, (din, dout), jnp.float32) / jnp.sqrt(din)

    emb = jax.random.normal(ks[0], (num_items, d_model), jnp.float32) * 0.02
    emb = emb.at[0].set(0.0)                          # padding_idx=0
    zeros = lambda d: jnp.zeros((1, d), jnp.float32)
    ones = lambda d: jnp.ones((1, d), jnp.float32)
    return dict(
        embedding=emb,
        wq=lin(ks[1], d_model, d_model), bq=zeros(d_model),
        wk=lin(ks[2], d_model, d_model), bk=zeros(d_model),
        wv=lin(ks[3], d_model, d_model), bv=zeros(d_model),
        wo=lin(ks[4], d_model, d_model), bo=zeros(d_model),
        ln1g=ones(d_model), ln1b=zeros(d_model),
        w1=lin(ks[5], d_model, d_ff), b1=zeros(d_ff),
        w2=lin(ks[6], d_ff, d_model), b2=zeros(d_model),
        ln2g=ones(d_model), ln2b=zeros(d_model),
        wfc=lin(ks[7], d_model, d_model), bfc=zeros(d_model),
    )


def reference(params, input_items, mask, pos_items, neg_items):
    """Pure-JAX replica of the kernel math (same bf16 cast points, f32 accum)."""
    bf = jnp.bfloat16
    table = params["embedding"]
    x = table[input_items].astype(bf)
    pos_e = table[pos_items].astype(bf).astype(jnp.float32)
    neg_e = table[neg_items].astype(bf).astype(jnp.float32)
    d = x.shape[-1]

    def mm(a, w):
        return jnp.dot(a.astype(bf), w.astype(bf), preferred_element_type=jnp.float32)

    q = mm(x, params["wq"]) + params["bq"]
    k = mm(x, params["wk"]) + params["bk"]
    v = mm(x, params["wv"]) + params["bv"]
    scores = jnp.einsum('bnd,bmd->bnm', q.astype(bf), k.astype(bf),
                        preferred_element_type=jnp.float32)
    scores = scores * (1.0 / math.sqrt(d)) + mask
    p = jax.nn.softmax(scores, axis=-1)
    attn = jnp.einsum('bnm,bmd->bnd', p.astype(bf), v.astype(bf),
                      preferred_element_type=jnp.float32)
    attn = mm(attn, params["wo"]) + params["bo"]
    h = _layernorm(x.astype(jnp.float32) + attn, params["ln1g"], params["ln1b"])
    f = jnp.maximum(mm(h, params["w1"]) + params["b1"], 0.0)
    f = mm(f, params["w2"]) + params["b2"]
    h = _layernorm(h + f, params["ln2g"], params["ln2b"])
    y = mm(h, params["wfc"]) + params["bfc"]
    pos_s = jnp.einsum('bnd,bnd->bn', y, pos_e)
    neg_s = jnp.einsum('bnd,bnkd->bnk', y, neg_e)
    return pos_s, neg_s


if __name__ == "__main__":
    B, N, D, K = 16, 16, 32, 4          # block_b=8 -> 2 grid steps, TB*N = 128 rows
    NUM_ITEMS, D_FF = 50, 64

    key = jax.random.PRNGKey(0)
    pk, ik, posk, negk = jax.random.split(key, 4)
    params = init_params(pk, NUM_ITEMS, D, D_FF)

    input_items = jax.random.randint(ik, (B, N), 1, NUM_ITEMS)
    pos_items = jax.random.randint(posk, (B, N), 1, NUM_ITEMS)
    neg_items = jax.random.randint(negk, (B, N, K), 1, NUM_ITEMS)

    # TODO(synk): the PyTorch `transformer` is an injected dependency; we assume
    # one post-norm encoder layer driven by an (N, N) additive attention mask
    # (nn.Transformer src_mask convention), shared across the batch.
    mask = jnp.where(jnp.tril(jnp.ones((N, N), dtype=bool)), 0.0, -1e9).astype(jnp.float32)

    pos_scores, neg_scores = sasrec_forward(params, input_items, mask,
                                            pos_items, neg_items)
    jax.block_until_ready((pos_scores, neg_scores))

    ref_pos, ref_neg = reference(params, input_items, mask, pos_items, neg_items)
    assert pos_scores.shape == (B, N) and neg_scores.shape == (B, N, K)
    assert jnp.allclose(pos_scores, ref_pos, atol=1e-2, rtol=1e-2), \
        float(jnp.max(jnp.abs(pos_scores - ref_pos)))
    assert jnp.allclose(neg_scores, ref_neg, atol=1e-2, rtol=1e-2), \
        float(jnp.max(jnp.abs(neg_scores - ref_neg)))

    print("KERNEL_OK")
</pallas_src>

<mosaic_0001>
module attributes {stable_mosaic.version = 11 : i64} {
  func.func @sasrec_kernel(%arg0: i32, %arg1: memref<16x16xf32, #tpu.memory_space<vmem>>, %arg2: memref<8x16x32xbf16, #tpu.memory_space<vmem>>, %arg3: memref<8x5x16x32xbf16, #tpu.memory_space<vmem>>, %arg4: memref<32x96xbf16, #tpu.memory_space<vmem>>, %arg5: memref<1x96xf32, #tpu.memory_space<vmem>>, %arg6: memref<32x32xbf16, #tpu.memory_space<vmem>>, %arg7: memref<1x32xf32, #tpu.memory_space<vmem>>, %arg8: memref<1x32xf32, #tpu.memory_space<vmem>>, %arg9: memref<1x32xf32, #tpu.memory_space<vmem>>, %arg10: memref<32x64xbf16, #tpu.memory_space<vmem>>, %arg11: memref<1x64xf32, #tpu.memory_space<vmem>>, %arg12: memref<64x32xbf16, #tpu.memory_space<vmem>>, %arg13: memref<1x32xf32, #tpu.memory_space<vmem>>, %arg14: memref<1x32xf32, #tpu.memory_space<vmem>>, %arg15: memref<1x32xf32, #tpu.memory_space<vmem>>, %arg16: memref<32x32xbf16, #tpu.memory_space<vmem>>, %arg17: memref<1x32xf32, #tpu.memory_space<vmem>>, %arg18: memref<8x5x16xf32, #tpu.memory_space<vmem>>) attributes {dimension_semantics = [#tpu.dimension_semantics<parallel>], iteration_bounds = array<i64: 2>, scalar_prefetch = 0 : i64, scratch_operands = 0 : i64, tpu.core_type = #tpu.core_type<tc>, window_params = [{pipeline_mode = #tpu.pipeline_mode<synchronous>, transform_indices = @transform_0, window_bounds = array<i64: 16, 16>}, {transform_indices = @transform_1, window_bounds = array<i64: 8, 16, 32>}, {transform_indices = @transform_2, window_bounds = array<i64: 8, 5, 16, 32>}, {pipeline_mode = #tpu.pipeline_mode<synchronous>, transform_indices = @transform_3, window_bounds = array<i64: 32, 96>}, {pipeline_mode = #tpu.pipeline_mode<synchronous>, transform_indices = @transform_4, window_bounds = array<i64: 1, 96>}, {pipeline_mode = #tpu.pipeline_mode<synchronous>, transform_indices = @transform_5, window_bounds = array<i64: 32, 32>}, {pipeline_mode = #tpu.pipeline_mode<synchronous>, transform_indices = @transform_6, window_bounds = array<i64: 1, 32>}, {pipeline_mode = #tpu.pipeline_mode<synchronous>, transform_indices = @transform_7, window_bounds = array<i64: 1, 32>}, {pipeline_mode = #tpu.pipeline_mode<synchronous>, transform_indices = @transform_8, window_bounds = array<i64: 1, 32>}, {pipeline_mode = #tpu.pipeline_mode<synchronous>, transform_indices = @transform_9, window_bounds = array<i64: 32, 64>}, {pipeline_mode = #tpu.pipeline_mode<synchronous>, transform_indices = @transform_10, window_bounds = array<i64: 1, 64>}, {pipeline_mode = #tpu.pipeline_mode<synchronous>, transform_indices = @transform_11, window_bounds = array<i64: 64, 32>}, {pipeline_mode = #tpu.pipeline_mode<synchronous>, transform_indices = @transform_12, window_bounds = array<i64: 1, 32>}, {pipeline_mode = #tpu.pipeline_mode<synchronous>, transform_indices = @transform_13, window_bounds = array<i64: 1, 32>}, {pipeline_mode = #tpu.pipeline_mode<synchronous>, transform_indices = @transform_14, window_bounds = array<i64: 1, 32>}, {pipeline_mode = #tpu.pipeline_mode<synchronous>, transform_indices = @transform_15, window_bounds = array<i64: 32, 32>}, {pipeline_mode = #tpu.pipeline_mode<synchronous>, transform_indices = @transform_16, window_bounds = array<i64: 1, 32>}, {transform_indices = @transform_17, window_bounds = array<i64: 8, 5, 16>}]} {
    %c0 = arith.constant 0 : index
    %c0_0 = arith.constant 0 : index
    %c0_1 = arith.constant 0 : index
    %0 = vector.load %arg2[%c0, %c0_0, %c0_1] : memref<8x16x32xbf16, #tpu.memory_space<vmem>>, vector<8x16x32xbf16>
    %1 = vector.shape_cast %0 : vector<8x16x32xbf16> to vector<128x32xbf16>
    %c0_2 = arith.constant 0 : index
    %c0_3 = arith.constant 0 : index
    %2 = vector.load %arg4[%c0_2, %c0_3] : memref<32x96xbf16, #tpu.memory_space<vmem>>, vector<32x96xbf16>
    %cst = arith.constant dense<0.000000e+00> : vector<128x96xf32>
    %3 = tpu.matmul %1, %2, %cst {dimension_numbers = #tpu.dot_dimension_numbers<[1], [0], [0], [1], [0, 0, 1, 1], [], []>} : vector<128x32xbf16>, vector<32x96xbf16>, vector<128x96xf32> -> vector<128x96xf32>
    %c0_4 = arith.constant 0 : index
    %c0_5 = arith.constant 0 : index
    %4 = vector.load %arg5[%c0_4, %c0_5] : memref<1x96xf32, #tpu.memory_space<vmem>>, vector<1x96xf32>
    %5 = vector.broadcast %4 : vector<1x96xf32> to vector<128x96xf32>
    %6 = arith.addf %3, %5 : vector<128x96xf32>
    %7 = vector.extract_strided_slice %6 {offsets = [0, 0], sizes = [128, 32], strides = [1, 1]} : vector<128x96xf32> to vector<128x32xf32>
    %8 = arith.truncf %7 : vector<128x32xf32> to vector<128x32xbf16>
    %9 = vector.shape_cast %8 : vector<128x32xbf16> to vector<8x16x32xbf16>
    %10 = vector.extract_strided_slice %6 {offsets = [0, 32], sizes = [128, 32], strides = [1, 1]} : vector<128x96xf32> to vector<128x32xf32>
    %11 = arith.truncf %10 : vector<128x32xf32> to vector<128x32xbf16>
    %12 = vector.shape_cast %11 : vector<128x32xbf16> to vector<8x16x32xbf16>
    %13 = vector.extract_strided_slice %6 {offsets = [0, 64], sizes = [128, 32], strides = [1, 1]} : vector<128x96xf32> to vector<128x32xf32>
    %14 = arith.truncf %13 : vector<128x32xf32> to vector<128x32xbf16>
    %15 = vector.shape_cast %14 : vector<128x32xbf16> to vector<8x16x32xbf16>
    "tpu.trace_start"() <{level = 10 : i32, message = "bnd,bmd->bnm"}> : () -> ()
    %cst_6 = arith.constant dense<0.000000e+00> : vector<8x16x16xf32>
    %16 = tpu.matmul %9, %12, %cst_6 {dimension_numbers = #tpu.dot_dimension_numbers<[2], [2], [1], [1], [0, 0, 0, 1, 1, 1], [0], [0]>} : vector<8x16x32xbf16>, vector<8x16x32xbf16>, vector<8x16x16xf32> -> vector<8x16x16xf32>
    "tpu.trace_stop"() : () -> ()
    %cst_7 = arith.constant 0.176776692 : f32
    %17 = vector.broadcast %cst_7 : f32 to vector<8x16x16xf32>
    %18 = arith.mulf %16, %17 : vector<8x16x16xf32>
    %c0_8 = arith.constant 0 : index
    %c0_9 = arith.constant 0 : index
    %19 = vector.load %arg1[%c0_8, %c0_9] : memref<16x16xf32, #tpu.memory_space<vmem>>, vector<16x16xf32>
    %20 = vector.shape_cast %19 : vector<16x16xf32> to vector<1x16x16xf32>
    %21 = vector.broadcast %20 : vector<1x16x16xf32> to vector<8x16x16xf32>
    %22 = arith.addf %18, %21 : vector<8x16x16xf32>
    %cst_10 = arith.constant dense<0xFF800000> : vector<8x16xf32>
    %23 = vector.multi_reduction <maximumf>, %22, %cst_10 [2] : vector<8x16x16xf32> to vector<8x16xf32>
    %24 = vector.shape_cast %23 : vector<8x16xf32> to vector<8x16x1xf32>
    %25 = vector.broadcast %24 : vector<8x16x1xf32> to vector<8x16x16xf32>
    %26 = arith.subf %22, %25 : vector<8x16x16xf32>
    %27 = math.exp %26 : vector<8x16x16xf32>
    %cst_11 = arith.constant dense<0.000000e+00> : vector<8x16xf32>
    %28 = vector.multi_reduction <add>, %27, %cst_11 [2] : vector<8x16x16xf32> to vector<8x16xf32>
    %29 = vector.shape_cast %28 : vector<8x16xf32> to vector<8x16x1xf32>
    %30 = tpu.reciprocal %29 {approx = true} : vector<8x16x1xf32> -> vector<8x16x1xf32>
    %31 = vector.broadcast %30 : vector<8x16x1xf32> to vector<8x16x16xf32>
    %32 = arith.mulf %27, %31 : vector<8x16x16xf32>
    %33 = arith.truncf %32 : vector<8x16x16xf32> to vector<8x16x16xbf16>
    "tpu.trace_start"() <{level = 10 : i32, message = "bnm,bmd->bnd"}> : () -> ()
    %cst_12 = arith.constant dense<0.000000e+00> : vector<8x16x32xf32>
    %34 = tpu.matmul %33, %15, %cst_12 {dimension_numbers = #tpu.dot_dimension_numbers<[2], [1], [1], [2], [0, 0, 0, 1, 1, 2], [0], [0]>} : vector<8x16x16xbf16>, vector<8x16x32xbf16>, vector<8x16x32xf32> -> vector<8x16x32xf32>
    "tpu.trace_stop"() : () -> ()
    %35 = vector.shape_cast %34 : vector<8x16x32xf32> to vector<128x32xf32>
    %36 = arith.truncf %35 : vector<128x32xf32> to vector<128x32xbf16>
    %c0_13 = arith.constant 0 : index
    %c0_14 = arith.constant 0 : index
    %37 = vector.load %arg6[%c0_13, %c0_14] : memref<32x32xbf16, #tpu.memory_space<vmem>>, vector<32x32xbf16>
    %cst_15 = arith.constant dense<0.000000e+00> : vector<128x32xf32>
    %38 = tpu.matmul %36, %37, %cst_15 {dimension_numbers = #tpu.dot_dimension_numbers<[1], [0], [0], [1], [0, 0, 1, 1], [], []>} : vector<128x32xbf16>, vector<32x32xbf16>, vector<128x32xf32> -> vector<128x32xf32>
    %c0_16 = arith.constant 0 : index
    %c0_17 = arith.constant 0 : index
    %39 = vector.load %arg7[%c0_16, %c0_17] : memref<1x32xf32, #tpu.memory_space<vmem>>, vector<1x32xf32>
    %40 = vector.broadcast %39 : vector<1x32xf32> to vector<128x32xf32>
    %41 = arith.addf %38, %40 : vector<128x32xf32>
    %42 = arith.extf %1 : vector<128x32xbf16> to vector<128x32xf32>
    %43 = arith.addf %42, %41 : vector<128x32xf32>
    %c0_18 = arith.constant 0 : index
    %c0_19 = arith.constant 0 : index
    %44 = vector.load %arg8[%c0_18, %c0_19] : memref<1x32xf32, #tpu.memory_space<vmem>>, vector<1x32xf32>
    %c0_20 = arith.constant 0 : index
    %c0_21 = arith.constant 0 : index
    %45 = vector.load %arg9[%c0_20, %c0_21] : memref<1x32xf32, #tpu.memory_space<vmem>>, vector<1x32xf32>
    %cst_22 = arith.constant dense<0.000000e+00> : vector<128xf32>
    %46 = vector.multi_reduction <add>, %43, %cst_22 [1] : vector<128x32xf32> to vector<128xf32>
    %47 = vector.shape_cast %46 : vector<128xf32> to vector<128x1xf32>
    %cst_23 = arith.constant 3.200000e+01 : f32
    %48 = vector.broadcast %cst_23 : f32 to vector<128x1xf32>
    %49 = arith.divf %47, %48 : vector<128x1xf32>
    %50 = vector.broadcast %49 : vector<128x1xf32> to vector<128x32xf32>
    %51 = arith.subf %43, %50 : vector<128x32xf32>
    %52 = arith.mulf %51, %51 : vector<128x32xf32>
    %cst_24 = arith.constant dense<0.000000e+00> : vector<128xf32>
    %53 = vector.multi_reduction <add>, %52, %cst_24 [1] : vector<128x32xf32> to vector<128xf32>
    %54 = vector.shape_cast %53 : vector<128xf32> to vector<128x1xf32>
    %cst_25 = arith.constant 3.200000e+01 : f32
    %55 = vector.broadcast %cst_25 : f32 to vector<128x1xf32>
    %56 = arith.divf %54, %55 : vector<128x1xf32>
    %57 = vector.broadcast %49 : vector<128x1xf32> to vector<128x32xf32>
    %58 = arith.subf %43, %57 : vector<128x32xf32>
    %cst_26 = arith.constant 9.99999974E-6 : f32
    %59 = vector.broadcast %cst_26 : f32 to vector<128x1xf32>
    %60 = arith.addf %56, %59 : vector<128x1xf32>
    %61 = math.rsqrt %60 : vector<128x1xf32>
    %62 = vector.broadcast %61 : vector<128x1xf32> to vector<128x32xf32>
    %63 = arith.mulf %58, %62 : vector<128x32xf32>
    %64 = vector.broadcast %44 : vector<1x32xf32> to vector<128x32xf32>
    %65 = arith.mulf %63, %64 : vector<128x32xf32>
    %66 = vector.broadcast %45 : vector<1x32xf32> to vector<128x32xf32>
    %67 = arith.addf %65, %66 : vector<128x32xf32>
    %68 = arith.truncf %67 : vector<128x32xf32> to vector<128x32xbf16>
    %c0_27 = arith.constant 0 : index
    %c0_28 = arith.constant 0 : index
    %69 = vector.load %arg10[%c0_27, %c0_28] : memref<32x64xbf16, #tpu.memory_space<vmem>>, vector<32x64xbf16>
    %cst_29 = arith.constant dense<0.000000e+00> : vector<128x64xf32>
    %70 = tpu.matmul %68, %69, %cst_29 {dimension_numbers = #tpu.dot_dimension_numbers<[1], [0], [0], [1], [0, 0, 1, 1], [], []>} : vector<128x32xbf16>, vector<32x64xbf16>, vector<128x64xf32> -> vector<128x64xf32>
    %c0_30 = arith.constant 0 : index
    %c0_31 = arith.constant 0 : index
    %71 = vector.load %arg11[%c0_30, %c0_31] : memref<1x64xf32, #tpu.memory_space<vmem>>, vector<1x64xf32>
    %72 = vector.broadcast %71 : vector<1x64xf32> to vector<128x64xf32>
    %73 = arith.addf %70, %72 : vector<128x64xf32>
    %cst_32 = arith.constant 0.000000e+00 : f32
    %74 = vector.broadcast %cst_32 : f32 to vector<128x64xf32>
    %75 = arith.maximumf %73, %74 : vector<128x64xf32>
    %76 = arith.truncf %75 : vector<128x64xf32> to vector<128x64xbf16>
    %c0_33 = arith.constant 0 : index
    %c0_34 = arith.constant 0 : index
    %77 = vector.load %arg12[%c0_33, %c0_34] : memref<64x32xbf16, #tpu.memory_space<vmem>>, vector<64x32xbf16>
    %cst_35 = arith.constant dense<0.000000e+00> : vector<128x32xf32>
    %78 = tpu.matmul %76, %77, %cst_35 {dimension_numbers = #tpu.dot_dimension_numbers<[1], [0], [0], [1], [0, 0, 1, 1], [], []>} : vector<128x64xbf16>, vector<64x32xbf16>, vector<128x32xf32> -> vector<128x32xf32>
    %c0_36 = arith.constant 0 : index
    %c0_37 = arith.constant 0 : index
    %79 = vector.load %arg13[%c0_36, %c0_37] : memref<1x32xf32, #tpu.memory_space<vmem>>, vector<1x32xf32>
    %80 = vector.broadcast %79 : vector<1x32xf32> to vector<128x32xf32>
    %81 = arith.addf %78, %80 : vector<128x32xf32>
    %82 = arith.addf %67, %81 : vector<128x32xf32>
    %c0_38 = arith.constant 0 : index
    %c0_39 = arith.constant 0 : index
    %83 = vector.load %arg14[%c0_38, %c0_39] : memref<1x32xf32, #tpu.memory_space<vmem>>, vector<1x32xf32>
    %c0_40 = arith.constant 0 : index
    %c0_41 = arith.constant 0 : index
    %84 = vector.load %arg15[%c0_40, %c0_41] : memref<1x32xf32, #tpu.memory_space<vmem>>, vector<1x32xf32>
    %cst_42 = arith.constant dense<0.000000e+00> : vector<128xf32>
    %85 = vector.multi_reduction <add>, %82, %cst_42 [1] : vector<128x32xf32> to vector<128xf32>
    %86 = vector.shape_cast %85 : vector<128xf32> to vector<128x1xf32>
    %cst_43 = arith.constant 3.200000e+01 : f32
    %87 = vector.broadcast %cst_43 : f32 to vector<128x1xf32>
    %88 = arith.divf %86, %87 : vector<128x1xf32>
    %89 = vector.broadcast %88 : vector<128x1xf32> to vector<128x32xf32>
    %90 = arith.subf %82, %89 : vector<128x32xf32>
    %91 = arith.mulf %90, %90 : vector<128x32xf32>
    %cst_44 = arith.constant dense<0.000000e+00> : vector<128xf32>
    %92 = vector.multi_reduction <add>, %91, %cst_44 [1] : vector<128x32xf32> to vector<128xf32>
    %93 = vector.shape_cast %92 : vector<128xf32> to vector<128x1xf32>
    %cst_45 = arith.constant 3.200000e+01 : f32
    %94 = vector.broadcast %cst_45 : f32 to vector<128x1xf32>
    %95 = arith.divf %93, %94 : vector<128x1xf32>
    %96 = vector.broadcast %88 : vector<128x1xf32> to vector<128x32xf32>
    %97 = arith.subf %82, %96 : vector<128x32xf32>
    %cst_46 = arith.constant 9.99999974E-6 : f32
    %98 = vector.broadcast %cst_46 : f32 to vector<128x1xf32>
    %99 = arith.addf %95, %98 : vector<128x1xf32>
    %100 = math.rsqrt %99 : vector<128x1xf32>
    %101 = vector.broadcast %100 : vector<128x1xf32> to vector<128x32xf32>
    %102 = arith.mulf %97, %101 : vector<128x32xf32>
    %103 = vector.broadcast %83 : vector<1x32xf32> to vector<128x32xf32>
    %104 = arith.mulf %102, %103 : vector<128x32xf32>
    %105 = vector.broadcast %84 : vector<1x32xf32> to vector<128x32xf32>
    %106 = arith.addf %104, %105 : vector<128x32xf32>
    %107 = arith.truncf %106 : vector<128x32xf32> to vector<128x32xbf16>
    %c0_47 = arith.constant 0 : index
    %c0_48 = arith.constant 0 : index
    %108 = vector.load %arg16[%c0_47, %c0_48] : memref<32x32xbf16, #tpu.memory_space<vmem>>, vector<32x32xbf16>
    %cst_49 = arith.constant dense<0.000000e+00> : vector<128x32xf32>
    %109 = tpu.matmul %107, %108, %cst_49 {dimension_numbers = #tpu.dot_dimension_numbers<[1], [0], [0], [1], [0, 0, 1, 1], [], []>} : vector<128x32xbf16>, vector<32x32xbf16>, vector<128x32xf32> -> vector<128x32xf32>
    %c0_50 = arith.constant 0 : index
    %c0_51 = arith.constant 0 : index
    %110 = vector.load %arg17[%c0_50, %c0_51] : memref<1x32xf32, #tpu.memory_space<vmem>>, vector<1x32xf32>
    %111 = vector.broadcast %110 : vector<1x32xf32> to vector<128x32xf32>
    %112 = arith.addf %109, %111 : vector<128x32xf32>
    %113 = vector.shape_cast %112 : vector<128x32xf32> to vector<8x16x32xf32>
    %c0_52 = arith.constant 0 : index
    %c0_53 = arith.constant 0 : index
    %c0_54 = arith.constant 0 : index
    %c0_55 = arith.constant 0 : index
    %114 = vector.load %arg3[%c0_52, %c0_53, %c0_54, %c0_55] : memref<8x5x16x32xbf16, #tpu.memory_space<vmem>>, vector<8x5x16x32xbf16>
    %115 = arith.extf %114 : vector<8x5x16x32xbf16> to vector<8x5x16x32xf32>
    %116 = vector.shape_cast %113 : vector<8x16x32xf32> to vector<8x1x16x32xf32>
    %117 = vector.broadcast %116 : vector<8x1x16x32xf32> to vector<8x5x16x32xf32>
    %118 = arith.mulf %117, %115 : vector<8x5x16x32xf32>
    %cst_56 = arith.constant dense<0.000000e+00> : vector<8x5x16xf32>
    %119 = vector.multi_reduction <add>, %118, %cst_56 [3] : vector<8x5x16x32xf32> to vector<8x5x16xf32>
    %c0_57 = arith.constant 0 : index
    %c0_58 = arith.constant 0 : index
    %c0_59 = arith.constant 0 : index
    %120 = vector.load %arg18[%c0_57, %c0_58, %c0_59] : memref<8x5x16xf32, #tpu.memory_space<vmem>>, vector<8x5x16xf32>
    tpu.vector_store %arg18[%c0_57, %c0_58, %c0_59], %119 {strides = array<i32>} : memref<8x5x16xf32, #tpu.memory_space<vmem>>, vector<8x5x16xf32>,
    return
  }
  func.func @transform_0(%arg0: i32) -> (i32, i32) {
    %c0_i32 = arith.constant 0 : i32
    %c0_i32_0 = arith.constant 0 : i32
    %c0_i32_1 = arith.constant 0 : i32
    return %c0_i32, %c0_i32_0 : i32, i32
  }
  func.func @transform_1(%arg0: i32) -> (i32, i32, i32) {
    %c0_i32 = arith.constant 0 : i32
    %c0_i32_0 = arith.constant 0 : i32
    %c0_i32_1 = arith.constant 0 : i32
    return %arg0, %c0_i32, %c0_i32_0 : i32, i32, i32
  }
  func.func @transform_2(%arg0: i32) -> (i32, i32, i32, i32) {
    %c0_i32 = arith.constant 0 : i32
    %c0_i32_0 = arith.constant 0 : i32
    %c0_i32_1 = arith.constant 0 : i32
    %c0_i32_2 = arith.constant 0 : i32
    return %arg0, %c0_i32, %c0_i32_0, %c0_i32_1 : i32, i32, i32, i32
  }
  func.func @transform_3(%arg0: i32) -> (i32, i32) {
    %c0_i32 = arith.constant 0 : i32
    %c0_i32_0 = arith.constant 0 : i32
    %c0_i32_1 = arith.constant 0 : i32
    return %c0_i32, %c0_i32_0 : i32, i32
  }
  func.func @transform_4(%arg0: i32) -> (i32, i32) {
    %c0_i32 = arith.constant 0 : i32
    %c0_i32_0 = arith.constant 0 : i32
    %c0_i32_1 = arith.constant 0 : i32
    return %c0_i32, %c0_i32_0 : i32, i32
  }
  func.func @transform_5(%arg0: i32) -> (i32, i32) {
    %c0_i32 = arith.constant 0 : i32
    %c0_i32_0 = arith.constant 0 : i32
    %c0_i32_1 = arith.constant 0 : i32
    return %c0_i32, %c0_i32_0 : i32, i32
  }
  func.func @transform_6(%arg0: i32) -> (i32, i32) {
    %c0_i32 = arith.constant 0 : i32
    %c0_i32_0 = arith.constant 0 : i32
    %c0_i32_1 = arith.constant 0 : i32
    return %c0_i32, %c0_i32_0 : i32, i32
  }
  func.func @transform_7(%arg0: i32) -> (i32, i32) {
    %c0_i32 = arith.constant 0 : i32
    %c0_i32_0 = arith.constant 0 : i32
    %c0_i32_1 = arith.constant 0 : i32
    return %c0_i32, %c0_i32_0 : i32, i32
  }
  func.func @transform_8(%arg0: i32) -> (i32, i32) {
    %c0_i32 = arith.constant 0 : i32
    %c0_i32_0 = arith.constant 0 : i32
    %c0_i32_1 = arith.constant 0 : i32
    return %c0_i32, %c0_i32_0 : i32, i32
  }
  func.func @transform_9(%arg0: i32) -> (i32, i32) {
    %c0_i32 = arith.constant 0 : i32
    %c0_i32_0 = arith.constant 0 : i32
    %c0_i32_1 = arith.constant 0 : i32
    return %c0_i32, %c0_i32_0 : i32, i32
  }
  func.func @transform_10(%arg0: i32) -> (i32, i32) {
    %c0_i32 = arith.constant 0 : i32
    %c0_i32_0 = arith.constant 0 : i32
    %c0_i32_1 = arith.constant 0 : i32
    return %c0_i32, %c0_i32_0 : i32, i32
  }
  func.func @transform_11(%arg0: i32) -> (i32, i32) {
    %c0_i32 = arith.constant 0 : i32
    %c0_i32_0 = arith.constant 0 : i32
    %c0_i32_1 = arith.constant 0 : i32
    return %c0_i32, %c0_i32_0 : i32, i32
  }
  func.func @transform_12(%arg0: i32) -> (i32, i32) {
    %c0_i32 = arith.constant 0 : i32
    %c0_i32_0 = arith.constant 0 : i32
    %c0_i32_1 = arith.constant 0 : i32
    return %c0_i32, %c0_i32_0 : i32, i32
  }
  func.func @transform_13(%arg0: i32) -> (i32, i32) {
    %c0_i32 = arith.constant 0 : i32
    %c0_i32_0 = arith.constant 0 : i32
    %c0_i32_1 = arith.constant 0 : i32
    return %c0_i32, %c0_i32_0 : i32, i32
  }
  func.func @transform_14(%arg0: i32) -> (i32, i32) {
    %c0_i32 = arith.constant 0 : i32
    %c0_i32_0 = arith.constant 0 : i32
    %c0_i32_1 = arith.constant 0 : i32
    return %c0_i32, %c0_i32_0 : i32, i32
  }
  func.func @transform_15(%arg0: i32) -> (i32, i32) {
    %c0_i32 = arith.constant 0 : i32
    %c0_i32_0 = arith.constant 0 : i32
    %c0_i32_1 = arith.constant 0 : i32
    return %c0_i32, %c0_i32_0 : i32, i32
  }
  func.func @transform_16(%arg0: i32) -> (i32, i32) {
    %c0_i32 = arith.constant 0 : i32
    %c0_i32_0 = arith.constant 0 : i32
    %c0_i32_1 = arith.constant 0 : i32
    return %c0_i32, %c0_i32_0 : i32, i32
  }
  func.func @transform_17(%arg0: i32) -> (i32, i32, i32) {
    %c0_i32 = arith.constant 0 : i32
    %c0_i32_0 = arith.constant 0 : i32
    %c0_i32_1 = arith.constant 0 : i32
    return %arg0, %c0_i32, %c0_i32_0 : i32, i32, i32
  }
}

</mosaic_0001>

<bundles_post_ra>
// kernel: tpu_custom_call.1
= control target key start
LH: loop header
LB: loop body
LE: loop exit
PB: predicated region body
PF: predicated region fallthrough
CT: control target
= control target key end

     0   :  { %s6109_s0 = inlined_call_operand.vmem [shape: f32[16,16], index: 0, kind: input, shape index: {}]   ;;  %s6110_s1 = inlined_call_operand.hbm [shape: bf16[16,16,32], index: 1, kind: input, shape index: {}]   ;;  %s6111_s2 = inlined_call_operand.hbm [shape: bf16[16,5,16,32], index: 2, kind: input, shape index: {}]   ;;  %s6112_s3 = inlined_call_operand.vmem [shape: bf16[32,96], index: 3, kind: input, shape index: {}]   ;;  %s6113_s4 = inlined_call_operand.vmem [shape: f32[1,96], index: 4, kind: input, shape index: {}]   ;;  %s6114_s5 = inlined_call_operand.vmem [shape: bf16[32,32], index: 5, kind: input, shape index: {}]   ;;  %s6115_s6 = inlined_call_operand.vmem [shape: f32[1,32], index: 6, kind: input, shape index: {}]   ;;  %s6116_s7 = inlined_call_operand.vmem [shape: f32[1,32], index: 7, kind: input, shape index: {}]   ;;  %s6117_s8 = inlined_call_operand.vmem [shape: f32[1,32], index: 8, kind: input, shape index: {}]   ;;  %s6118_s9 = inlined_call_operand.hbm [shape: bf16[32,64], index: 9, kind: input, shape index: {}]   ;;  %s6119_s10 = inlined_call_operand.vmem [shape: f32[1,64], index: 10, kind: input, shape index: {}]   ;;  %s6120_s11 = inlined_call_operand.vmem [shape: bf16[64,32], index: 11, kind: input, shape index: {}]   ;;  %s6121_s12 = inlined_call_operand.vmem [shape: f32[1,32], index: 12, kind: input, shape index: {}]   ;;  %s6122_s13 = inlined_call_operand.vmem [shape: f32[1,32], index: 13, kind: input, shape index: {}]   ;;  %s6123_s14 = inlined_call_operand.vmem [shape: f32[1,32], index: 14, kind: input, shape index: {}]   ;;  %s6124_s15 = inlined_call_operand.hbm [shape: bf16[32,32], index: 15, kind: input, shape index: {}]   ;;  %s6125_s16 = inlined_call_operand.vmem [shape: f32[1,32], index: 16, kind: input, shape index: {}]   ;;  %s6126_s17 = inlined_call_operand.vmem [shape: f32[16,5,16], index: 17, kind: output, shape index: {}]  }
   0x1   :  { %6138 = sst [smem:[#allocation16_spill]] %s6109_s0 }
   0x2   :  { %6139 = sst [smem:[#allocation17_spill]] %s6110_s1 }
   0x3   :  { %6140 = sst [smem:[#allocation18_spill]] %s6117_s8 }
   0x4   :  { %6141 = sst [smem:[#allocation19_spill]] %s6118_s9 }
   0x5   :  { %6142 = sst [smem:[#allocation20_spill]] %s6119_s10 }
   0x6   :  { %6143 = sst [smem:[#allocation21_spill]] %s6120_s11 }
   0x7   :  { %6144 = sst [smem:[#allocation22_spill]] %s6121_s12 }
   0x8   :  { %6145 = sst [smem:[#allocation23_spill]] %s6122_s13 }
   0x9   :  { %6146 = sst [smem:[#allocation24_spill]] %s6123_s14 }
   0xa   :  { %6147 = sst [smem:[#allocation25_spill]] %s6124_s15 }
   0xb   :  { %6148 = sst [smem:[#allocation26_spill]] %s6125_s16 }
   0xc   :  { %6149 = sst [smem:[#allocation27_spill]] %s6126_s17 }
   0xd   :  { %22 = vsyncpa [#allocation3], 0 }
   0xe   :  { %24 = vsyncpa [#allocation3 + $0x1], 0 }
   0xf   :  { %25 = vsyncpa [#allocation5], 0 }
  0x10   :  { %27 = vsyncpa [#allocation5 + $0x1], 0 }
  0x11   :  { %28 = vsyncpa [#allocation8], 0  ;;  %s4443_s24 = smov 0   ;;  %s4445_s25 = smov 0  }
  0x12   :  { %s4447_s26 = smov 0   ;;  %s4449_s27 = smov 0  }
  0x13 LB: > { %6150 = sst [smem:[#allocation13_spill]] %s4340_s26  ;;  %s4462_s28 = sadd.s32 4294967295, %s4344_s27   ;;  %s4344_s27 = sphi %s4449_s27, %s6181_s27   ;;  %s4340_s26 = sphi %s4447_s26, %s6183_s26   ;;  %s4336_s25 = sphi %s4445_s25, %s6185_s25   ;;  %s4332_s24 = sphi %s4443_s24, %s6184_s24  }
  0x14   : > { %p75_p0 = scmp.ne.s32.totalorder %s4336_s25, %s4332_s24  ;;  %p76_p1 = scmp.eq.s32.totalorder %s4462_s28, 0 }
  0x15   : > { %p3585_p2 = scmp.ge.s32.totalorder %s4344_s27, 1  ;;  %p432_p3 = scmp.lt.s32.totalorder %s4344_s27, 3 }
  0x16   : > { %p4470_p4 = por %p76_p1, %p75_p0  ;;  %s6152_s9 = sld [smem:[#allocation19_spill]] }
  0x17   : > { %p4477_p5 = pnand %p3585_p2, %p432_p3  ;;  %s4346_s1 = smov [#allocation6]  }
  0x18   : > { %s466_s20 = sshll.u32 %s4346_s1, 4  ;;  %s6154_s15 = sld [smem:[#allocation25_spill]]  ;;  %s467_s20 = int_to_ptr.vmem [resolvable:$true] %s466_s20 }
  0x19   : > { %p3980_p6 = pneg %p4477_p5  ;;  %s6129_s24 = smov 64  }
  0x1a   : > { %s6131_s0 = smov 4   ;;  %s4349_s30 = smov [#allocation7]  }
  0x1b   : > { %p3981_p7 = pnand %p3980_p6, %p76_p1  ;;  %s495_s1 = sshll.u32 %s4349_s30, 4  ;;  %s496_s1 = int_to_ptr.vmem [resolvable:$true] %s495_s1 }
  0x1c   : > { %s464_s18 = sshll.u32 %s6152_s9, 4  ;;  %s4495_s21 = sadd.s32 1, %s4344_s27   ;;  %s465_s18 = int_to_ptr.hbm [resolvable:$true] %s464_s18 }
  0x1d   : > { %3983 = dma.hbm_to_vmem [thread:$0]  (!%p3981_p7), %s465_s18, 256, %s467_s20, [#allocation5], %s6129_s24, %s6129_s24, %s6131_s0  }
  0x1e   : > { %s493_s23 = sshll.u32 %s6154_s15, 4  ;;  %6155 = sst [smem:[#allocation14_spill]] %s4495_s21  ;;  %s494_s23 = int_to_ptr.hbm [resolvable:$true] %s493_s23 }
  0x1f   : > { %3986 = dma.hbm_to_vmem [thread:$0]  (!%p3981_p7), %s494_s23, 256, %s496_s1, [#allocation8], %s6129_s24, %s6129_s24, %s6131_s0  }
  0x20   : > { %s62_s22 = sadd.s32 1, %s4340_s26  ;;  %s59_s9 = ssub.s32 %s4344_s27, %s4495_s21 }
  0x21   : > { %p69_p8 = scmp.ne.s32.totalorder %s4340_s26, %s4336_s25  ;;  %p60_p9 = scmp.eq.s32.totalorder %s59_s9, 0 }
  0x22   : > { %p70_p10 = scmp.eq.s32.totalorder %s4344_s27, 0  ;;  %p3996_p11 = scmp.lt.s32.totalorder %s4344_s27, 2 }
  0x23   : > { %s4505_s18 = sand.u32 1, %s4340_s26   ;;  %s3741_s30 = sshll.u32 %s4344_s27, 6 }
  0x24   : > { %s4508_s20 = scalar_select %p60_p9, %s4340_s26, %s62_s22  }
  0x25   : > { %p71_p12 = por %p70_p10, %p69_p8  ;;  %s3589_s23 = sshll.u32 %s4505_s18, 6 }
  0x26   : > { %6156 = sst [smem:[#allocation15_spill]] %s4508_s20  ;;  %s516_s17 = scalar_lea.vmem [#allocation2], %s3589_s23 }
  0x27   : > { %s6157_s0 = sld [smem:[#allocation17_spill]]  ;;  %s525_s9 = sshll.u32 %s516_s17, 4  ;;  %s526_s9 = int_to_ptr.vmem [resolvable:$true] %s525_s9 }
  0x28   : > { %p4515_p13 = pnand %p3996_p11, %p71_p12  ;;  %s535_s22 = sand.u32 1, %s4344_s27  }
  0x29   : > { %s3965_s20 = smul.u32 320, %s4505_s18  ;;  %s513_s14 = scalar_lea.sflag [#allocation3], %s4505_s18 }
  0x2a   : > { %s3966_s26 = smul.u32 320, %s4344_s27  ;;  %p4242_p2 = pneg %p4515_p13 }
  0x2d   : > { %s522_s15 = scalar_lea.hbm %s6157_s0, %s3741_s30  ;;  %s4245_s24 = scalar_lea.hbm %s6157_s0, 128 }
  0x2e   : > { %s523_s21 = sshll.u32 %s522_s15, 4  ;;  %s524_s21 = int_to_ptr.hbm [resolvable:$true] %s523_s21 }
  0x2f   : > { %s4238_s13 = sshra.s32 %s524_s21, 4  ;;  %s4239_s13 = int_to_ptr.hbm [resolvable:$true] %s4238_s13 }
  0x30   : > { %s4240_s12 = scalar_lea.hbm %s4239_s13, 64  ;;  %p4246_p7 = scmp.lt.s32.totalorder %s4239_s13, %s6157_s0 }
  0x31   : > { %p4241_p0 = scmp.ne.s32.totalorder %s4239_s13, %s4240_s12  ;;  %p4247_p8 = scmp.lt.s32.totalorder %s4245_s24, %s4240_s12 }
  0x33   : > { %p4243_p3 = pnand %p4242_p2, %p4241_p0  ;;  %p4248_p9 = por %p4247_p8, %p4246_p7 }
  0x35   : > { %p4244_p6 = pneg %p4243_p3 }
  0x37   : > { %p4249_p10 = pnand %p4248_p9, %p4244_p6 }
  0x39   : > { %4252 = shalt.err (!%p4249_p10)
}
  0x3a   : > { %s6159_s27 = smov 4   ;;  %s6160_s18 = smov 64  }
  0x3b   : > { %3990 = dma.hbm_to_vmem [thread:$0]  (!%p4515_p13), %s524_s21, 1024, %s526_s9, %s513_s14, %s6160_s18, %s6160_s18, %s6159_s27  }
  0x3c   : > { %s545_s15 = scalar_lea.hbm %s6111_s2, %s3966_s26  ;;  %s539_s11 = scalar_lea.vmem [#allocation4], %s3965_s20 }
  0x3d   : > { %s546_s17 = sshll.u32 %s545_s15, 4  ;;  %s548_s8 = sshll.u32 %s539_s11, 4  ;;  %s547_s17 = int_to_ptr.hbm [resolvable:$true] %s546_s17  ;;  %s549_s8 = int_to_ptr.vmem [resolvable:$true] %s548_s8 }
  0x3e   : > { %s536_s12 = scalar_lea.sflag [#allocation5], %s535_s22  ;;  %s4268_s13 = sshra.s32 %s547_s17, 4  ;;  %s4269_s13 = int_to_ptr.hbm [resolvable:$true] %s4268_s13 }
  0x3f   : > { %s4270_s24 = scalar_lea.hbm %s4269_s13, 320  ;;  %s4275_s21 = scalar_lea.hbm %s6111_s2, 640 }
  0x40   : > { %p4271_p11 = scmp.ne.s32.totalorder %s4269_s13, %s4270_s24  ;;  %p4276_p3 = scmp.lt.s32.totalorder %s4269_s13, %s6111_s2 }
  0x41   : > { %p4277_p6 = scmp.lt.s32.totalorder %s4275_s21, %s4270_s24 }
  0x42   : > { %p4273_p12 = pnand %p4271_p11, %p4242_p2 }
  0x43   : > { %p4278_p7 = por %p4277_p6, %p4276_p3 }
  0x44   : > { %p4274_p0 = pneg %p4273_p12 }
  0x46   : > { %p4279_p8 = pnand %p4278_p7, %p4274_p0 }
  0x48   : > { %4282 = shalt.err (!%p4279_p8)
}
  0x49   : > { %3993 = dma.hbm_to_vmem [thread:$0]  (!%p4515_p13), %s547_s17, 5120, %s549_s8, %s536_s12, %s6160_s18, %s6160_s18, %s6159_s27  }
  0x4a   : > { %560 = sbr.rel (%p4477_p5) target bundleno = 2429 (0x97d), region = 88  ;;  %s562_s11 = sand.u32 (!%p4477_p5), 1, %s4336_s25  }
  0x4b   : > { %s3597_s20 = sshll.u32 (!%p4477_p5), %s562_s11, 6  ;;  %s563_s9 = scalar_lea.sflag (!%p4477_p5), [#allocation3], %s562_s11 }
  0x4c   : > { %s4559_s22 = scalar_lea.vmem (!%p4477_p5), [#allocation2], %s3597_s20 }
  0x4f   : > { %4315 = dma.done.wait (%p4470_p4), %s563_s9, 1024  }
  0x50   : > { %4317 = vsyncadd (%p4470_p4), %s563_s9, 4294966272  ;;  %s572_s16 = sand.u32 1, %s4462_s28   ;;  %s3967_s30 = smul.u32 320, %s562_s11 }
  0x51   : > { %s573_s8 = scalar_lea.sflag [#allocation5], %s572_s16 }
  0x52   : > { %s4566_s27 = scalar_lea.vmem [#allocation4], %s3967_s30 }
  0x53   : > { %4319 = dma.done.wait (%p4470_p4), %s573_s8, 5120  }
  0x54   : > { %4321 = vsyncadd (%p4470_p4), %s573_s8, 4294962176 }
  0x55   : > { %4323 = dma.done.wait (%p76_p1), [#allocation5], 256  }
  0x56   : > { %4325 = vsyncadd (%p76_p1), [#allocation5], 4294967040 }
  0x57   : > { %4327 = dma.done.wait (%p76_p1), [#allocation8], 256  }
  0x58   : > { %4329 = vsyncadd (%p76_p1), [#allocation8], 4294967040  ;;  %v3751_v0 = vld [vmem:[%s6112_s3 + $0x8] sm:$0xff]  ;;  %v3750_v1 = vld [vmem:[%s6112_s3] sm:$0xff]  ;;  %vm728_vm0 = vcmask 261120   ;;  %s4350_s12 = smov 96  }
  0x59   : > { %759 = vmatpush.bf16.msra.mxu0 %v3751_v0  ;;  %3961 = vmatpush.bf16.msra.mxu2 %v3751_v0  ;;  %v3742_v2 = vld [vmem:[%s4559_s22] sm:$0xff]  ;;  %v3743_v3 = vld [vmem:[%s4559_s22 + $0x8] sm:$0xff]  ;;  %v3748_v4 = vld [vmem:[%s4559_s22 + $0x30] sm:$0xff]  ;;  %s6161_s23 = sld [smem:[#allocation16_spill]]  ;;  %vm1068_vm1 = vcmask 130048   ;;  %s4351_s10 = smov 64  }
  0x5a   : > { %3962 = vmatpush.bf16.msra.mxu3 %v3751_v0  ;;  %v3744_v5 = vld [vmem:[%s4559_s22 + $0x10] sm:$0xff]  ;;  %v3745_v6 = vld [vmem:[%s4559_s22 + $0x18] sm:$0xff]  ;;  %v3746_v8 = vld [vmem:[%s4559_s22 + $0x20] sm:$0xff]  ;;  %s6164_s29 = sld [smem:[#allocation18_spill]]  ;;  %s3600_s24 = sshll.u32 %s4462_s28, 3 }
  0x5b   : > { %v3749_v7 = vld [vmem:[%s4559_s22 + $0x38] sm:$0xff]  ;;  %v3747_v9 = vld [vmem:[%s4559_s22 + $0x28] sm:$0xff]  ;;  %v4605_v11 = vld [vmem:[%s6113_s4] ss:$0 sm:$0xff]  ;;  %s6165_s17 = sld [smem:[#allocation21_spill]]  ;;  %p5732_p1 = scmp.lt.s32.totalorder %s3600_s24, 15 }
  0x5c   : > { %s6166_s20 = sld [smem:[#allocation20_spill]] }
  0x5d   : > { %760 = vmatpush.bf16.msra.mxu0 %v3750_v1  ;;  %3963 = vmatpush.bf16.msra.mxu2 %v3750_v1  ;;  %s6167_s30 = sld [smem:[#allocation22_spill]]  ;;  %s6187_s24 = smov (!%p5732_p1, %s3600_s24), 15 }
  0x5e   : > { %3964 = vmatpush.bf16.msra.mxu3 %v3750_v1  ;;  %s6170_s19 = sld [smem:[#allocation23_spill]]  ;;  %s3601_s28 = sshll.u32 %s6187_s24, 3 }
  0x5f   : > { %s6171_s1 = sld [smem:[#allocation24_spill]] }
  0x60   : > { %3642 = vmatmul.msk.bf16.vlgmr.msra.gmra.mxu0 %vm728_vm0, %v3742_v2  ;;  %3648 = vmatmul.msk.bf16.vlgmr.msra.gmra.mxu2 %vm728_vm0, %v3748_v4  ;;  %s6172_s13 = sld [smem:[#allocation26_spill]] }
  0x61   : > { %3649 = vmatmul.msk.bf16.vlgmr.msra.gmra.mxu3 %vm728_vm0, %v3749_v7  ;;  %s6180_s26 = sld [smem:[#allocation27_spill]] }
  0x67   : > { %s5785_s11 = scalar_lea.vmem %s6180_s26, %s3601_s28 }
  0x70   : > { %3643 = vmatmul.msk.bf16.gmra.mxu0 %vm728_vm0, %v3743_v3 }
  0x80   : > { %3644 = vmatmul.msk.bf16.gmra.mxu0 %vm728_vm0, %v3744_v5 }
  0x90   : > { %3645 = vmatmul.msk.bf16.gmra.mxu0 %vm728_vm0, %v3745_v6 }
  0xa0   : > { %3646 = vmatmul.msk.bf16.gmra.mxu0 %vm728_vm0, %v3746_v8 }
  0xb0   : > { %3647 = vmatmul.msk.bf16.gmra.mxu0 %vm728_vm0, %v3747_v9 }
  0xdd   : > { %v762_v10 = vpop.f32.mrf.mxu0 }
  0xde   : > { %v763_v12 = vadd.f32 %v4605_v11, %v762_v10 }
  0xe0   : > { %v802_v14 = vpack.c.bf16 %v763_v12, %v763_v12 }
  0xe2   : > { %v820_v17 = vunpack.c.l.b16 %v802_v14 }
  0xe3   : > { %v792_v30 = vpop.f32.mrf.mxu2 }
  0xe4   : > { %v793_v32 = vadd.f32 %v4605_v11, %v792_v30  ;;  %v797_v52 = vpop.f32.mrf.mxu3 }
  0xe5   : > { %v764_v13 = vpop.f32.mrf.mxu0  ;;  %v798_v57 = vadd.f32 %v4605_v11, %v797_v52 }
  0xe6   : > { %v765_v15 = vadd.f32 %v4605_v11, %v764_v13  ;;  %v814_v33 = vpack.c.bf16 %v793_v32, %v793_v32 }
  0xe7   : > { %v816_v59 = vpack.c.bf16 %v798_v57, %v798_v57 }
  0xe8   : > { %v803_v16 = vpack.c.bf16 %v765_v15, %v765_v15  ;;  %v982_v40 = vunpack.c.l.b16 %v814_v33 }
  0xe9   : > { %v1009_v63 = vunpack.c.l.b16 %v816_v59 }
  0xea   : > { %v821_v18 = vunpack.c.l.b16 %v803_v16 }
  0xeb   : > { %v794_v35 = vpop.f32.mrf.mxu2 }
  0xec   : > { %v4609_v19 = vpack.c.b16 %v821_v18, %v820_v17  ;;  %v795_v38 = vadd.f32 %v4605_v11, %v794_v35  ;;  %v799_v60 = vpop.f32.mrf.mxu3 }
  0xed   : > { %v767_v20 = vpop.f32.mrf.mxu0  ;;  %v800_v61 = vadd.f32 %v4605_v11, %v799_v60 }
  0xee   : > { %823 = vrot.lane.b32.xlu0 %v4609_v19, %s4350_s12  ;;  %v768_v21 = vadd.f32 %v4605_v11, %v767_v20  ;;  %v815_v41 = vpack.c.bf16 %v795_v38, %v795_v38  ;;  %v4682_v38 = vld [vmem:[%s6161_s23] sm:$0xff] }
  0xef   : > { %v817_v0 = vpack.c.bf16 %v800_v61, %v800_v61 }
  0xf0   : > { %v804_v23 = vpack.c.bf16 %v768_v21, %v768_v21  ;;  %v983_v44 = vunpack.c.l.b16 %v815_v41 }
  0xf1   : > { %v1010_v1 = vunpack.c.l.b16 %v817_v0 }
  0xf2   : > { %v847_v26 = vunpack.c.l.b16 %v804_v23  ;;  %v4625_v46 = vpack.c.b16 %v983_v44, %v982_v40 }
  0xf3   : > { %v4640_v4 = vpack.c.b16 %v1010_v1, %v1009_v63 }
  0xf5   : > { %v769_v22 = vpop.f32.mrf.mxu0 }
  0xf6   : > { %v770_v24 = vadd.f32 %v4605_v11, %v769_v22 }
  0xf8   : > { %v805_v25 = vpack.c.bf16 %v770_v24, %v770_v24 }
  0xfa   : > { %v848_v27 = vunpack.c.l.b16 %v805_v25 }
  0xfc   : > { %v4615_v28 = vpack.c.b16 %v848_v27, %v847_v26 }
  0xfd   : > { %v772_v29 = vpop.f32.mrf.mxu0 }
  0xfe   : > { %850 = vrot.lane.b32.xlu0 %v4615_v28, %s4350_s12  ;;  %v773_v31 = vadd.f32 %v4605_v11, %v772_v29 }
 0x100   : > { %v806_v36 = vpack.c.bf16 %v773_v31, %v773_v31 }
 0x102   : > { %v874_v42 = vunpack.c.l.b16 %v806_v36 }
 0x105   : > { %v774_v34 = vpop.f32.mrf.mxu0 }
 0x106   : > { %v775_v37 = vadd.f32 %v4605_v11, %v774_v34  ;;  %985 = vrot.lane.b32.xlu0 %v4625_v46, %s4350_s12 }
 0x108   : > { %v807_v39 = vpack.c.bf16 %v775_v37, %v775_v37 }
 0x10a   : > { %v875_v43 = vunpack.c.l.b16 %v807_v39 }
 0x10c   : > { %v4623_v45 = vpack.c.b16 %v875_v43, %v874_v42  ;;  %v4692_v43 = vld [vmem:[%s6161_s23 + $0x8] sm:$0xff] }
 0x10d   : > { %v777_v47 = vpop.f32.mrf.mxu0 }
 0x10e   : > { %877 = vrot.lane.b32.xlu1 %v4623_v45, %s4350_s12  ;;  %v778_v48 = vadd.f32 %v4605_v11, %v777_v47 }
 0x110   : > { %v808_v49 = vpack.c.bf16 %v778_v48, %v778_v48 }
 0x112   : > { %v901_v53 = vunpack.c.l.b16 %v808_v49 }
 0x115   : > { %v779_v50 = vpop.f32.mrf.mxu0 }
 0x116   : > { %v780_v51 = vadd.f32 %v4605_v11, %v779_v50 }
 0x118   : > { %v809_v54 = vpack.c.bf16 %v780_v51, %v780_v51 }
 0x11a   : > { %v902_v55 = vunpack.c.l.b16 %v809_v54 }
 0x11c   : > { %v4633_v56 = vpack.c.b16 %v902_v55, %v901_v53 }
 0x11d   : > { %v782_v58 = vpop.f32.mrf.mxu0 }
 0x11e   : > { %904 = vrot.lane.b32.xlu1 %v4633_v56, %s4350_s12  ;;  %v783_v62 = vadd.f32 %v4605_v11, %v782_v58 }
 0x120   : > { %v810_v2 = vpack.c.bf16 %v783_v62, %v783_v62 }
 0x122   : > { %v928_v6 = vunpack.c.l.b16 %v810_v2 }
 0x125   : > { %v784_v3 = vpop.f32.mrf.mxu0 }
 0x126   : > { %v785_v5 = vadd.f32 %v4605_v11, %v784_v3  ;;  %1012 = vrot.lane.b32.xlu1 %v4640_v4, %s4350_s12 }
 0x128   : > { %v811_v7 = vpack.c.bf16 %v785_v5, %v785_v5 }
 0x12a   : > { %v929_v8 = vunpack.c.l.b16 %v811_v7 }
 0x12c   : > { %v4645_v9 = vpack.c.b16 %v929_v8, %v928_v6 }
 0x12d   : > { %v787_v10 = vpop.f32.mrf.mxu0 }
 0x12e   : > { %931 = vrot.lane.b32.xlu2 %v4645_v9, %s4350_s12  ;;  %v788_v12 = vadd.f32 %v4605_v11, %v787_v10 }
 0x130   : > { %v812_v13 = vpack.c.bf16 %v788_v12, %v788_v12 }
 0x132   : > { %v955_v16 = vunpack.c.l.b16 %v812_v13 }
 0x135   : > { %v789_v14 = vpop.f32.mrf.mxu0 }
 0x136   : > { %v790_v15 = vadd.f32 %v4605_v11, %v789_v14 }
 0x138   : > { %v813_v17 = vpack.c.bf16 %v790_v15, %v790_v15 }
 0x13a   : > { %v956_v18 = vunpack.c.l.b16 %v813_v17 }
 0x13c   : > { %v4651_v20 = vpack.c.b16 %v956_v18, %v955_v16 }
 0x13e   : > { %958 = vrot.lane.b32.xlu2 %v4651_v20, %s4350_s12 }
 0x160   : > { %v824_v21 = vpop.permute.xlu0 %823 }
 0x161   : > { %v829_v22 = vsel %vm728_vm0, %v824_v21, 0 }
 0x162   : > { %838 = vmatpush.bf16.xpose.msra.mxu1 %v829_v22 }
 0x169   : > { %3650 = vmatmul.msk.bf16.vlgmr.msra.gmra.mxu1 %vm728_vm0, %v4609_v19 }
 0x170   : > { %v851_v23 = vpop.permute.xlu0 %850 }
 0x171   : > { %v856_v24 = vsel %vm728_vm0, %v851_v23, 0 }
 0x172   : > { %865 = vmatpush.bf16.xpose.msrb.mxu2 %v856_v24 }
 0x178   : > { %v986_v29 = vpop.permute.xlu0 %985 }
 0x179   : > { %3651 = vmatmul.msk.bf16.vlgmr.msrb.gmra.mxu2 %vm728_vm0, %v4615_v28  ;;  %v991_v31 = vsel %vm728_vm0, %v986_v29, 0 }
 0x180   : > { %v878_v11 = vpop.permute.xlu1 %877 }
 0x181   : > { %v883_v25 = vsel %vm728_vm0, %v878_v11, 0 }
 0x182   : > { %892 = vmatpush.bf16.xpose.msrb.mxu3 %v883_v25 }
 0x188   : > { %v932_v26 = vpop.permute.xlu2 %931 }
 0x189   : > { %v937_v27 = vsel %vm728_vm0, %v932_v26, 0  ;;  %3652 = vmatmul.msk.bf16.vlgmr.msrb.gmra.mxu3 %vm728_vm0, %v4623_v45 }
 0x18a   : > { %946 = vmatpush.bf16.xpose.msra.mxu2 %v937_v27 }
 0x190   : > { %v905_v30 = vpop.permute.xlu1 %904 }
 0x191   : > { %3654 = vmatmul.msk.bf16.vlgmr.msra.gmra.mxu2 %vm728_vm0, %v4645_v9  ;;  %v910_v32 = vsel %vm728_vm0, %v905_v30, 0 }
 0x192   : > { %919 = vmatpush.bf16.xpose.msrb.mxu1 %v910_v32 }
 0x198   : > { %v959_v33 = vpop.permute.xlu2 %958  ;;  %v1013_v35 = vpop.permute.xlu1 %1012 }
 0x199   : > { %v964_v34 = vsel %vm728_vm0, %v959_v33, 0  ;;  %3653 = vmatmul.msk.bf16.vlgmr.msrb.gmra.mxu1 %vm728_vm0, %v4633_v56  ;;  %v1018_v36 = vsel %vm728_vm0, %v1013_v35, 0 }
 0x19a   : > { %1000 = vmatpush.bf16.xpose.msra.mxu1 %v991_v31  ;;  %973 = vmatpush.bf16.xpose.msra.mxu3 %v964_v34 }
 0x19b   : > { %1027 = vmatpush.bf16.xpose.msrb.mxu2 %v1018_v36 }
 0x1a1   : > { %3655 = vmatmul.msk.bf16.vlgmr.msra.gmra.mxu3 %vm728_vm0, %v4651_v20 }
 0x1a2   : > { %3657 = vmatmul.msk.bf16.vlgmr.msrb.gmra.mxu2 %vm728_vm0, %v4640_v4 }
 0x1a9   : > { %3656 = vmatmul.msk.bf16.vlgmr.msra.gmra.mxu1 %vm728_vm0, %v4625_v46 }
 0x1e6   : > { %v840_v37 = vpop.f32.mrf.mxu1 }
 0x1e7   : > { %v1034_v39 = vmul.f32 0.17677669, %v840_v37 }
 0x1e9   : > { %v4685_v40 = vadd.f32 %v4682_v38, %v1034_v39 }
 0x1eb   : > { %v1069_v41 = vsel %vm1068_vm1, %v4685_v40, -inf }
 0x1ec   : > { %1070 = vmax.xlane.f32.xlu2 %v1069_v41 }
 0x1ee   : > { %v842_v42 = vpop.f32.mrf.mxu1 }
 0x1ef   : > { %v1035_v44 = vmul.f32 0.17677669, %v842_v42 }
 0x1f1   : > { %v4695_v47 = vadd.f32 %v4692_v43, %v1035_v44 }
 0x1f3   : > { %v1072_v48 = vsel %vm1068_vm1, %v4695_v47, -inf }
 0x1f4   : > { %1073 = vmax.xlane.f32.xlu0 %v1072_v48 }
 0x1fc   : > { %v867_v49 = vpop.f32.mrf.mxu2 }
 0x1fd   : > { %v1036_v50 = vmul.f32 0.17677669, %v867_v49 }
 0x1ff   : > { %v4700_v51 = vadd.f32 %v4682_v38, %v1036_v50 }
 0x201   : > { %v1075_v52 = vsel %vm1068_vm1, %v4700_v51, -inf }
 0x202   : > { %1076 = vmax.xlane.f32.xlu1 %v1075_v52 }
 0x204   : > { %v869_v53 = vpop.f32.mrf.mxu2 }
 0x205   : > { %v1037_v54 = vmul.f32 0.17677669, %v869_v53 }
 0x207   : > { %v4705_v55 = vadd.f32 %v4692_v43, %v1037_v54 }
 0x209   : > { %v1078_v57 = vsel %vm1068_vm1, %v4705_v55, -inf }
 0x20a   : > { %1079 = vmax.xlane.f32.xlu2 %v1078_v57 }
 0x20c   : > { %v894_v58 = vpop.f32.mrf.mxu3 }
 0x20d   : > { %v1038_v59 = vmul.f32 0.17677669, %v894_v58 }
 0x20f   : > { %v4710_v60 = vadd.f32 %v4682_v38, %v1038_v59 }
 0x211   : > { %v1081_v61 = vsel %vm1068_vm1, %v4710_v60, -inf }
 0x212   : > { %1082 = vmax.xlane.f32.xlu2 %v1081_v61 }
 0x214   : > { %v896_v62 = vpop.f32.mrf.mxu3  ;;  %v948_v13 = vpop.f32.mrf.mxu2 }
 0x215   : > { %v1039_v63 = vmul.f32 0.17677669, %v896_v62  ;;  %v1042_v22 = vmul.f32 0.17677669, %v948_v13 }
 0x216   : > { %v921_v0 = vpop.f32.mrf.mxu1 }
 0x217   : > { %v1040_v1 = vmul.f32 0.17677669, %v921_v0  ;;  %v4715_v2 = vadd.f32 %v4692_v43, %v1039_v63 }
 0x219   : > { %v1084_v3 = vsel %vm1068_vm1, %v4715_v2, -inf  ;;  %v4720_v5 = vadd.f32 %v4682_v38, %v1040_v1 }
 0x21a   : > { %1085 = vmax.xlane.f32.xlu0 %v1084_v3 }
 0x21b   : > { %v1087_v6 = vsel %vm1068_vm1, %v4720_v5, -inf }
 0x21c   : > { %1088 = vmax.xlane.f32.xlu1 %v1087_v6  ;;  %v950_v17 = vpop.f32.mrf.mxu2 }
 0x21d   : > { %v1043_v21 = vmul.f32 0.17677669, %v950_v17 }
 0x21e   : > { %v923_v7 = vpop.f32.mrf.mxu1 }
 0x21f   : > { %v1041_v8 = vmul.f32 0.17677669, %v923_v7 }
 0x221   : > { %v4725_v10 = vadd.f32 %v4692_v43, %v1041_v8 }
 0x223   : > { %v1090_v12 = vsel %vm1068_vm1, %v4725_v10, -inf }
 0x224   : > { %1091 = vmax.xlane.f32.xlu2 %v1090_v12  ;;  %v975_v16 = vpop.f32.mrf.mxu3 }
 0x225   : > { %v1044_v34 = vmul.f32 0.17677669, %v975_v16  ;;  %v1029_v8 = vpop.f32.mrf.mxu2 }
 0x226   : > { %v1002_v14 = vpop.f32.mrf.mxu1 }
 0x227   : > { %v1046_v15 = vmul.f32 0.17677669, %v1002_v14  ;;  %v4763_v42 = vadd.f32 %v4682_v38, %v1044_v34  ;;  %v1048_v14 = vmul.f32 0.17677669, %v1029_v8 }
 0x229   : > { %v4736_v18 = vadd.f32 %v4682_v38, %v1046_v15  ;;  %v4793_v16 = vadd.f32 %v4682_v38, %v1048_v14 }
 0x22b   : > { %v1105_v23 = vsel %vm1068_vm1, %v4736_v18, -inf }
 0x22e   : > { %1316 = vrot.lane.b32.xlu0 %v4623_v45, %s4351_s10  ;;  %v4741_v45 = vadd.f32 %v4692_v43, %v1043_v21  ;;  %v1004_v24 = vpop.f32.mrf.mxu1 }
 0x22f   : > { %v1047_v26 = vmul.f32 0.17677669, %v1004_v24 }
 0x230   : > { %v1096_v25 = vsel %vm1068_vm1, %v4741_v45, -inf }
 0x231   : > { %v4754_v31 = vadd.f32 %v4692_v43, %v1047_v26 }
 0x233   : > { %v1108_v36 = vsel %vm1068_vm1, %v4754_v31, -inf }
 0x235   : > { %1291 = vrot.lane.b32.xlu1 %v4615_v28, %s4351_s10  ;;  %v977_v28 = vpop.f32.mrf.mxu3 }
 0x236   : > { %v1045_v11 = vmul.f32 0.17677669, %v977_v28 }
 0x238   : > { %v4751_v29 = vadd.f32 %v4692_v43, %v1045_v11 }
 0x23a   : > { %v1102_v33 = vsel %vm1068_vm1, %v4751_v29, -inf }
 0x23c   : > { %1266 = vrot.lane.b32.xlu2 %v4609_v19, %s4351_s10  ;;  %v4744_v19 = vadd.f32 %v4682_v38, %v1042_v22  ;;  %v1111_v22 = vsel %vm1068_vm1, %v4793_v16, -inf }
 0x23e   : > { %v1093_v27 = vsel %vm1068_vm1, %v4744_v19, -inf }
 0x258   : > { %1106 = vmax.xlane.f32.xlu0 %v1105_v23 }
 0x25f   : > { %1097 = vmax.xlane.f32.xlu1 %v1096_v25  ;;  %v1071_v30 = vpop.xlane.xlu2 %1070 }
 0x260   : > { %1094 = vmax.xlane.f32.xlu0 %v1093_v27  ;;  %v1117_v32 = vsub.f32 %v4685_v40, %v1071_v30  ;;  %v1099_v40 = vsel %vm1068_vm1, %v4763_v42, -inf  ;;  %v1031_v30 = vpop.f32.mrf.mxu2 }
 0x262   : > { %v1133_v39 = vmul.f32 1.442695, %v1117_v32 }
 0x267   : > { %1103 = vmax.xlane.f32.xlu1 %v1102_v33  ;;  %v1074_v35 = vpop.xlane.xlu0 %1073  ;;  %v1049_v33 = vmul.f32 0.17677669, %v1031_v30 }
 0x268   : > { %v1118_v37 = vsub.f32 %v4695_v47, %v1074_v35  ;;  %1109 = vmax.xlane.f32.xlu0 %v1108_v36 }
 0x26a   : > { %v1135_v41 = vmul.f32 1.442695, %v1118_v37  ;;  %v4814_v37 = vadd.f32 %v4692_v43, %v1049_v33 }
 0x26c   : > { %4047 = vpow2.f32 %v1135_v41 }
 0x26d   : > { %4049 = vpow2.f32 %v1133_v39 }
 0x270   : > { %1100 = vmax.xlane.f32.xlu0 %v1099_v40 }
 0x272   : > { %v4767_v44 = vpop.eup %4047 }
 0x273   : > { %v1168_v48 = vsel %vm1068_vm1, %v4767_v44, 0.0  ;;  %v4771_v49 = vpop.eup %4049 }
 0x274   : > { %1169 = vadd.xlane.f32.xlu1 %v1168_v48  ;;  %v1165_v52 = vsel %vm1068_vm1, %v4771_v49, 0.0 }
 0x275   : > { %v1077_v47 = vpop.xlane.xlu1 %1076 }
 0x276   : > { %v1119_v50 = vsub.f32 %v4700_v51, %v1077_v47 }
 0x278   : > { %v1137_v53 = vmul.f32 1.442695, %v1119_v50  ;;  %1166 = vadd.xlane.f32.xlu0 %v1165_v52 }
 0x27a   : > { %4051 = vpow2.f32 %v1137_v53 }
 0x27d   : > { %v1080_v54 = vpop.xlane.xlu2 %1079 }
 0x27e   : > { %v1120_v57 = vsub.f32 %v4705_v55, %v1080_v54 }
 0x280   : > { %v4777_v58 = vpop.eup %4051  ;;  %v1139_v59 = vmul.f32 1.442695, %v1120_v57 }
 0x281   : > { %v1171_v61 = vsel %vm1068_vm1, %v4777_v58, 0.0 }
 0x282   : > { %4053 = vpow2.f32 %v1139_v59  ;;  %1172 = vadd.xlane.f32.xlu0 %v1171_v61 }
 0x285   : > { %v1083_v62 = vpop.xlane.xlu2 %1082 }
 0x286   : > { %v1121_v51 = vsub.f32 %v4710_v60, %v1083_v62 }
 0x288   : > { %v4782_v63 = vpop.eup %4053  ;;  %v1141_v0 = vmul.f32 1.442695, %v1121_v51 }
 0x289   : > { %v1174_v1 = vsel %vm1068_vm1, %v4782_v63, 0.0 }
 0x28a   : > { %4055 = vpow2.f32 %v1141_v0  ;;  %1175 = vadd.xlane.f32.xlu1 %v1174_v1 }
 0x28d   : > { %v1086_v55 = vpop.xlane.xlu0 %1085 }
 0x28e   : > { %v1122_v3 = vsub.f32 %v4715_v2, %v1086_v55 }
 0x28f   : > { %v1089_v6 = vpop.xlane.xlu1 %1088 }
 0x290   : > { %v4787_v7 = vpop.eup %4055  ;;  %v1143_v12 = vmul.f32 1.442695, %v1122_v3  ;;  %v1123_v13 = vsub.f32 %v4720_v5, %v1089_v6 }
 0x291   : > { %v1177_v60 = vsel %vm1068_vm1, %v4787_v7, 0.0 }
 0x292   : > { %4057 = vpow2.f32 %v1143_v12  ;;  %v1145_v15 = vmul.f32 1.442695, %v1123_v13  ;;  %1178 = vadd.xlane.f32.xlu2 %v1177_v60 }
 0x294   : > { %4059 = vpow2.f32 %v1145_v15 }
 0x297   : > { %v1092_v17 = vpop.xlane.xlu2 %1091 }
 0x298   : > { %v4795_v2 = vpop.eup %4057  ;;  %v1124_v21 = vsub.f32 %v4725_v10, %v1092_v17 }
 0x299   : > { %v1180_v5 = vsel %vm1068_vm1, %v4795_v2, 0.0 }
 0x29a   : > { %v4802_v23 = vpop.eup %4059  ;;  %v1147_v28 = vmul.f32 1.442695, %v1124_v21  ;;  %1112 = vmax.xlane.f32.xlu2 %v1111_v22  ;;  %1181 = vadd.xlane.f32.xlu0 %v1180_v5 }
 0x29b   : > { %v1183_v38 = vsel %vm1068_vm1, %v4802_v23, 0.0 }
 0x29c   : > { %4061 = vpow2.f32 %v1147_v28  ;;  %1184 = vadd.xlane.f32.xlu1 %v1183_v38 }
 0x29f   : > { %v1267_v24 = vpop.permute.xlu2 %1266 }
 0x2a0   : > { %1279 = vmatpush.bf16.msrb.mxu3 %v1267_v24  ;;  %v1317_v11 = vpop.permute.xlu0 %1316 }
 0x2a1   : > { %1329 = vmatpush.bf16.msra.mxu2 %v1317_v11 }
 0x2a2   : > { %v4806_v10 = vpop.eup %4061 }
 0x2a3   : > { %v1186_v25 = vsel %vm1068_vm1, %v4806_v10, 0.0 }
 0x2a4   : > { %1187 = vadd.xlane.f32.xlu2 %v1186_v25 }
 0x2a7   : > { %v1292_v26 = vpop.permute.xlu1 %1291 }
 0x2a8   : > { %1304 = vmatpush.bf16.msrb.mxu1 %v1292_v26 }
 0x2ae   : > { %1341 = vrot.lane.b32.xlu0 %v4633_v56, %s4351_s10  ;;  %v1114_v56 = vsel %vm1068_vm1, %v4814_v37, -inf }
 0x2cb   : > { %v1107_v27 = vpop.xlane.xlu0 %1106 }
 0x2cc   : > { %v1129_v32 = vsub.f32 %v4736_v18, %v1107_v27 }
 0x2ce   : > { %v1157_v34 = vmul.f32 1.442695, %v1129_v32 }
 0x2d0   : > { %4063 = vpow2.f32 %v1157_v34 }
 0x2d2   : > { %v1098_v35 = vpop.xlane.xlu1 %1097 }
 0x2d3   : > { %v1095_v36 = vpop.xlane.xlu0 %1094  ;;  %v1126_v41 = vsub.f32 %v4741_v45, %v1098_v35 }
 0x2d4   : > { %v1125_v39 = vsub.f32 %v4744_v19, %v1095_v36 }
 0x2d5   : > { %v1151_v48 = vmul.f32 1.442695, %v1126_v41 }
 0x2d6   : > { %v1149_v40 = vmul.f32 1.442695, %v1125_v39  ;;  %v4822_v50 = vpop.eup %4063 }
 0x2d7   : > { %v1201_v45 = vsel %vm1068_vm1, %v4822_v50, 0.0 }
 0x2d8   : > { %4065 = vpow2.f32 %v1149_v40  ;;  %1115 = vmax.xlane.f32.xlu0 %v1114_v56 }
 0x2d9   : > { %4067 = vpow2.f32 %v1151_v48 }
 0x2da   : > { %v1104_v18 = vpop.xlane.xlu1 %1103 }
 0x2db   : > { %v4820_v47 = vpop.xlane.xlu0 %1109  ;;  %v1128_v43 = vsub.f32 %v4751_v29, %v1104_v18 }
 0x2dd   : > { %v1155_v53 = vmul.f32 1.442695, %v1128_v43 }
 0x2de   : > { %v4824_v52 = vpop.eup %4065 }
 0x2df   : > { %v1189_v19 = vsel %vm1068_vm1, %v4824_v52, 0.0  ;;  %v4831_v57 = vpop.eup %4067  ;;  %4069 = vpow2.f32 %v1155_v53 }
 0x2e0   : > { %1202 = vadd.xlane.f32.xlu0 %v1201_v45  ;;  %1190 = vadd.xlane.f32.xlu2 %v1189_v19  ;;  %v1192_v29 = vsel %vm1068_vm1, %v4831_v57, 0.0 }
 0x2e3   : > { %v1101_v54 = vpop.xlane.xlu0 %1100 }
 0x2e4   : > { %v1127_v59 = vsub.f32 %v4763_v42, %v1101_v54 }
 0x2e5   : > { %v4836_v0 = vpop.eup %4069 }
 0x2e6   : > { %v1153_v61 = vmul.f32 1.442695, %v1127_v59  ;;  %v1198_v3 = vsel %vm1068_vm1, %v4836_v0, 0.0 }
 0x2e7   : > { %v1170_v62 = vpop.xlane.xlu1 %1169 }
 0x2e8   : > { %4071 = vpow2.f32 %v1153_v61  ;;  %1193 = vadd.xlane.f32.xlu2 %v1192_v29 }
 0x2e9   : > { %4073 = vrcp.f32 %v1170_v62 }
 0x2eb   : > { %v1167_v51 = vpop.xlane.xlu0 %1166 }
 0x2ec   : > { %4075 = vrcp.f32 %v1167_v51 }
 0x2ee   : > { %v4838_v1 = vpop.eup %4071 }
 0x2ef   : > { %v4074_v55 = vpop.eup %4073  ;;  %v1195_v42 = vsel %vm1068_vm1, %v4838_v1, 0.0 }
 0x2f0   : > { %v1230_v6 = vmul.f32 %v4074_v55, %v4767_v44  ;;  %1199 = vadd.xlane.f32.xlu2 %v1198_v3  ;;  %1196 = vadd.xlane.f32.xlu1 %v1195_v42 }
 0x2f2   : > { %v4076_v8 = vpop.eup %4075  ;;  %v1246_v12 = vpack.c.bf16 %v1230_v6, %v1230_v6 }
 0x2f3   : > { %v1229_v13 = vmul.f32 %v4076_v8, %v4771_v49 }
 0x2f4   : > { %1416 = vrot.lane.b32.xlu0 %v4625_v46, %s4351_s10  ;;  %v1264_v15 = vunpack.c.l.b16 %v1246_v12 }
 0x2f5   : > { %v1245_v14 = vpack.c.bf16 %v1229_v13, %v1229_v13  ;;  %v1173_v60 = vpop.xlane.xlu0 %1172 }
 0x2f6   : > { %4077 = vrcp.f32 %v1173_v60 }
 0x2f7   : > { %v1263_v17 = vunpack.c.l.b16 %v1245_v14 }
 0x2f9   : > { %v1265_v21 = vpack.c.b16 %v1264_v15, %v1263_v17 }
 0x2fb   : > { %3658 = vmatmul.msk.bf16.vlgmr.msrb.gmra.mxu3 %vm1068_vm1, %v1265_v21 }
 0x2fc   : > { %v4078_v5 = vpop.eup %4077 }
 0x2fd   : > { %v1176_v22 = vpop.xlane.xlu1 %1175  ;;  %v1231_v44 = vmul.f32 %v4078_v5, %v4777_v58  ;;  %v3752_v5 = vld [vmem:[%s6114_s5] sm:$0xff] }
 0x2fe   : > { %4079 = vrcp.f32 %v1176_v22 }
 0x2ff   : > { %v1247_v38 = vpack.c.bf16 %v1231_v44, %v1231_v44 }
 0x301   : > { %v1288_v46 = vunpack.c.l.b16 %v1247_v38 }
 0x304   : > { %v4080_v28 = vpop.eup %4079 }
 0x305   : > { %v1232_v49 = vmul.f32 %v4080_v28, %v4782_v63  ;;  %v1179_v24 = vpop.xlane.xlu2 %1178 }
 0x306   : > { %4081 = vrcp.f32 %v1179_v24 }
 0x307   : > { %v1248_v11 = vpack.c.bf16 %v1232_v49, %v1232_v49 }
 0x308   : > { %1391 = vrot.lane.b32.xlu2 %v4651_v20, %s4351_s10 }
 0x309   : > { %v1289_v25 = vunpack.c.l.b16 %v1248_v11  ;;  %1366 = vrot.lane.b32.xlu1 %v4645_v9, %s4351_s10 }
 0x30b   : > { %v1290_v26 = vpack.c.b16 %v1289_v25, %v1288_v46 }
 0x30c   : > { %v4082_v58 = vpop.eup %4081 }
 0x30d   : > { %3659 = vmatmul.msk.bf16.vlgmr.msrb.gmra.mxu1 %vm1068_vm1, %v1290_v26  ;;  %v1182_v27 = vpop.xlane.xlu0 %1181  ;;  %v1113_v30 = vpop.xlane.xlu2 %1112  ;;  %v1233_v63 = vmul.f32 %v4082_v58, %v4787_v7 }
 0x30e   : > { %4083 = vrcp.f32 %v1182_v27  ;;  %v1131_v18 = vsub.f32 %v4793_v16, %v1113_v30 }
 0x30f   : > { %v1185_v32 = vpop.xlane.xlu1 %1184  ;;  %v1249_v34 = vpack.c.bf16 %v1233_v63, %v1233_v63 }
 0x310   : > { %4085 = vrcp.f32 %v1185_v32  ;;  %v1161_v53 = vmul.f32 1.442695, %v1131_v18 }
 0x311   : > { %v1313_v9 = vunpack.c.l.b16 %v1249_v34 }
 0x314   : > { %v4084_v33 = vpop.eup %4083 }
 0x315   : > { %v1234_v20 = vmul.f32 %v4084_v33, %v4795_v2  ;;  %v1130_v2 = vsub.f32 %v4754_v31, %v4820_v47 }
 0x316   : > { %v4086_v39 = vpop.eup %4085 }
 0x317   : > { %v1250_v35 = vpack.c.bf16 %v1234_v20, %v1234_v20  ;;  %v1188_v36 = vpop.xlane.xlu2 %1187  ;;  %v1235_v56 = vmul.f32 %v4086_v39, %v4802_v23  ;;  %v1159_v61 = vmul.f32 1.442695, %v1130_v2 }
 0x318   : > { %4087 = vrcp.f32 %v1188_v36 }
 0x319   : > { %v1314_v41 = vunpack.c.l.b16 %v1250_v35  ;;  %v1251_v7 = vpack.c.bf16 %v1235_v56, %v1235_v56  ;;  %4089 = vpow2.f32 %v1161_v53 }
 0x31a   : > { %4091 = vpow2.f32 %v1159_v61 }
 0x31b   : > { %v1315_v40 = vpack.c.b16 %v1314_v41, %v1313_v9  ;;  %v1338_v54 = vunpack.c.l.b16 %v1251_v7 }
 0x31d   : > { %3660 = vmatmul.msk.bf16.vlgmr.msra.gmra.mxu2 %vm1068_vm1, %v1315_v40 }
 0x31e   : > { %v4088_v48 = vpop.eup %4087 }
 0x31f   : > { %v1236_v43 = vmul.f32 %v4088_v48, %v4806_v10  ;;  %v4865_v23 = vpop.eup %4089 }
 0x320   : > { %v1342_v45 = vpop.permute.xlu0 %1341  ;;  %v4867_v16 = vpop.eup %4091  ;;  %v1207_v10 = vsel %vm1068_vm1, %v4865_v23, 0.0 }
 0x321   : > { %v1252_v19 = vpack.c.bf16 %v1236_v43, %v1236_v43  ;;  %1354 = vmatpush.bf16.msra.mxu3 %v1342_v45  ;;  %v1204_v31 = vsel %vm1068_vm1, %v4867_v16, 0.0 }
 0x323   : > { %v1339_v59 = vunpack.c.l.b16 %v1252_v19 }
 0x325   : > { %v1340_v62 = vpack.c.b16 %v1339_v59, %v1338_v54 }
 0x327   : > { %3661 = vmatmul.msk.bf16.vlgmr.msra.gmra.mxu3 %vm1068_vm1, %v1340_v62 }
 0x331   : > { %1208 = vadd.xlane.f32.xlu2 %v1207_v10 }
 0x333   : > { %1205 = vadd.xlane.f32.xlu1 %v1204_v31 }
 0x34b   : > { %v1116_v47 = vpop.xlane.xlu0 %1115 }
 0x34c   : > { %v1132_v29 = vsub.f32 %v4814_v37, %v1116_v47  ;;  %1441 = vrot.lane.b32.xlu1 %v4640_v4, %s4351_s10  ;;  %v3753_v4 = vld [vmem:[%s6114_s5 + $0x8] sm:$0xff] }
 0x34e   : > { %v1163_v51 = vmul.f32 1.442695, %v1132_v29 }
 0x350   : > { %4093 = vpow2.f32 %v1163_v51 }
 0x353   : > { %v1191_v55 = vpop.xlane.xlu2 %1190  ;;  %v1203_v8 = vpop.xlane.xlu0 %1202 }
 0x356   : > { %v4876_v3 = vpop.eup %4093 }
 0x357   : > { %v1210_v42 = vsel %vm1068_vm1, %v4876_v3, 0.0 }
 0x358   : > { %1211 = vadd.xlane.f32.xlu0 %v1210_v42 }
 0x35b   : > { %v1194_v6 = vpop.xlane.xlu2 %1193 }
 0x363   : > { %v1200_v12 = vpop.xlane.xlu2 %1199  ;;  %v1197_v13 = vpop.xlane.xlu1 %1196 }
 0x364   : > { %4095 = vrcp.f32 %v1200_v12 }
 0x365   : > { %4097 = vrcp.f32 %v1197_v13 }
 0x366   : > { %v1417_v14 = vpop.permute.xlu0 %1416  ;;  %4099 = vrcp.f32 %v1194_v6 }
 0x367   : > { %1429 = vmatpush.bf16.msrb.mxu3 %v1417_v14  ;;  %4101 = vrcp.f32 %v1191_v55  ;;  %v652_v14 = vld [vmem:[%s4559_s22] sm:$0xff]  }
 0x368   : > { %4103 = vrcp.f32 %v1203_v8 }
 0x36a   : > { %v4096_v37 = vpop.eup %4095 }
 0x36b   : > { %v4098_v60 = vpop.eup %4097  ;;  %v1240_v15 = vmul.f32 %v4096_v37, %v4836_v0  ;;  %v1392_v17 = vpop.permute.xlu2 %1391 }
 0x36c   : > { %v1239_v21 = vmul.f32 %v4098_v60, %v4838_v1  ;;  %1404 = vmatpush.bf16.msrb.mxu2 %v1392_v17  ;;  %v4100_v44 = vpop.eup %4099  ;;  %v1563_v17 = vunpack.c.h.bf16 %v652_v14 }
 0x36d   : > { %v1256_v22 = vpack.c.bf16 %v1240_v15, %v1240_v15  ;;  %v4102_v49 = vpop.eup %4101  ;;  %v1238_v11 = vmul.f32 %v4100_v44, %v4831_v57 }
 0x36e   : > { %v1255_v28 = vpack.c.bf16 %v1239_v21, %v1239_v21  ;;  %v1237_v0 = vmul.f32 %v4102_v49, %v4824_v52  ;;  %v4104_v36 = vpop.eup %4103 }
 0x36f   : > { %v1389_v38 = vunpack.c.l.b16 %v1256_v22  ;;  %v1254_v1 = vpack.c.bf16 %v1238_v11, %v1238_v11  ;;  %v1241_v41 = vmul.f32 %v4104_v36, %v4822_v50 }
 0x370   : > { %1519 = vmatpush.bf16.msra.mxu2 %v3753_v4  ;;  %v1388_v24 = vunpack.c.l.b16 %v1255_v28  ;;  %v1253_v25 = vpack.c.bf16 %v1237_v0, %v1237_v0  ;;  %v654_v28 = vld [vmem:[%s4559_s22 + $0x8] sm:$0xff]  }
 0x371   : > { %v1364_v26 = vunpack.c.l.b16 %v1254_v1  ;;  %v1257_v48 = vpack.c.bf16 %v1241_v41, %v1241_v41  ;;  %v1564_v49 = vunpack.c.l.bf16 %v654_v28  ;;  %v1565_v1 = vunpack.c.h.bf16 %v654_v28 }
 0x372   : > { %v1390_v46 = vpack.c.b16 %v1389_v38, %v1388_v24  ;;  %v1363_v27 = vunpack.c.l.b16 %v1253_v25 }
 0x373   : > { %v1413_v43 = vunpack.c.l.b16 %v1257_v48 }
 0x374   : > { %1520 = vmatpush.bf16.msra.mxu2 %v3752_v5  ;;  %v1365_v30 = vpack.c.b16 %v1364_v26, %v1363_v27 }
 0x375   : > { %3663 = vmatmul.msk.bf16.vlgmr.msrb.gmra.mxu2 %vm1068_vm1, %v1390_v46 }
 0x37b   : > { %v1367_v58 = vpop.permute.xlu1 %1366 }
 0x37c   : > { %1379 = vmatpush.bf16.msra.mxu1 %v1367_v58 }
 0x37e   : > { %v1281_v32 = vpop.f32.mrf.mxu3 }
 0x37f   : > { %3662 = vmatmul.msk.bf16.vlgmr.msra.gmra.mxu1 %vm1068_vm1, %v1365_v30  ;;  %v656_v30 = vld [vmem:[%s4559_s22 + $0x10] sm:$0xff]  }
 0x386   : > { %v1283_v63 = vpop.f32.mrf.mxu3 }
 0x387   : > { %v1461_v33 = vpack.c.bf16 %v1283_v63, %v1281_v32  ;;  %v1566_v32 = vunpack.c.l.bf16 %v656_v30 }
 0x389   : > { %3674 = vmatmul.msk.bf16.vlgmr.msra.gmra.mxu2 %vm728_vm0, %v1461_v33 }
 0x38a   : > { %v1306_v57 = vpop.f32.mrf.mxu1 }
 0x392   : > { %v1308_v34 = vpop.f32.mrf.mxu1 }
 0x393   : > { %v1462_v20 = vpack.c.bf16 %v1308_v34, %v1306_v57 }
 0x399   : > { %3675 = vmatmul.msk.bf16.gmra.mxu2 %vm728_vm0, %v1462_v20  ;;  %v1567_v20 = vunpack.c.h.bf16 %v656_v30 }
 0x3a0   : > { %v1331_v52 = vpop.f32.mrf.mxu2 }
 0x3a4   : > { %v1209_v50 = vpop.xlane.xlu2 %1208 }
 0x3a6   : > { %v1206_v35 = vpop.xlane.xlu1 %1205 }
 0x3a7   : > { %4105 = vrcp.f32 %v1206_v35 }
 0x3a8   : > { %v1333_v39 = vpop.f32.mrf.mxu2  ;;  %4107 = vrcp.f32 %v1209_v50 }
 0x3a9   : > { %v1463_v9 = vpack.c.bf16 %v1333_v39, %v1331_v52 }
 0x3aa   : > { %v1356_v40 = vpop.f32.mrf.mxu3 }
 0x3ab   : > { %3676 = vmatmul.msk.bf16.gmra.mxu2 %vm728_vm0, %v1463_v9 }
 0x3ad   : > { %v4106_v56 = vpop.eup %4105 }
 0x3ae   : > { %v1242_v18 = vmul.f32 %v4106_v56, %v4867_v16  ;;  %v4108_v61 = vpop.eup %4107 }
 0x3af   : > { %v1243_v62 = vmul.f32 %v4108_v61, %v4865_v23  ;;  %v4907_v23 = vld [vmem:[%s6115_s6] ss:$0 sm:$0xff] }
 0x3b0   : > { %v1258_v7 = vpack.c.bf16 %v1242_v18, %v1242_v18 }
 0x3b1   : > { %v1259_v10 = vpack.c.bf16 %v1243_v62, %v1243_v62 }
 0x3b2   : > { %v1414_v45 = vunpack.c.l.b16 %v1258_v7  ;;  %v1358_v19 = vpop.f32.mrf.mxu3  ;;  %v4352_v7 = vmov 32.0  }
 0x3b3   : > { %v1464_v53 = vpack.c.bf16 %v1358_v19, %v1356_v40  ;;  %v1438_v29 = vunpack.c.l.b16 %v1259_v10  ;;  %v658_v10 = vld [vmem:[%s4559_s22 + $0x18] sm:$0xff]  }
 0x3b4   : > { %v1415_v2 = vpack.c.b16 %v1414_v45, %v1413_v43 }
 0x3b6   : > { %3664 = vmatmul.msk.bf16.vlgmr.msrb.gmra.mxu3 %vm1068_vm1, %v1415_v2 }
 0x3bb   : > { %3677 = vmatmul.msk.bf16.gmra.mxu2 %vm728_vm0, %v1464_v53 }
 0x3be   : > { %v1442_v54 = vpop.permute.xlu1 %1441 }
 0x3bf   : > { %1454 = vmatpush.bf16.msrb.mxu1 %v1442_v54 }
 0x3cb   : > { %v1212_v59 = vpop.xlane.xlu0 %1211 }
 0x3cc   : > { %4109 = vrcp.f32 %v1212_v59 }
 0x3cd   : > { %4111 = vrcp.f32 %v4352_v7 }
 0x3d2   : > { %v4110_v16 = vpop.eup %4109 }
 0x3d3   : > { %v1244_v31 = vmul.f32 %v4110_v16, %v4876_v3  ;;  %v1562_v3 = vunpack.c.l.bf16 %v652_v14  ;;  %v4112_v43 = vpop.eup %4111 }
 0x3d4   : > { %v1645_v45 = vmul.f32 32.0, %v4112_v43  ;;  %vm1649_vm2 = vweird.f32 %v4112_v43 }
 0x3d5   : > { %v1260_v47 = vpack.c.bf16 %v1244_v31, %v1244_v31 }
 0x3d6   : > { %v1646_v2 = vsub.f32 1.0, %v1645_v45 }
 0x3d7   : > { %v1439_v51 = vunpack.c.l.b16 %v1260_v47 }
 0x3d8   : > { %v1647_v53 = vmul.f32 %v4112_v43, %v1646_v2 }
 0x3d9   : > { %v1440_v55 = vpack.c.b16 %v1439_v51, %v1438_v29  ;;  %v1568_v51 = vunpack.c.l.bf16 %v658_v10 }
 0x3da   : > { %v1648_v54 = vadd.f32 %v4112_v43, %v1647_v53 }
 0x3db   : > { %3665 = vmatmul.msk.bf16.vlgmr.msrb.gmra.mxu1 %vm1068_vm1, %v1440_v55 }
 0x3dc   : > { %v4938_v50 = vsel %vm1649_vm2, %v4112_v43, %v1648_v54 }
 0x3f8   : > { %v1406_v42 = vpop.f32.mrf.mxu2 }
 0x3fc   : > { %v1381_v6 = vpop.f32.mrf.mxu1 }
 0x400   : > { %v1408_v8 = vpop.f32.mrf.mxu2 }
 0x401   : > { %v1466_v22 = vpack.c.bf16 %v1408_v8, %v1406_v42 }
 0x404   : > { %v1383_v12 = vpop.f32.mrf.mxu1 }
 0x405   : > { %v1465_v13 = vpack.c.bf16 %v1383_v12, %v1381_v6 }
 0x407   : > { %3678 = vmatmul.msk.bf16.gmra.mxu2 %vm728_vm0, %v1465_v13 }
 0x40c   : > { %v1522_v4 = vpop.f32.mrf.mxu2 }
 0x40d   : > { %v1523_v37 = vadd.f32 %v4907_v23, %v1522_v4 }
 0x40f   : > { %v1578_v60 = vadd.f32 %v1562_v3, %v1523_v37  ;;  %v1569_v37 = vunpack.c.h.bf16 %v658_v10 }
 0x411   : > { %v1596_v15 = vsel %vm728_vm0, %v1578_v60, 0.0 }
 0x412   : > { %1597 = vadd.xlane.f32.xlu2 %v1596_v15 }
 0x414   : > { %v1524_v21 = vpop.f32.mrf.mxu2 }
 0x415   : > { %v1525_v5 = vadd.f32 %v4907_v23, %v1524_v21 }
 0x417   : > { %3679 = vmatmul.msk.bf16.gmra.mxu2 %vm728_vm0, %v1466_v22  ;;  %v1579_v44 = vadd.f32 %v1563_v17, %v1525_v5  ;;  %v660_v5 = vld [vmem:[%s4559_s22 + $0x20] sm:$0xff]  }
 0x419   : > { %v1599_v38 = vsel %vm728_vm0, %v1579_v44, 0.0 }
 0x41a   : > { %1600 = vadd.xlane.f32.xlu2 %v1599_v38 }
 0x41c   : > { %v1527_v24 = vpop.f32.mrf.mxu2 }
 0x41d   : > { %v1528_v11 = vadd.f32 %v4907_v23, %v1527_v24  ;;  %v1570_v24 = vunpack.c.l.bf16 %v660_v5 }
 0x41f   : > { %v4916_v46 = vadd.f32 %v1564_v49, %v1528_v11 }
 0x421   : > { %v1602_v0 = vsel %vm728_vm0, %v4916_v46, 0.0 }
 0x422   : > { %1603 = vadd.xlane.f32.xlu2 %v1602_v0 }
 0x424   : > { %v1529_v25 = vpop.f32.mrf.mxu2 }
 0x425   : > { %v1530_v26 = vadd.f32 %v4907_v23, %v1529_v25 }
 0x427   : > { %v4921_v27 = vadd.f32 %v1565_v1, %v1530_v26 }
 0x429   : > { %v1605_v58 = vsel %vm728_vm0, %v4921_v27, 0.0 }
 0x42a   : > { %1606 = vadd.xlane.f32.xlu0 %v1605_v58 }
 0x42e   : > { %v1532_v63 = vpop.f32.mrf.mxu2 }
 0x42f   : > { %v1533_v33 = vadd.f32 %v4907_v23, %v1532_v63  ;;  %v1571_v63 = vunpack.c.h.bf16 %v660_v5 }
 0x431   : > { %v4927_v57 = vadd.f32 %v1566_v32, %v1533_v33 }
 0x433   : > { %v1608_v34 = vsel %vm728_vm0, %v4927_v57, 0.0 }
 0x434   : > { %1609 = vadd.xlane.f32.xlu1 %v1608_v34 }
 0x436   : > { %v1534_v52 = vpop.f32.mrf.mxu2 }
 0x437   : > { %v1535_v35 = vadd.f32 %v4907_v23, %v1534_v52 }
 0x439   : > { %v1431_v36 = vpop.f32.mrf.mxu3  ;;  %v4932_v39 = vadd.f32 %v1567_v20, %v1535_v35  ;;  %v662_v20 = vld [vmem:[%s4559_s22 + $0x28] sm:$0xff]  }
 0x43b   : > { %v1611_v9 = vsel %vm728_vm0, %v4932_v39, 0.0 }
 0x43c   : > { %1612 = vadd.xlane.f32.xlu2 %v1611_v9 }
 0x43e   : > { %v1537_v19 = vpop.f32.mrf.mxu2 }
 0x43f   : > { %v1538_v47 = vadd.f32 %v4907_v23, %v1537_v19 }
 0x441   : > { %v1433_v41 = vpop.f32.mrf.mxu3  ;;  %v4951_v12 = vadd.f32 %v1568_v51, %v1538_v47 }
 0x442   : > { %v1467_v40 = vpack.c.bf16 %v1433_v41, %v1431_v36 }
 0x443   : > { %v1614_v3 = vsel %vm728_vm0, %v4951_v12, 0.0 }
 0x444   : > { %3680 = vmatmul.msk.bf16.gmra.mxu2 %vm728_vm0, %v1467_v40  ;;  %v1572_v40 = vunpack.c.l.bf16 %v662_v20 }
 0x446   : > { %v1539_v59 = vpop.f32.mrf.mxu2 }
 0x447   : > { %v1540_v14 = vadd.f32 %v4907_v23, %v1539_v59 }
 0x449   : > { %v4963_v22 = vadd.f32 %v1569_v37, %v1540_v14 }
 0x44b   : > { %v1617_v38 = vsel %vm728_vm0, %v4963_v22, 0.0 }
 0x458   : > { %v1456_v56 = vpop.f32.mrf.mxu1 }
 0x460   : > { %v1458_v48 = vpop.f32.mrf.mxu1 }
 0x461   : > { %v1468_v18 = vpack.c.bf16 %v1458_v48, %v1456_v56 }
 0x463   : > { %3681 = vmatmul.msk.bf16.gmra.mxu2 %vm728_vm0, %v1468_v18  ;;  %v1573_v18 = vunpack.c.h.bf16 %v662_v20 }
 0x485   : > { %v1598_v61 = vpop.xlane.xlu2 %1597 }
 0x486   : > { %v1651_v62 = vmul.f32 %v4938_v50, %v1598_v61  ;;  %v664_v61 = vld [vmem:[%s4559_s22 + $0x30] sm:$0xff]  }
 0x488   : > { %v4941_v16 = vsub.f32 %v1578_v60, %v1651_v62  ;;  %v1574_v62 = vunpack.c.l.bf16 %v664_v61 }
 0x48a   : > { %v1683_v31 = vmul.f32 %v4941_v16, %v4941_v16  ;;  %v1542_v55 = vpop.f32.mrf.mxu2 }
 0x48b   : > { %v1543_v28 = vadd.f32 %v4907_v23, %v1542_v55 }
 0x48c   : > { %v1699_v29 = vsel %vm728_vm0, %v1683_v31, 0.0 }
 0x48d   : > { %1700 = vadd.xlane.f32.xlu0 %v1699_v29  ;;  %v1601_v42 = vpop.xlane.xlu2 %1600  ;;  %v4976_v1 = vadd.f32 %v1570_v24, %v1543_v28  ;;  %v3755_v29 = vld [vmem:[#allocation6 + $0x8] sm:$0xff]  ;;  %v1575_v24 = vunpack.c.h.bf16 %v664_v61 }
 0x48e   : > { %v1652_v6 = vmul.f32 %v4938_v50, %v1601_v42  ;;  %2051 = vmatpush.bf16.msra.mxu3 %v3755_v29 }
 0x48f   : > { %v1620_v32 = vsel %vm728_vm0, %v4976_v1, 0.0 }
 0x490   : > { %v4949_v8 = vsub.f32 %v1579_v44, %v1652_v6  ;;  %v3754_v6 = vld [vmem:[#allocation6] sm:$0xff] }
 0x492   : > { %v1684_v13 = vmul.f32 %v4949_v8, %v4949_v8  ;;  %v1544_v17 = vpop.f32.mrf.mxu2  ;;  %2052 = vmatpush.bf16.msra.mxu3 %v3754_v6 }
 0x493   : > { %v1545_v58 = vadd.f32 %v4907_v23, %v1544_v17 }
 0x494   : > { %v1702_v4 = vsel %vm728_vm0, %v1684_v13, 0.0 }
 0x495   : > { %1615 = vadd.xlane.f32.xlu0 %v1614_v3  ;;  %1703 = vadd.xlane.f32.xlu2 %v1702_v4  ;;  %v1604_v60 = vpop.xlane.xlu2 %1603  ;;  %v4985_v34 = vadd.f32 %v1571_v63, %v1545_v58 }
 0x496   : > { %v1653_v15 = vmul.f32 %v4938_v50, %v1604_v60 }
 0x497   : > { %v1623_v9 = vsel %vm728_vm0, %v4985_v34, 0.0 }
 0x498   : > { %v4961_v21 = vsub.f32 %v4916_v46, %v1653_v15 }
 0x49a   : > { %v1685_v44 = vmul.f32 %v4961_v21, %v4961_v21  ;;  %v1547_v25 = vpop.f32.mrf.mxu2 }
 0x49b   : > { %v1548_v36 = vadd.f32 %v4907_v23, %v1547_v25 }
 0x49c   : > { %v1705_v49 = vsel %vm728_vm0, %v1685_v44, 0.0 }
 0x49d   : > { %v1607_v11 = vpop.xlane.xlu0 %1606  ;;  %1618 = vadd.xlane.f32.xlu2 %v1617_v38  ;;  %1706 = vadd.xlane.f32.xlu0 %v1705_v49  ;;  %v4999_v43 = vadd.f32 %v1572_v40, %v1548_v36  ;;  %v666_v36 = vld [vmem:[%s4559_s22 + $0x38] sm:$0xff]  }
 0x49e   : > { %v1654_v46 = vmul.f32 %v4938_v50, %v1607_v11 }
 0x49f   : > { %v1626_v19 = vsel %vm728_vm0, %v4999_v43, 0.0 }
 0x4a0   : > { %v4974_v0 = vsub.f32 %v4921_v27, %v1654_v46 }
 0x4a2   : > { %v1686_v26 = vmul.f32 %v4974_v0, %v4974_v0  ;;  %v1549_v35 = vpop.f32.mrf.mxu2 }
 0x4a3   : > { %v1550_v56 = vadd.f32 %v4907_v23, %v1549_v35 }
 0x4a4   : > { %v1708_v30 = vsel %vm728_vm0, %v1686_v26, 0.0 }
 0x4a5   : > { %1709 = vadd.xlane.f32.xlu2 %v1708_v30  ;;  %1621 = vadd.xlane.f32.xlu0 %v1620_v32  ;;  %v5004_v2 = vadd.f32 %v1573_v18, %v1550_v56  ;;  %v1576_v18 = vunpack.c.l.bf16 %v666_v36 }
 0x4a7   : > { %v1610_v33 = vpop.xlane.xlu1 %1609  ;;  %v1629_v54 = vsel %vm728_vm0, %v5004_v2, 0.0 }
 0x4a8   : > { %v1655_v27 = vmul.f32 %v4938_v50, %v1610_v33 }
 0x4aa   : > { %v4989_v52 = vsub.f32 %v4927_v57, %v1655_v27 }
 0x4ac   : > { %v1687_v41 = vmul.f32 %v4989_v52, %v4989_v52 }
 0x4ad   : > { %1624 = vadd.xlane.f32.xlu2 %v1623_v9 }
 0x4ae   : > { %v1711_v48 = vsel %vm728_vm0, %v1687_v41, 0.0 }
 0x4af   : > { %1712 = vadd.xlane.f32.xlu0 %v1711_v48  ;;  %v1613_v57 = vpop.xlane.xlu2 %1612 }
 0x4b0   : > { %v1656_v7 = vmul.f32 %v4938_v50, %v1613_v57 }
 0x4b2   : > { %v5002_v45 = vsub.f32 %v4932_v39, %v1656_v7 }
 0x4b4   : > { %v1688_v53 = vmul.f32 %v5002_v45, %v5002_v45 }
 0x4b5   : > { %1627 = vadd.xlane.f32.xlu2 %v1626_v19 }
 0x4b6   : > { %v1714_v59 = vsel %vm728_vm0, %v1688_v53, 0.0 }
 0x4b7   : > { %1630 = vadd.xlane.f32.xlu0 %v1629_v54  ;;  %1715 = vadd.xlane.f32.xlu1 %v1714_v59 }
 0x4c7   : > { %v1552_v39 = vpop.f32.mrf.mxu2 }
 0x4c8   : > { %v1553_v10 = vadd.f32 %v4907_v23, %v1552_v39 }
 0x4ca   : > { %v5015_v31 = vadd.f32 %v1574_v62, %v1553_v10  ;;  %v5057_v10 = vld [vmem:[%s6116_s7] ss:$0 sm:$0xff] }
 0x4cc   : > { %v1632_v47 = vsel %vm728_vm0, %v5015_v31, 0.0 }
 0x4cd   : > { %1633 = vadd.xlane.f32.xlu0 %v1632_v47 }
 0x4cf   : > { %v1554_v3 = vpop.f32.mrf.mxu2 }
 0x4d0   : > { %v1555_v38 = vadd.f32 %v4907_v23, %v1554_v3 }
 0x4d2   : > { %v5036_v27 = vadd.f32 %v1575_v24, %v1555_v38 }
 0x4e6   : > { %v1557_v26 = vpop.f32.mrf.mxu2 }
 0x4e7   : > { %v1558_v40 = vadd.f32 %v4907_v23, %v1557_v26 }
 0x4ee   : > { %v1559_v39 = vpop.f32.mrf.mxu2 }
 0x500   : > { %v1701_v51 = vpop.xlane.xlu0 %1700 }
 0x501   : > { %v1747_v55 = vmul.f32 %v1701_v51, %v4938_v50 }
 0x503   : > { %v1763_v42 = vadd.f32 1e-05, %v1747_v55  ;;  %v5063_v55 = vadd.f32 %v1576_v18, %v1558_v40 }
 0x505   : > { %4113 = vrsqrt.f32 %v1763_v42  ;;  %vm1785_vm4 = vweird.f32 %v1763_v42 }
 0x508   : > { %v1616_v13 = vpop.xlane.xlu0 %1615  ;;  %v1704_v14 = vpop.xlane.xlu2 %1703 }
 0x509   : > { %v1657_v4 = vmul.f32 %v4938_v50, %v1616_v13  ;;  %v1748_v37 = vmul.f32 %v1704_v14, %v4938_v50  ;;  %v1560_v14 = vadd.f32 %v4907_v23, %v1559_v39 }
 0x50b   : > { %v4114_v60 = vpop.eup %4113  ;;  %v5023_v15 = vsub.f32 %v4951_v12, %v1657_v4  ;;  %v1764_v17 = vadd.f32 1e-05, %v1748_v37 }
 0x50c   : > { %v1780_v5 = vmul.f32 %v4114_v60, %v1763_v42  ;;  %vm1786_vm3 = vweird.f32 %v4114_v60 }
 0x50d   : > { %4115 = vrsqrt.f32 %v1764_v17  ;;  %v1689_v44 = vmul.f32 %v5023_v15, %v5023_v15  ;;  %vm5043_vm5 = vmor %vm1785_vm4, %vm1786_vm3  ;;  %vm1795_vm7 = vweird.f32 %v1764_v17 }
 0x50e   : > { %v1781_v28 = vmul.f32 %v4114_v60, %v1780_v5 }
 0x50f   : > { %v1717_v49 = vsel %vm728_vm0, %v1689_v44, 0.0 }
 0x510   : > { %v1782_v11 = vmul.f32 0.5, %v1781_v28  ;;  %v1707_v46 = vpop.xlane.xlu0 %1706  ;;  %1718 = vadd.xlane.f32.xlu1 %v1717_v49  ;;  %v1619_v25 = vpop.xlane.xlu2 %1618 }
 0x511   : > { %v1749_v12 = vmul.f32 %v1707_v46, %v4938_v50  ;;  %v1658_v58 = vmul.f32 %v4938_v50, %v1619_v25 }
 0x512   : > { %v1783_v30 = vsub.f32 1.5, %v1782_v11 }
 0x513   : > { %v4116_v32 = vpop.eup %4115  ;;  %v5031_v63 = vadd.f32 1e-05, %v1749_v12  ;;  %v5034_v33 = vsub.f32 %v4963_v22, %v1658_v58  ;;  %v1635_v22 = vsel %vm728_vm0, %v5036_v27, 0.0 }
 0x514   : > { %v1784_v20 = vmul.f32 %v4114_v60, %v1783_v30  ;;  %v1790_v35 = vmul.f32 %v4116_v32, %v1764_v17  ;;  %vm1796_vm6 = vweird.f32 %v4116_v32  ;;  %v1638_v17 = vsel %vm728_vm0, %v5063_v55, 0.0 }
 0x515   : > { %4117 = vrsqrt.f32 %v5031_v63  ;;  %v1690_v9 = vmul.f32 %v5034_v33, %v5034_v33  ;;  %vm1797_vm8 = vmor %vm1795_vm7, %vm1796_vm6  ;;  %vm1805_vm10 = vweird.f32 %v5031_v63 }
 0x516   : > { %v1791_v41 = vmul.f32 %v4116_v32, %v1790_v35  ;;  %v1788_v57 = vsel %vm5043_vm5, %v4114_v60, %v1784_v20 }
 0x517   : > { %v1720_v48 = vsel %vm728_vm0, %v1690_v9, 0.0  ;;  %v1939_v47 = vmul.f32 %v1788_v57, %v4941_v16  ;;  %v1577_v16 = vunpack.c.h.bf16 %v666_v36 }
 0x518   : > { %v1792_v7 = vmul.f32 0.5, %v1791_v41  ;;  %v1622_v19 = vpop.xlane.xlu0 %1621  ;;  %1636 = vadd.xlane.f32.xlu1 %v1635_v22  ;;  %1721 = vadd.xlane.f32.xlu2 %v1720_v48  ;;  %v1710_v53 = vpop.xlane.xlu2 %1709 }
 0x519   : > { %v1659_v54 = vmul.f32 %v4938_v50, %v1622_v19  ;;  %v1750_v59 = vmul.f32 %v1710_v53, %v4938_v50  ;;  %v1958_v37 = vmul.f32 %v5057_v10, %v1939_v47  ;;  %v5081_v11 = vadd.f32 %v1577_v16, %v1560_v14 }
 0x51a   : > { %v1793_v61 = vsub.f32 1.5, %v1792_v7 }
 0x51b   : > { %v4118_v62 = vpop.eup %4117  ;;  %v5061_v29 = vsub.f32 %v4976_v1, %v1659_v54  ;;  %v1766_v51 = vadd.f32 1e-05, %v1750_v59  ;;  %v5072_v1 = vld [vmem:[%s6164_s29] ss:$0 sm:$0xff] }
 0x51c   : > { %v1794_v42 = vmul.f32 %v4116_v32, %v1793_v61  ;;  %v1800_v6 = vmul.f32 %v4118_v62, %v5031_v63  ;;  %vm1806_vm9 = vweird.f32 %v4118_v62 }
 0x51d   : > { %4119 = vrsqrt.f32 %v1766_v51  ;;  %v1691_v13 = vmul.f32 %v5061_v29, %v5061_v29  ;;  %vm1807_vm11 = vmor %vm1805_vm10, %vm1806_vm9  ;;  %vm1815_vm13 = vweird.f32 %v1766_v51 }
 0x51e   : > { %v1798_v3 = vsel %vm1797_vm8, %v4116_v32, %v1794_v42  ;;  %v1801_v4 = vmul.f32 %v4118_v62, %v1800_v6 }
 0x51f   : > { %v1940_v60 = vmul.f32 %v1798_v3, %v4949_v8  ;;  %v1723_v5 = vsel %vm728_vm0, %v1691_v13, 0.0  ;;  %v5084_v8 = vadd.f32 %v5072_v1, %v1958_v37 }
 0x520   : > { %v1802_v44 = vmul.f32 0.5, %v1801_v4  ;;  %1639 = vadd.xlane.f32.xlu1 %v1638_v17  ;;  %1724 = vadd.xlane.f32.xlu2 %v1723_v5  ;;  %v1625_v23 = vpop.xlane.xlu2 %1624 }
 0x521   : > { %v1959_v28 = vmul.f32 %v5057_v10, %v1940_v60  ;;  %v1660_v38 = vmul.f32 %v4938_v50, %v1625_v23 }
 0x522   : > { %v1803_v49 = vsub.f32 1.5, %v1802_v44  ;;  %v1713_v24 = vpop.xlane.xlu0 %1712 }
 0x523   : > { %v4120_v46 = vpop.eup %4119  ;;  %v5087_v25 = vadd.f32 %v5072_v1, %v1959_v28  ;;  %v5090_v26 = vsub.f32 %v4985_v34, %v1660_v38  ;;  %v1751_v12 = vmul.f32 %v1713_v24, %v4938_v50  ;;  %v1641_v34 = vsel %vm728_vm0, %v5081_v11, 0.0 }
 0x524   : > { %v1804_v58 = vmul.f32 %v4118_v62, %v1803_v49  ;;  %v1810_v30 = vmul.f32 %v4120_v46, %v1766_v51  ;;  %vm1816_vm12 = vweird.f32 %v4120_v46 }
 0x525   : > { %v1767_v32 = vadd.f32 1e-05, %v1751_v12  ;;  %v1993_v20 = vpack.c.bf16 %v5087_v25, %v5084_v8  ;;  %v1692_v35 = vmul.f32 %v5090_v26, %v5090_v26  ;;  %vm1817_vm14 = vmor %vm1815_vm13, %vm1816_vm12 }
 0x526   : > { %v1811_v36 = vmul.f32 %v4120_v46, %v1810_v30  ;;  %v1808_v41 = vsel %vm1807_vm11, %v4118_v62, %v1804_v58 }
 0x527   : > { %4121 = vrsqrt.f32 %v1767_v32  ;;  %3690 = vmatmul.msk.bf16.vlgmr.msra.gmra.mxu3 %vm728_vm0, %v1993_v20  ;;  %v1726_v9 = vsel %vm728_vm0, %v1692_v35, 0.0  ;;  %v1941_v57 = vmul.f32 %v1808_v41, %v4961_v21  ;;  %vm1825_vm1 = vweird.f32 %v1767_v32 }
 0x528   : > { %v1812_v40 = vmul.f32 0.5, %v1811_v36  ;;  %1642 = vadd.xlane.f32.xlu2 %v1641_v34  ;;  %1727 = vadd.xlane.f32.xlu0 %v1726_v9  ;;  %v1628_v56 = vpop.xlane.xlu2 %1627 }
 0x529   : > { %v1661_v22 = vmul.f32 %v4938_v50, %v1628_v56  ;;  %v1960_v6 = vmul.f32 %v5057_v10, %v1941_v57  ;;  %v3759_v56 = vld [vmem:[%s6165_s17 + $0x18] sm:$0xff]  ;;  %v3758_v57 = vld [vmem:[%s6165_s17 + $0x10] sm:$0xff] }
 0x52a   : > { %v1813_v48 = vsub.f32 1.5, %v1812_v40  ;;  %v1631_v63 = vpop.xlane.xlu0 %1630  ;;  %v1716_v18 = vpop.xlane.xlu1 %1715  ;;  %2183 = vmatpush.bf16.msra.mxu1 %v3759_v56 }
 0x52b   : > { %v5105_v7 = vsub.f32 %v4999_v43, %v1661_v22  ;;  %v1662_v19 = vmul.f32 %v4938_v50, %v1631_v63  ;;  %v1752_v53 = vmul.f32 %v1716_v18, %v4938_v50  ;;  %v5122_v4 = vadd.f32 %v5072_v1, %v1960_v6 }
 0x52c   : > { %v1814_v54 = vmul.f32 %v4120_v46, %v1813_v48 }
 0x52d   : > { %v4122_v59 = vpop.eup %4121  ;;  %v5110_v61 = vsub.f32 %v5004_v2, %v1662_v19  ;;  %v1768_v62 = vadd.f32 1e-05, %v1752_v53  ;;  %v1693_v39 = vmul.f32 %v5105_v7, %v5105_v7 }
 0x52e   : > { %v1818_v47 = vsel %vm1817_vm14, %v4120_v46, %v1814_v54  ;;  %v1820_v21 = vmul.f32 %v4122_v59, %v1767_v32  ;;  %vm1826_vm15 = vweird.f32 %v4122_v59  ;;  %2184 = vmatpush.bf16.msra.mxu1 %v3758_v57 }
 0x52f   : > { %v1942_v43 = vmul.f32 %v1818_v47, %v4974_v0  ;;  %4123 = vrsqrt.f32 %v1768_v62  ;;  %v1729_v42 = vsel %vm728_vm0, %v1693_v39, 0.0  ;;  %v1694_v51 = vmul.f32 %v5110_v61, %v5110_v61  ;;  %vm1827_vm2 = vmor %vm1825_vm1, %vm1826_vm15  ;;  %v3757_v47 = vld [vmem:[%s6165_s17 + $0x8] sm:$0xff] }
 0x530   : > { %v1821_v13 = vmul.f32 %v4122_v59, %v1820_v21  ;;  %1730 = vadd.xlane.f32.xlu0 %v1729_v42  ;;  %vm1835_vm4 = vweird.f32 %v1768_v62 }
 0x531   : > { %v1961_v2 = vmul.f32 %v5057_v10, %v1942_v43  ;;  %v1732_v3 = vsel %vm728_vm0, %v1694_v51, 0.0 }
 0x532   : > { %v1822_v14 = vmul.f32 0.5, %v1821_v13  ;;  %1733 = vadd.xlane.f32.xlu1 %v1732_v3  ;;  %2185 = vmatpush.bf16.msra.mxu1 %v3757_v47 }
 0x533   : > { %v5125_v0 = vadd.f32 %v5072_v1, %v1961_v2  ;;  %v3756_v2 = vld [vmem:[%s6165_s17] sm:$0xff] }
 0x534   : > { %v1823_v16 = vsub.f32 1.5, %v1822_v14 }
 0x535   : > { %v4124_v37 = vpop.eup %4123  ;;  %v1994_v60 = vpack.c.bf16 %v5125_v0, %v5122_v4 }
 0x536   : > { %v1824_v17 = vmul.f32 %v4122_v59, %v1823_v16  ;;  %v1830_v5 = vmul.f32 %v4124_v37, %v1768_v62  ;;  %vm1836_vm3 = vweird.f32 %v4124_v37  ;;  %2186 = vmatpush.bf16.msra.mxu1 %v3756_v2 }
 0x537   : > { %3691 = vmatmul.msk.bf16.gmra.mxu3 %vm728_vm0, %v1994_v60  ;;  %vm1837_vm5 = vmor %vm1835_vm4, %vm1836_vm3  ;;  %vm2154_vm3 = vcmask 523264  }
 0x538   : > { %v1831_v44 = vmul.f32 %v4124_v37, %v1830_v5  ;;  %v1828_v23 = vsel %vm1827_vm2, %v4122_v59, %v1824_v17 }
 0x539   : > { %v1943_v49 = vmul.f32 %v1828_v23, %v4989_v52 }
 0x53a   : > { %v1832_v28 = vmul.f32 0.5, %v1831_v44 }
 0x53b   : > { %v1962_v20 = vmul.f32 %v5057_v10, %v1943_v49 }
 0x53c   : > { %v1833_v38 = vsub.f32 1.5, %v1832_v28 }
 0x53d   : > { %v5141_v52 = vadd.f32 %v5072_v1, %v1962_v20 }
 0x53e   : > { %v1834_v24 = vmul.f32 %v4124_v37, %v1833_v38 }
 0x540   : > { %v1838_v46 = vsel %vm1837_vm5, %v4124_v37, %v1834_v24  ;;  %v1634_v12 = vpop.xlane.xlu0 %1633 }
 0x541   : > { %v1944_v58 = vmul.f32 %v1838_v46, %v5002_v45  ;;  %v1663_v30 = vmul.f32 %v4938_v50, %v1634_v12 }
 0x543   : > { %v5135_v32 = vsub.f32 %v5015_v31, %v1663_v30  ;;  %v1963_v35 = vmul.f32 %v5057_v10, %v1944_v58 }
 0x545   : > { %v1695_v36 = vmul.f32 %v5135_v32, %v5135_v32  ;;  %v5144_v34 = vadd.f32 %v5072_v1, %v1963_v35 }
 0x547   : > { %v1735_v45 = vsel %vm728_vm0, %v1695_v36, 0.0  ;;  %v1995_v9 = vpack.c.bf16 %v5144_v34, %v5141_v52 }
 0x548   : > { %1736 = vadd.xlane.f32.xlu2 %v1735_v45 }
 0x549   : > { %3692 = vmatmul.msk.bf16.gmra.mxu3 %vm728_vm0, %v1995_v9 }
 0x583   : > { %v1719_v31 = vpop.xlane.xlu1 %1718 }
 0x584   : > { %v1753_v41 = vmul.f32 %v1719_v31, %v4938_v50 }
 0x586   : > { %v1769_v40 = vadd.f32 1e-05, %v1753_v41 }
 0x588   : > { %4125 = vrsqrt.f32 %v1769_v40  ;;  %vm1845_vm7 = vweird.f32 %v1769_v40 }
 0x58b   : > { %v1637_v22 = vpop.xlane.xlu1 %1636  ;;  %v1722_v48 = vpop.xlane.xlu2 %1721 }
 0x58c   : > { %v1664_v63 = vmul.f32 %v4938_v50, %v1637_v22  ;;  %v1754_v18 = vmul.f32 %v1722_v48, %v4938_v50 }
 0x58e   : > { %v4126_v19 = vpop.eup %4125  ;;  %v5160_v53 = vsub.f32 %v5036_v27, %v1664_v63  ;;  %v1770_v54 = vadd.f32 1e-05, %v1754_v18 }
 0x58f   : > { %v1840_v59 = vmul.f32 %v4126_v19, %v1769_v40  ;;  %vm1846_vm6 = vweird.f32 %v4126_v19 }
 0x590   : > { %4127 = vrsqrt.f32 %v1770_v54  ;;  %v1696_v62 = vmul.f32 %v5160_v53, %v5160_v53  ;;  %vm1847_vm8 = vmor %vm1845_vm7, %vm1846_vm6  ;;  %vm1855_vm10 = vweird.f32 %v1770_v54 }
 0x591   : > { %v1841_v39 = vmul.f32 %v4126_v19, %v1840_v59 }
 0x592   : > { %v1738_v21 = vsel %vm728_vm0, %v1696_v62, 0.0 }
 0x593   : > { %v1842_v43 = vmul.f32 0.5, %v1841_v39  ;;  %v1640_v42 = vpop.xlane.xlu1 %1639  ;;  %1739 = vadd.xlane.f32.xlu0 %v1738_v21  ;;  %v1725_v6 = vpop.xlane.xlu2 %1724 }
 0x594   : > { %v1665_v27 = vmul.f32 %v4938_v50, %v1640_v42  ;;  %v1755_v13 = vmul.f32 %v1725_v6, %v4938_v50 }
 0x595   : > { %v1843_v51 = vsub.f32 1.5, %v1842_v43 }
 0x596   : > { %v4128_v14 = vpop.eup %4127  ;;  %v5174_v3 = vsub.f32 %v5063_v55, %v1665_v27  ;;  %v1771_v16 = vadd.f32 1e-05, %v1755_v13 }
 0x597   : > { %v1844_v37 = vmul.f32 %v4126_v19, %v1843_v51  ;;  %v1850_v60 = vmul.f32 %v4128_v14, %v1770_v54  ;;  %vm1856_vm9 = vweird.f32 %v4128_v14  ;;  %v5205_v51 = vld [vmem:[%s6166_s20] ss:$0 sm:$0xff] }
 0x598   : > { %4129 = vrsqrt.f32 %v1771_v16  ;;  %v1697_v17 = vmul.f32 %v5174_v3, %v5174_v3  ;;  %vm1857_vm11 = vmor %vm1855_vm10, %vm1856_vm9  ;;  %vm1865_vm13 = vweird.f32 %v1771_v16 }
 0x599   : > { %v1851_v5 = vmul.f32 %v4128_v14, %v1850_v60  ;;  %v1848_v23 = vsel %vm1847_vm8, %v4126_v19, %v1844_v37 }
 0x59a   : > { %v1741_v44 = vsel %vm728_vm0, %v1697_v17, 0.0  ;;  %v1945_v58 = vmul.f32 %v1848_v23, %v5023_v15 }
 0x59b   : > { %v1852_v28 = vmul.f32 0.5, %v1851_v5  ;;  %1742 = vadd.xlane.f32.xlu1 %v1741_v44  ;;  %v1728_v38 = vpop.xlane.xlu0 %1727  ;;  %v1643_v55 = vpop.xlane.xlu2 %1642 }
 0x59c   : > { %v1756_v49 = vmul.f32 %v1728_v38, %v4938_v50  ;;  %v1666_v24 = vmul.f32 %v4938_v50, %v1643_v55  ;;  %v1964_v15 = vmul.f32 %v5057_v10, %v1945_v58 }
 0x59d   : > { %v1853_v46 = vsub.f32 1.5, %v1852_v28 }
 0x59e   : > { %v4130_v12 = vpop.eup %4129  ;;  %v1772_v30 = vadd.f32 1e-05, %v1756_v49  ;;  %v5183_v20 = vsub.f32 %v5081_v11, %v1666_v24  ;;  %v5193_v54 = vadd.f32 %v5072_v1, %v1964_v15 }
 0x59f   : > { %v1854_v35 = vmul.f32 %v4128_v14, %v1853_v46  ;;  %v1860_v36 = vmul.f32 %v4130_v12, %v1771_v16  ;;  %vm1866_vm12 = vweird.f32 %v4130_v12 }
 0x5a0   : > { %4131 = vrsqrt.f32 %v1772_v30  ;;  %v1698_v45 = vmul.f32 %v5183_v20, %v5183_v20  ;;  %vm1867_vm14 = vmor %vm1865_vm13, %vm1866_vm12  ;;  %vm1875_vm1 = vweird.f32 %v1772_v30 }
 0x5a1   : > { %v1858_v9 = vsel %vm1857_vm11, %v4128_v14, %v1854_v35  ;;  %v1861_v31 = vmul.f32 %v4130_v12, %v1860_v36 }
 0x5a2   : > { %v1946_v41 = vmul.f32 %v1858_v9, %v5034_v33  ;;  %v1744_v40 = vsel %vm728_vm0, %v1698_v45, 0.0 }
 0x5a3   : > { %v1862_v56 = vmul.f32 0.5, %v1861_v31  ;;  %v1731_v22 = vpop.xlane.xlu0 %1730  ;;  %1745 = vadd.xlane.f32.xlu2 %v1744_v40 }
 0x5a4   : > { %v1757_v11 = vmul.f32 %v1731_v22, %v4938_v50  ;;  %v1965_v48 = vmul.f32 %v5057_v10, %v1946_v41 }
 0x5a5   : > { %v1863_v63 = vsub.f32 1.5, %v1862_v56  ;;  %v1734_v19 = vpop.xlane.xlu1 %1733 }
 0x5a6   : > { %v4132_v18 = vpop.eup %4131  ;;  %v1773_v57 = vadd.f32 1e-05, %v1757_v11  ;;  %v5196_v33 = vadd.f32 %v5072_v1, %v1965_v48  ;;  %v1758_v39 = vmul.f32 %v1734_v19, %v4938_v50 }
 0x5a7   : > { %v1864_v59 = vmul.f32 %v4130_v12, %v1863_v63  ;;  %v1870_v62 = vmul.f32 %v4132_v18, %v1772_v30  ;;  %vm1876_vm15 = vweird.f32 %v4132_v18 }
 0x5a8   : > { %4133 = vrsqrt.f32 %v1773_v57  ;;  %v1996_v47 = vpack.c.bf16 %v5196_v33, %v5193_v54  ;;  %v1774_v43 = vadd.f32 1e-05, %v1758_v39  ;;  %vm1877_vm2 = vmor %vm1875_vm1, %vm1876_vm15  ;;  %vm1885_vm6 = vweird.f32 %v1773_v57 }
 0x5a9   : > { %v1871_v21 = vmul.f32 %v4132_v18, %v1870_v62  ;;  %v1868_v6 = vsel %vm1867_vm14, %v4130_v12, %v1864_v59 }
 0x5aa   : > { %v2054_v42 = vpop.f32.mrf.mxu3  ;;  %3693 = vmatmul.msk.bf16.gmra.mxu3 %vm728_vm0, %v1996_v47  ;;  %4135 = vrsqrt.f32 %v1774_v43  ;;  %v1947_v14 = vmul.f32 %v1868_v6, %v5061_v29  ;;  %vm1895_vm8 = vweird.f32 %v1774_v43 }
 0x5ab   : > { %v1872_v27 = vmul.f32 0.5, %v1871_v21  ;;  %v2055_v44 = vadd.f32 %v5205_v51, %v2054_v42 }
 0x5ac   : > { %v1966_v55 = vmul.f32 %v5057_v10, %v1947_v14 }
 0x5ad   : > { %v1873_v13 = vsub.f32 1.5, %v1872_v27  ;;  %v2094_v58 = vmax.f32 %v2055_v44, 0.0 }
 0x5ae   : > { %v4134_v2 = vpop.eup %4133  ;;  %v5214_v36 = vadd.f32 %v5072_v1, %v1966_v55 }
 0x5af   : > { %v1874_v16 = vmul.f32 %v4132_v18, %v1873_v13  ;;  %v1880_v37 = vmul.f32 %v4134_v2, %v1773_v57  ;;  %vm1886_vm4 = vweird.f32 %v4134_v2 }
 0x5b0   : > { %v4136_v60 = vpop.eup %4135  ;;  %vm1887_vm7 = vmor %vm1885_vm6, %vm1886_vm4 }
 0x5b1   : > { %v1878_v17 = vsel %vm1877_vm2, %v4132_v18, %v1874_v16  ;;  %v1881_v5 = vmul.f32 %v4134_v2, %v1880_v37  ;;  %v1890_v28 = vmul.f32 %v4136_v60, %v1774_v43  ;;  %vm1896_vm5 = vweird.f32 %v4136_v60 }
 0x5b2   : > { %v1948_v23 = vmul.f32 %v1878_v17, %v5090_v26  ;;  %v2056_v38 = vpop.f32.mrf.mxu3  ;;  %vm1897_vm9 = vmor %vm1895_vm8, %vm1896_vm5 }
 0x5b3   : > { %v1882_v49 = vmul.f32 0.5, %v1881_v5  ;;  %v2057_v24 = vadd.f32 %v5205_v51, %v2056_v38  ;;  %v1891_v46 = vmul.f32 %v4136_v60, %v1890_v28 }
 0x5b4   : > { %v1967_v29 = vmul.f32 %v5057_v10, %v1948_v23 }
 0x5b5   : > { %v1883_v12 = vsub.f32 1.5, %v1882_v49  ;;  %v2095_v30 = vmax.f32 %v2057_v24, 0.0  ;;  %v1892_v35 = vmul.f32 0.5, %v1891_v46 }
 0x5b6   : > { %v5217_v26 = vadd.f32 %v5072_v1, %v1967_v29 }
 0x5b7   : > { %v1884_v45 = vmul.f32 %v4134_v2, %v1883_v12  ;;  %v2110_v9 = vpack.c.bf16 %v2095_v30, %v2094_v58  ;;  %v1893_v31 = vsub.f32 1.5, %v1892_v35 }
 0x5b8   : > { %v1997_v41 = vpack.c.bf16 %v5217_v26, %v5214_v36 }
 0x5b9   : > { %3714 = vmatmul.msk.bf16.vlgmr.msra.gmra.mxu1 %vm2154_vm3, %v2110_v9  ;;  %v1894_v40 = vmul.f32 %v4136_v60, %v1893_v31  ;;  %v1888_v56 = vsel %vm1887_vm7, %v4134_v2, %v1884_v45 }
 0x5ba   : > { %v2059_v15 = vpop.f32.mrf.mxu3  ;;  %3694 = vmatmul.msk.bf16.gmra.mxu3 %vm728_vm0, %v1997_v41  ;;  %v1949_v48 = vmul.f32 %v1888_v56, %v5105_v7 }
 0x5bb   : > { %v1898_v22 = vsel %vm1897_vm9, %v4136_v60, %v1894_v40  ;;  %v2060_v18 = vadd.f32 %v5205_v51, %v2059_v15  ;;  %v1737_v16 = vpop.xlane.xlu2 %1736 }
 0x5bc   : > { %v1950_v11 = vmul.f32 %v1898_v22, %v5110_v61  ;;  %v1968_v19 = vmul.f32 %v5057_v10, %v1949_v48  ;;  %v1759_v37 = vmul.f32 %v1737_v16, %v4938_v50 }
 0x5bd   : > { %v2096_v39 = vmax.f32 %v2060_v18, 0.0 }
 0x5be   : > { %v1969_v63 = vmul.f32 %v5057_v10, %v1950_v11  ;;  %v5233_v21 = vadd.f32 %v5072_v1, %v1968_v19  ;;  %v1775_v60 = vadd.f32 1e-05, %v1759_v37 }
 0x5c0   : > { %v5230_v62 = vadd.f32 %v5072_v1, %v1969_v63  ;;  %4137 = vrsqrt.f32 %v1775_v60  ;;  %vm1905_vm11 = vweird.f32 %v1775_v60 }
 0x5c2   : > { %v2061_v57 = vpop.f32.mrf.mxu3  ;;  %v1998_v7 = vpack.c.bf16 %v5230_v62, %v5233_v21 }
 0x5c3   : > { %v2062_v59 = vadd.f32 %v5205_v51, %v2061_v57 }
 0x5c5   : > { %v2097_v47 = vmax.f32 %v2062_v59, 0.0 }
 0x5c6   : > { %v4138_v17 = vpop.eup %4137 }
 0x5c7   : > { %v2111_v61 = vpack.c.bf16 %v2097_v47, %v2096_v39  ;;  %v1900_v5 = vmul.f32 %v4138_v17, %v1775_v60  ;;  %vm1906_vm10 = vweird.f32 %v4138_v17 }
 0x5c8   : > { %vm1907_vm12 = vmor %vm1905_vm11, %vm1906_vm10 }
 0x5c9   : > { %3715 = vmatmul.msk.bf16.gmra.mxu1 %vm2154_vm3, %v2111_v61  ;;  %v1901_v44 = vmul.f32 %v4138_v17, %v1900_v5 }
 0x5ca   : > { %3695 = vmatmul.msk.bf16.gmra.mxu3 %vm728_vm0, %v1998_v7 }
 0x5cb   : > { %v1902_v55 = vmul.f32 0.5, %v1901_v44 }
 0x5cc   : > { %v2064_v43 = vpop.f32.mrf.mxu3 }
 0x5cd   : > { %v2065_v42 = vadd.f32 %v5205_v51, %v2064_v43  ;;  %v1903_v49 = vsub.f32 1.5, %v1902_v55 }
 0x5cf   : > { %v2098_v13 = vmax.f32 %v2065_v42, 0.0  ;;  %v1904_v58 = vmul.f32 %v4138_v17, %v1903_v49 }
 0x5d1   : > { %v1908_v45 = vsel %vm1907_vm12, %v4138_v17, %v1904_v58 }
 0x5d2   : > { %v1951_v56 = vmul.f32 %v1908_v45, %v5135_v32 }
 0x5d4   : > { %v2066_v6 = vpop.f32.mrf.mxu3  ;;  %v1970_v19 = vmul.f32 %v5057_v10, %v1951_v56 }
 0x5d5   : > { %v2067_v27 = vadd.f32 %v5205_v51, %v2066_v6 }
 0x5d6   : > { %v5251_v7 = vadd.f32 %v5072_v1, %v1970_v19 }
 0x5d7   : > { %v2099_v2 = vmax.f32 %v2067_v27, 0.0 }
 0x5d9   : > { %v2112_v14 = vpack.c.bf16 %v2099_v2, %v2098_v13 }
 0x5db   : > { %3716 = vmatmul.msk.bf16.gmra.mxu1 %vm2154_vm3, %v2112_v14 }
 0x606   : > { %v1740_v23 = vpop.xlane.xlu0 %1739 }
 0x607   : > { %v1760_v28 = vmul.f32 %v1740_v23, %v4938_v50 }
 0x609   : > { %v1776_v38 = vadd.f32 1e-05, %v1760_v28 }
 0x60b   : > { %4139 = vrsqrt.f32 %v1776_v38  ;;  %vm1915_vm14 = vweird.f32 %v1776_v38 }
 0x60e   : > { %v1743_v24 = vpop.xlane.xlu1 %1742 }
 0x60f   : > { %v1761_v46 = vmul.f32 %v1743_v24, %v4938_v50 }
 0x611   : > { %v4140_v29 = vpop.eup %4139  ;;  %v1777_v12 = vadd.f32 1e-05, %v1761_v46 }
 0x612   : > { %v1910_v30 = vmul.f32 %v4140_v29, %v1776_v38  ;;  %vm1916_vm13 = vweird.f32 %v4140_v29  ;;  %v5274_v38 = vld [vmem:[%s6167_s30] ss:$0 sm:$0xff] }
 0x613   : > { %4141 = vrsqrt.f32 %v1777_v12  ;;  %vm1917_vm15 = vmor %vm1915_vm14, %vm1916_vm13  ;;  %vm1925_vm2 = vweird.f32 %v1777_v12 }
 0x614   : > { %v1911_v35 = vmul.f32 %v4140_v29, %v1910_v30 }
 0x616   : > { %v1912_v9 = vmul.f32 0.5, %v1911_v35  ;;  %v1746_v31 = vpop.xlane.xlu2 %1745 }
 0x617   : > { %v1762_v41 = vmul.f32 %v1746_v31, %v4938_v50 }
 0x618   : > { %v1913_v40 = vsub.f32 1.5, %v1912_v9 }
 0x619   : > { %v4142_v15 = vpop.eup %4141  ;;  %v1778_v22 = vadd.f32 1e-05, %v1762_v41 }
 0x61a   : > { %v1914_v11 = vmul.f32 %v4140_v29, %v1913_v40  ;;  %v1920_v48 = vmul.f32 %v4142_v15, %v1777_v12  ;;  %vm1926_vm1 = vweird.f32 %v4142_v15 }
 0x61b   : > { %4143 = vrsqrt.f32 %v1778_v22  ;;  %vm1927_vm4 = vmor %vm1925_vm2, %vm1926_vm1  ;;  %vm1935_vm6 = vweird.f32 %v1778_v22 }
 0x61c   : > { %v1918_v63 = vsel %vm1917_vm15, %v4140_v29, %v1914_v11  ;;  %v1921_v18 = vmul.f32 %v4142_v15, %v1920_v48 }
 0x61d   : > { %v1952_v57 = vmul.f32 %v1918_v63, %v5160_v53 }
 0x61e   : > { %v1922_v59 = vmul.f32 0.5, %v1921_v18 }
 0x61f   : > { %v1971_v39 = vmul.f32 %v5057_v10, %v1952_v57 }
 0x620   : > { %v1923_v47 = vsub.f32 1.5, %v1922_v59 }
 0x621   : > { %v4144_v61 = vpop.eup %4143  ;;  %v5254_v32 = vadd.f32 %v5072_v1, %v1971_v39 }
 0x622   : > { %v1924_v43 = vmul.f32 %v4142_v15, %v1923_v47  ;;  %v1930_v42 = vmul.f32 %v4144_v61, %v1778_v22  ;;  %vm1936_vm5 = vweird.f32 %v4144_v61 }
 0x623   : > { %v1999_v6 = vpack.c.bf16 %v5254_v32, %v5251_v7  ;;  %vm1937_vm7 = vmor %vm1935_vm6, %vm1936_vm5 }
 0x624   : > { %v1931_v53 = vmul.f32 %v4144_v61, %v1930_v42  ;;  %v1928_v27 = vsel %vm1927_vm4, %v4142_v15, %v1924_v43 }
 0x625   : > { %3696 = vmatmul.msk.bf16.gmra.mxu3 %vm728_vm0, %v1999_v6  ;;  %v1953_v14 = vmul.f32 %v1928_v27, %v5174_v3 }
 0x626   : > { %v1932_v13 = vmul.f32 0.5, %v1931_v53 }
 0x627   : > { %v1972_v5 = vmul.f32 %v5057_v10, %v1953_v14 }
 0x628   : > { %v1933_v2 = vsub.f32 1.5, %v1932_v13 }
 0x629   : > { %v5264_v23 = vadd.f32 %v5072_v1, %v1972_v5 }
 0x62a   : > { %v1934_v16 = vmul.f32 %v4144_v61, %v1933_v2 }
 0x62c   : > { %v1938_v37 = vsel %vm1937_vm7, %v4144_v61, %v1934_v16 }
 0x62d   : > { %v1954_v60 = vmul.f32 %v1938_v37, %v5183_v20  ;;  %v2069_v17 = vpop.f32.mrf.mxu3 }
 0x62e   : > { %v2070_v20 = vadd.f32 %v5205_v51, %v2069_v17 }
 0x62f   : > { %v1973_v44 = vmul.f32 %v5057_v10, %v1954_v60 }
 0x631   : > { %v5267_v28 = vadd.f32 %v5072_v1, %v1973_v44  ;;  %v2100_v1 = vmax.f32 %v2070_v20, 0.0 }
 0x633   : > { %v2000_v3 = vpack.c.bf16 %v5267_v28, %v5264_v23 }
 0x635   : > { %v2071_v55 = vpop.f32.mrf.mxu3  ;;  %3697 = vmatmul.msk.bf16.gmra.mxu3 %vm728_vm0, %v2000_v3 }
 0x636   : > { %v2072_v10 = vadd.f32 %v5205_v51, %v2071_v55  ;;  %v2188_v49 = vpop.f32.mrf.mxu1 }
 0x637   : > { %v2189_v24 = vadd.f32 %v5274_v38, %v2188_v49 }
 0x638   : > { %v2101_v46 = vmax.f32 %v2072_v10, 0.0 }
 0x639   : > { %v2228_v29 = vadd.f32 %v2189_v24, %v5084_v8 }
 0x63a   : > { %v2113_v12 = vpack.c.bf16 %v2101_v46, %v2100_v1 }
 0x63b   : > { %v2246_v58 = vsel %vm728_vm0, %v2228_v29, 0.0 }
 0x63c   : > { %2247 = vadd.xlane.f32.xlu0 %v2246_v58  ;;  %3717 = vmatmul.msk.bf16.gmra.mxu1 %vm2154_vm3, %v2113_v12 }
 0x63d   : > { %v2074_v30 = vpop.f32.mrf.mxu3 }
 0x63e   : > { %v2190_v35 = vpop.f32.mrf.mxu1  ;;  %v2075_v41 = vadd.f32 %v5205_v51, %v2074_v30 }
 0x63f   : > { %v2191_v45 = vadd.f32 %v5274_v38, %v2190_v35 }
 0x640   : > { %v2102_v22 = vmax.f32 %v2075_v41, 0.0 }
 0x641   : > { %v2229_v9 = vadd.f32 %v2191_v45, %v5087_v25 }
 0x643   : > { %v2249_v31 = vsel %vm728_vm0, %v2229_v9, 0.0 }
 0x644   : > { %2250 = vadd.xlane.f32.xlu1 %v2249_v31 }
 0x645   : > { %v2076_v40 = vpop.f32.mrf.mxu3 }
 0x646   : > { %v2077_v8 = vadd.f32 %v5205_v51, %v2076_v40  ;;  %v2193_v15 = vpop.f32.mrf.mxu1 }
 0x647   : > { %v2194_v56 = vadd.f32 %v5274_v38, %v2193_v15 }
 0x648   : > { %v2103_v11 = vmax.f32 %v2077_v8, 0.0 }
 0x649   : > { %v2230_v48 = vadd.f32 %v2194_v56, %v5122_v4 }
 0x64a   : > { %v2114_v63 = vpack.c.bf16 %v2103_v11, %v2102_v22 }
 0x64b   : > { %v2252_v18 = vsel %vm728_vm0, %v2230_v48, 0.0 }
 0x64c   : > { %3718 = vmatmul.msk.bf16.gmra.mxu1 %vm2154_vm3, %v2114_v63  ;;  %2253 = vadd.xlane.f32.xlu2 %v2252_v18 }
 0x64d   : > { %v2079_v25 = vpop.f32.mrf.mxu3 }
 0x64e   : > { %v2195_v57 = vpop.f32.mrf.mxu1  ;;  %v2080_v47 = vadd.f32 %v5205_v51, %v2079_v25 }
 0x64f   : > { %v2196_v19 = vadd.f32 %v5274_v38, %v2195_v57 }
 0x650   : > { %v2104_v43 = vmax.f32 %v2080_v47, 0.0 }
 0x651   : > { %v5294_v59 = vadd.f32 %v2196_v19, %v5125_v0 }
 0x653   : > { %v2255_v39 = vsel %vm728_vm0, %v5294_v59, 0.0 }
 0x654   : > { %2256 = vadd.xlane.f32.xlu0 %v2255_v39 }
 0x655   : > { %v2081_v4 = vpop.f32.mrf.mxu3 }
 0x656   : > { %v2082_v61 = vadd.f32 %v5205_v51, %v2081_v4 }
 0x658   : > { %v2105_v42 = vmax.f32 %v2082_v61, 0.0  ;;  %v2198_v6 = vpop.f32.mrf.mxu1 }
 0x659   : > { %v2199_v53 = vadd.f32 %v5274_v38, %v2198_v6 }
 0x65a   : > { %v2115_v27 = vpack.c.bf16 %v2105_v42, %v2104_v43 }
 0x65b   : > { %v5302_v13 = vadd.f32 %v2199_v53, %v5141_v52 }
 0x65c   : > { %3719 = vmatmul.msk.bf16.gmra.mxu1 %vm2154_vm3, %v2115_v27 }
 0x65d   : > { %v2258_v0 = vsel %vm728_vm0, %v5302_v13, 0.0 }
 0x65e   : > { %2259 = vadd.xlane.f32.xlu1 %v2258_v0 }
 0x660   : > { %v2200_v2 = vpop.f32.mrf.mxu1 }
 0x661   : > { %v2201_v14 = vadd.f32 %v5274_v38, %v2200_v2 }
 0x663   : > { %v5309_v16 = vadd.f32 %v2201_v14, %v5144_v34 }
 0x665   : > { %v2261_v37 = vsel %vm728_vm0, %v5309_v16, 0.0 }
 0x666   : > { %2262 = vadd.xlane.f32.xlu2 %v2261_v37 }
 0x6a8   : > { %v2084_v60 = vpop.f32.mrf.mxu3 }
 0x6a9   : > { %v2085_v52 = vadd.f32 %v5205_v51, %v2084_v60 }
 0x6ab   : > { %v2106_v55 = vmax.f32 %v2085_v52, 0.0 }
 0x6af   : > { %v2248_v17 = vpop.xlane.xlu0 %2247 }
 0x6b0   : > { %v2294_v5 = vmul.f32 %v2248_v17, %v4938_v50  ;;  %v2086_v44 = vpop.f32.mrf.mxu3 }
 0x6b1   : > { %v2087_v3 = vadd.f32 %v5205_v51, %v2086_v44 }
 0x6b2   : > { %v5316_v20 = vsub.f32 %v2228_v29, %v2294_v5 }
 0x6b3   : > { %v2107_v10 = vmax.f32 %v2087_v3, 0.0 }
 0x6b4   : > { %v2326_v34 = vmul.f32 %v5316_v20, %v5316_v20 }
 0x6b5   : > { %v2116_v49 = vpack.c.bf16 %v2107_v10, %v2106_v55 }
 0x6b6   : > { %v2342_v24 = vsel %vm728_vm0, %v2326_v34, 0.0 }
 0x6b7   : > { %v2251_v1 = vpop.xlane.xlu1 %2250  ;;  %2343 = vadd.xlane.f32.xlu0 %v2342_v24  ;;  %3720 = vmatmul.msk.bf16.gmra.mxu1 %vm2154_vm3, %v2116_v49 }
 0x6b8   : > { %v2295_v46 = vmul.f32 %v2251_v1, %v4938_v50  ;;  %v2089_v12 = vpop.f32.mrf.mxu3 }
 0x6b9   : > { %v2203_v58 = vpop.f32.mrf.mxu1  ;;  %v2090_v40 = vadd.f32 %v5205_v51, %v2089_v12 }
 0x6ba   : > { %v5323_v30 = vsub.f32 %v2229_v9, %v2295_v46  ;;  %v2204_v29 = vadd.f32 %v5274_v38, %v2203_v58 }
 0x6bb   : > { %v2108_v63 = vmax.f32 %v2090_v40, 0.0 }
 0x6bc   : > { %v2327_v35 = vmul.f32 %v5323_v30, %v5323_v30  ;;  %v5329_v45 = vadd.f32 %v2204_v29, %v5193_v54  ;;  %v3760_v29 = vld [vmem:[#allocation7] sm:$0xff] }
 0x6be   : > { %v2345_v31 = vsel %vm728_vm0, %v2327_v35, 0.0  ;;  %v2264_v41 = vsel %vm728_vm0, %v5329_v45, 0.0 }
 0x6bf   : > { %2346 = vadd.xlane.f32.xlu1 %v2345_v31  ;;  %2265 = vadd.xlane.f32.xlu2 %v2264_v41  ;;  %v2254_v8 = vpop.xlane.xlu2 %2253 }
 0x6c0   : > { %v2296_v9 = vmul.f32 %v2254_v8, %v4938_v50  ;;  %v2091_v15 = vpop.f32.mrf.mxu3 }
 0x6c1   : > { %v2092_v56 = vadd.f32 %v5205_v51, %v2091_v15  ;;  %v2205_v22 = vpop.f32.mrf.mxu1 }
 0x6c2   : > { %v5337_v11 = vsub.f32 %v2230_v48, %v2296_v9  ;;  %v2206_v54 = vadd.f32 %v5274_v38, %v2205_v22 }
 0x6c3   : > { %v2109_v18 = vmax.f32 %v2092_v56, 0.0 }
 0x6c4   : > { %v5341_v25 = vadd.f32 %v2206_v54, %v5196_v33  ;;  %v2328_v57 = vmul.f32 %v5337_v11, %v5337_v11 }
 0x6c5   : > { %v2117_v19 = vpack.c.bf16 %v2109_v18, %v2108_v63 }
 0x6c6   : > { %v2267_v39 = vsel %vm728_vm0, %v5341_v25, 0.0  ;;  %v2348_v47 = vsel %vm728_vm0, %v2328_v57, 0.0 }
 0x6c7   : > { %v2257_v51 = vpop.xlane.xlu0 %2256  ;;  %2268 = vadd.xlane.f32.xlu0 %v2267_v39  ;;  %3721 = vmatmul.msk.bf16.gmra.mxu1 %vm2154_vm3, %v2117_v19 }
 0x6c8   : > { %v2297_v48 = vmul.f32 %v2257_v51, %v4938_v50  ;;  %2349 = vadd.xlane.f32.xlu1 %v2348_v47 }
 0x6c9   : > { %v2208_v4 = vpop.f32.mrf.mxu1 }
 0x6ca   : > { %v5351_v33 = vsub.f32 %v5294_v59, %v2297_v48  ;;  %v2209_v61 = vadd.f32 %v5274_v38, %v2208_v4 }
 0x6cc   : > { %v5355_v43 = vadd.f32 %v2209_v61, %v5214_v36  ;;  %v2329_v42 = vmul.f32 %v5351_v33, %v5351_v33 }
 0x6ce   : > { %v2270_v6 = vsel %vm728_vm0, %v5355_v43, 0.0  ;;  %v2351_v53 = vsel %vm728_vm0, %v2329_v42, 0.0 }
 0x6cf   : > { %2271 = vadd.xlane.f32.xlu0 %v2270_v6  ;;  %2352 = vadd.xlane.f32.xlu2 %v2351_v53 }
 0x6d1   : > { %v2260_v27 = vpop.xlane.xlu1 %2259  ;;  %v2210_v0 = vpop.f32.mrf.mxu1 }
 0x6d2   : > { %v2298_v59 = vmul.f32 %v2260_v27, %v4938_v50  ;;  %v2211_v2 = vadd.f32 %v5274_v38, %v2210_v0 }
 0x6d4   : > { %v5365_v14 = vsub.f32 %v5302_v13, %v2298_v59  ;;  %v5368_v36 = vadd.f32 %v2211_v2, %v5217_v26 }
 0x6d6   : > { %v2273_v37 = vsel %vm728_vm0, %v5368_v36, 0.0  ;;  %v2330_v60 = vmul.f32 %v5365_v14, %v5365_v14 }
 0x6d7   : > { %2274 = vadd.xlane.f32.xlu1 %v2273_v37 }
 0x6d8   : > { %v2354_v52 = vsel %vm728_vm0, %v2330_v60, 0.0 }
 0x6d9   : > { %v2213_v17 = vpop.f32.mrf.mxu1  ;;  %2355 = vadd.xlane.f32.xlu2 %v2354_v52  ;;  %v2263_v5 = vpop.xlane.xlu2 %2262 }
 0x6da   : > { %v2214_v44 = vadd.f32 %v5274_v38, %v2213_v17  ;;  %v2299_v13 = vmul.f32 %v2263_v5, %v4938_v50 }
 0x6dc   : > { %v5378_v3 = vsub.f32 %v5309_v16, %v2299_v13  ;;  %v5381_v26 = vadd.f32 %v2214_v44, %v5233_v21  ;;  %v3761_v16 = vld [vmem:[#allocation7 + $0x8] sm:$0xff] }
 0x6dd   : > { %2694 = vmatpush.bf16.msrb.mxu0 %v3761_v16 }
 0x6de   : > { %v2276_v55 = vsel %vm728_vm0, %v5381_v26, 0.0  ;;  %v2331_v10 = vmul.f32 %v5378_v3, %v5378_v3 }
 0x6df   : > { %2277 = vadd.xlane.f32.xlu1 %v2276_v55 }
 0x6e0   : > { %v2357_v34 = vsel %vm728_vm0, %v2331_v10, 0.0 }
 0x6e1   : > { %v2215_v49 = vpop.f32.mrf.mxu1  ;;  %2358 = vadd.xlane.f32.xlu0 %v2357_v34  ;;  %2695 = vmatpush.bf16.msrb.mxu0 %v3760_v29 }
 0x6e2   : > { %v2216_v24 = vadd.f32 %v5274_v38, %v2215_v49 }
 0x6e4   : > { %v5390_v1 = vadd.f32 %v2216_v24, %v5230_v62 }
 0x6e6   : > { %v2279_v21 = vsel %vm728_vm0, %v5390_v1, 0.0 }
 0x6e7   : > { %2280 = vadd.xlane.f32.xlu2 %v2279_v21 }
 0x72a   : > { %v2344_v46 = vpop.xlane.xlu0 %2343 }
 0x72b   : > { %v2390_v12 = vmul.f32 %v2344_v46, %v4938_v50 }
 0x72d   : > { %v2406_v58 = vadd.f32 1e-05, %v2390_v12 }
 0x72f   : > { %4145 = vrsqrt.f32 %v2406_v58  ;;  %vm2428_vm8 = vweird.f32 %v2406_v58 }
 0x732   : > { %v2347_v35 = vpop.xlane.xlu1 %2346  ;;  %v2266_v31 = vpop.xlane.xlu2 %2265 }
 0x733   : > { %v2391_v41 = vmul.f32 %v2347_v35, %v4938_v50  ;;  %v2300_v62 = vmul.f32 %v2266_v31, %v4938_v50 }
 0x734   : > { %v2218_v40 = vpop.f32.mrf.mxu1 }
 0x735   : > { %v4146_v8 = vpop.eup %4145  ;;  %v2407_v9 = vadd.f32 1e-05, %v2391_v41  ;;  %v5398_v15 = vsub.f32 %v5329_v45, %v2300_v62  ;;  %v2219_v56 = vadd.f32 %v5274_v38, %v2218_v40 }
 0x736   : > { %v2423_v22 = vmul.f32 %v4146_v8, %v2406_v58  ;;  %vm2429_vm3 = vweird.f32 %v4146_v8  ;;  %v5444_v58 = vld [vmem:[%s6170_s19] ss:$0 sm:$0xff] }
 0x737   : > { %4147 = vrsqrt.f32 %v2407_v9  ;;  %v5402_v54 = vadd.f32 %v2219_v56, %v5251_v7  ;;  %v2332_v63 = vmul.f32 %v5398_v15, %v5398_v15  ;;  %vm5426_vm9 = vmor %vm2428_vm8, %vm2429_vm3  ;;  %vm2438_vm11 = vweird.f32 %v2407_v9  ;;  %v5461_v56 = vld [vmem:[%s6171_s1] ss:$0 sm:$0xff] }
 0x738   : > { %v2424_v18 = vmul.f32 %v4146_v8, %v2423_v22 }
 0x739   : > { %v2282_v57 = vsel %vm728_vm0, %v5402_v54, 0.0  ;;  %v2360_v19 = vsel %vm728_vm0, %v2332_v63, 0.0 }
 0x73a   : > { %v2425_v39 = vmul.f32 0.5, %v2424_v18  ;;  %v2269_v47 = vpop.xlane.xlu0 %2268  ;;  %2283 = vadd.xlane.f32.xlu2 %v2282_v57  ;;  %2361 = vadd.xlane.f32.xlu0 %v2360_v19 }
 0x73b   : > { %v2301_v45 = vmul.f32 %v2269_v47, %v4938_v50  ;;  %v2350_v51 = vpop.xlane.xlu1 %2349 }
 0x73c   : > { %v2426_v48 = vsub.f32 1.5, %v2425_v39  ;;  %v2392_v7 = vmul.f32 %v2350_v51, %v4938_v50  ;;  %v2220_v4 = vpop.f32.mrf.mxu1 }
 0x73d   : > { %v4148_v61 = vpop.eup %4147  ;;  %v5412_v42 = vsub.f32 %v5341_v25, %v2301_v45  ;;  %v2221_v6 = vadd.f32 %v5274_v38, %v2220_v4 }
 0x73e   : > { %v2433_v53 = vmul.f32 %v4148_v61, %v2407_v9  ;;  %v5415_v27 = vadd.f32 1e-05, %v2392_v7  ;;  %v2427_v0 = vmul.f32 %v4146_v8, %v2426_v48  ;;  %vm2439_vm10 = vweird.f32 %v4148_v61 }
 0x73f   : > { %v2333_v59 = vmul.f32 %v5412_v42, %v5412_v42  ;;  %v5420_v2 = vadd.f32 %v2221_v6, %v5254_v32  ;;  %vm2440_vm12 = vmor %vm2438_vm11, %vm2439_vm10 }
 0x740   : > { %v2434_v37 = vmul.f32 %v4148_v61, %v2433_v53  ;;  %4149 = vrsqrt.f32 %v5415_v27  ;;  %v2431_v32 = vsel %vm5426_vm9, %v4146_v8, %v2427_v0  ;;  %vm2448_vm14 = vweird.f32 %v5415_v27 }
 0x741   : > { %v2363_v25 = vsel %vm728_vm0, %v2333_v59, 0.0  ;;  %v2285_v60 = vsel %vm728_vm0, %v5420_v2, 0.0  ;;  %v2582_v46 = vmul.f32 %v2431_v32, %v5316_v20 }
 0x742   : > { %v2435_v17 = vmul.f32 0.5, %v2434_v37  ;;  %v2272_v5 = vpop.xlane.xlu0 %2271  ;;  %2364 = vadd.xlane.f32.xlu1 %v2363_v25  ;;  %2286 = vadd.xlane.f32.xlu0 %v2285_v60  ;;  %v2353_v44 = vpop.xlane.xlu2 %2352 }
 0x743   : > { %v2302_v13 = vmul.f32 %v2272_v5, %v4938_v50  ;;  %v2393_v55 = vmul.f32 %v2353_v44, %v4938_v50  ;;  %v2601_v9 = vmul.f32 %v5444_v58, %v2582_v46 }
 0x744   : > { %v2436_v10 = vsub.f32 1.5, %v2435_v17  ;;  %v2223_v34 = vpop.f32.mrf.mxu1 }
 0x745   : > { %v5435_v49 = vsub.f32 %v5355_v43, %v2302_v13  ;;  %v5437_v24 = vadd.f32 1e-05, %v2393_v55  ;;  %v2224_v21 = vadd.f32 %v5274_v38, %v2223_v34  ;;  %v2620_v48 = vadd.f32 %v5461_v56, %v2601_v9 }
 0x746   : > { %v4150_v16 = vpop.eup %4149  ;;  %v2437_v12 = vmul.f32 %v4148_v61, %v2436_v10 }
 0x747   : > { %v2443_v29 = vmul.f32 %v4150_v16, %v5415_v27  ;;  %4151 = vrsqrt.f32 %v5437_v24  ;;  %v2334_v35 = vmul.f32 %v5435_v49, %v5435_v49  ;;  %v5451_v31 = vadd.f32 %v2224_v21, %v5264_v23 }
 0x748   : > { %v2441_v43 = vsel %vm2440_vm12, %v4148_v61, %v2437_v12  ;;  %vm2449_vm13 = vweird.f32 %v4150_v16  ;;  %vm2458_vm2 = vweird.f32 %v5437_v24 }
 0x749   : > { %v2583_v20 = vmul.f32 %v2441_v43, %v5323_v30  ;;  %v2444_v41 = vmul.f32 %v4150_v16, %v2443_v29  ;;  %v2366_v62 = vsel %vm728_vm0, %v2334_v35, 0.0  ;;  %v2288_v8 = vsel %vm728_vm0, %v5451_v31, 0.0  ;;  %vm2450_vm15 = vmor %vm2448_vm14, %vm2449_vm13 }
 0x74a   : > { %v2275_v40 = vpop.xlane.xlu1 %2274  ;;  %2367 = vadd.xlane.f32.xlu1 %v2366_v62  ;;  %2289 = vadd.xlane.f32.xlu0 %v2288_v8 }
 0x74b   : > { %v2445_v22 = vmul.f32 0.5, %v2444_v41  ;;  %v2303_v23 = vmul.f32 %v2275_v40, %v4938_v50  ;;  %v2602_v30 = vmul.f32 %v5444_v58, %v2583_v20 }
 0x74c   : > { %v2225_v63 = vpop.f32.mrf.mxu1  ;;  %v2356_v18 = vpop.xlane.xlu2 %2355 }
 0x74d   : > { %v4152_v57 = vpop.eup %4151  ;;  %v2446_v19 = vsub.f32 1.5, %v2445_v22  ;;  %v5466_v39 = vsub.f32 %v5368_v36, %v2303_v23  ;;  %v2226_v47 = vadd.f32 %v5274_v38, %v2225_v63  ;;  %v2394_v45 = vmul.f32 %v2356_v18, %v4938_v50 }
 0x74e   : > { %v2453_v51 = vmul.f32 %v4152_v57, %v5437_v24  ;;  %v2621_v7 = vadd.f32 %v5461_v56, %v2602_v30  ;;  %vm2459_vm1 = vweird.f32 %v4152_v57 }
 0x74f   : > { %v2447_v4 = vmul.f32 %v4150_v16, %v2446_v19  ;;  %v2410_v61 = vadd.f32 1e-05, %v2394_v45  ;;  %v5474_v6 = vadd.f32 %v2226_v47, %v5267_v28  ;;  %v2335_v36 = vmul.f32 %v5466_v39, %v5466_v39  ;;  %vm2460_vm4 = vmor %vm2458_vm2, %vm2459_vm1 }
 0x750   : > { %v2454_v38 = vmul.f32 %v4152_v57, %v2453_v51  ;;  %v2636_v53 = vpack.c.bf16 %v2621_v7, %v2620_v48 }
 0x751   : > { %4153 = vrsqrt.f32 %v2410_v61  ;;  %v2291_v0 = vsel %vm728_vm0, %v5474_v6, 0.0  ;;  %v2451_v59 = vsel %vm2450_vm15, %v4150_v16, %v2447_v4  ;;  %v2369_v25 = vsel %vm728_vm0, %v2335_v36, 0.0 }
 0x752   : > { %v2455_v37 = vmul.f32 0.5, %v2454_v38  ;;  %3730 = vmatmul.msk.bf16.vlgmr.msrb.gmra.mxu0 %vm728_vm0, %v2636_v53  ;;  %v2278_v28 = vpop.xlane.xlu1 %2277  ;;  %2292 = vadd.xlane.f32.xlu1 %v2291_v0  ;;  %v2584_v17 = vmul.f32 %v2451_v59, %v5337_v11  ;;  %vm2468_vm6 = vweird.f32 %v2410_v61 }
 0x753   : > { %2370 = vadd.xlane.f32.xlu2 %v2369_v25  ;;  %v2304_v60 = vmul.f32 %v2278_v28, %v4938_v50 }
 0x754   : > { %v2456_v52 = vsub.f32 1.5, %v2455_v37  ;;  %v2359_v27 = vpop.xlane.xlu0 %2358 }
 0x755   : > { %v5486_v5 = vsub.f32 %v5381_v26, %v2304_v60  ;;  %v2395_v44 = vmul.f32 %v2359_v27, %v4938_v50  ;;  %v2603_v26 = vmul.f32 %v5444_v58, %v2584_v17 }
 0x756   : > { %v2457_v32 = vmul.f32 %v4152_v57, %v2456_v52 }
 0x757   : > { %v4154_v13 = vpop.eup %4153  ;;  %v2411_v55 = vadd.f32 1e-05, %v2395_v44  ;;  %v2336_v10 = vmul.f32 %v5486_v5, %v5486_v5  ;;  %v2622_v20 = vadd.f32 %v5461_v56, %v2603_v26 }
 0x758   : > { %v2461_v34 = vsel %vm2460_vm4, %v4152_v57, %v2457_v32  ;;  %v2463_v21 = vmul.f32 %v4154_v13, %v2410_v61  ;;  %vm2469_vm5 = vweird.f32 %v4154_v13 }
 0x759   : > { %v2585_v16 = vmul.f32 %v2461_v34, %v5351_v33  ;;  %4155 = vrsqrt.f32 %v2411_v55  ;;  %v2372_v11 = vsel %vm728_vm0, %v2336_v10, 0.0  ;;  %vm2470_vm7 = vmor %vm2468_vm6, %vm2469_vm5  ;;  %vm2478_vm8 = vweird.f32 %v2411_v55 }
 0x75a   : > { %v2464_v46 = vmul.f32 %v4154_v13, %v2463_v21  ;;  %v2281_v12 = vpop.xlane.xlu2 %2280 }
 0x75b   : > { %2373 = vadd.xlane.f32.xlu2 %v2372_v11  ;;  %v2305_v24 = vmul.f32 %v2281_v12, %v4938_v50  ;;  %v2604_v29 = vmul.f32 %v5444_v58, %v2585_v16 }
 0x75c   : > { %v2465_v43 = vmul.f32 0.5, %v2464_v46 }
 0x75d   : > { %v5498_v35 = vsub.f32 %v5390_v1, %v2305_v24  ;;  %v2623_v33 = vadd.f32 %v5461_v56, %v2604_v29 }
 0x75e   : > { %v2466_v41 = vsub.f32 1.5, %v2465_v43 }
 0x75f   : > { %v4156_v62 = vpop.eup %4155  ;;  %v2637_v40 = vpack.c.bf16 %v2623_v33, %v2622_v20  ;;  %v2337_v8 = vmul.f32 %v5498_v35, %v5498_v35 }
 0x760   : > { %v2467_v9 = vmul.f32 %v4154_v13, %v2466_v41  ;;  %v2473_v22 = vmul.f32 %v4156_v62, %v2411_v55  ;;  %vm2479_vm3 = vweird.f32 %v4156_v62 }
 0x761   : > { %v2375_v23 = vsel %vm728_vm0, %v2337_v8, 0.0  ;;  %vm2480_vm9 = vmor %vm2478_vm8, %vm2479_vm3 }
 0x762   : > { %v2474_v30 = vmul.f32 %v4156_v62, %v2473_v22  ;;  %3731 = vmatmul.msk.bf16.gmra.mxu0 %vm728_vm0, %v2637_v40  ;;  %2376 = vadd.xlane.f32.xlu0 %v2375_v23  ;;  %v2471_v1 = vsel %vm2470_vm7, %v4154_v13, %v2467_v9 }
 0x763   : > { %v2586_v57 = vmul.f32 %v2471_v1, %v5365_v14 }
 0x764   : > { %v2475_v63 = vmul.f32 0.5, %v2474_v30 }
 0x765   : > { %v2605_v51 = vmul.f32 %v5444_v58, %v2586_v57 }
 0x766   : > { %v2476_v18 = vsub.f32 1.5, %v2475_v63 }
 0x767   : > { %v2624_v7 = vadd.f32 %v5461_v56, %v2605_v51 }
 0x768   : > { %v2477_v19 = vmul.f32 %v4156_v62, %v2476_v18 }
 0x76a   : > { %v2481_v47 = vsel %vm2480_vm9, %v4156_v62, %v2477_v19 }
 0x76b   : > { %v2587_v45 = vmul.f32 %v2481_v47, %v5378_v3 }
 0x76d   : > { %v2606_v48 = vmul.f32 %v5444_v58, %v2587_v45  ;;  %v5549_v45 = vld [vmem:[%s4566_s27] sm:$0xff]  }
 0x76f   : > { %v2625_v4 = vadd.f32 %v5461_v56, %v2606_v48 }
 0x771   : > { %v2638_v61 = vpack.c.bf16 %v2625_v4, %v2624_v7  ;;  %v5561_v7 = vld [vmem:[%s4566_s27 + $0x8] sm:$0xff]  }
 0x773   : > { %3732 = vmatmul.msk.bf16.gmra.mxu0 %vm728_vm0, %v2638_v61 }
 0x7ad   : > { %v2362_v36 = vpop.xlane.xlu0 %2361  ;;  %v2284_v38 = vpop.xlane.xlu2 %2283 }
 0x7ae   : > { %v2396_v14 = vmul.f32 %v2362_v36, %v4938_v50  ;;  %v2306_v53 = vmul.f32 %v2284_v38, %v4938_v50 }
 0x7b0   : > { %v2412_v0 = vadd.f32 1e-05, %v2396_v14  ;;  %v5516_v3 = vsub.f32 %v5402_v54, %v2306_v53 }
 0x7b2   : > { %4157 = vrsqrt.f32 %v2412_v0  ;;  %v2338_v59 = vmul.f32 %v5516_v3, %v5516_v3  ;;  %vm2488_vm11 = vweird.f32 %v2412_v0 }
 0x7b4   : > { %v2378_v37 = vsel %vm728_vm0, %v2338_v59, 0.0 }
 0x7b5   : > { %v2365_v25 = vpop.xlane.xlu1 %2364  ;;  %v2287_v28 = vpop.xlane.xlu0 %2286  ;;  %2379 = vadd.xlane.f32.xlu1 %v2378_v37  ;;  %v3768_v37 = vunpack.c.l.bf16 %v5561_v7 }
 0x7b6   : > { %v2397_v60 = vmul.f32 %v2365_v25, %v4938_v50  ;;  %v2307_v52 = vmul.f32 %v2287_v28, %v4938_v50 }
 0x7b8   : > { %v4158_v27 = vpop.eup %4157  ;;  %v2413_v17 = vadd.f32 1e-05, %v2397_v60  ;;  %v5524_v44 = vsub.f32 %v5420_v2, %v2307_v52  ;;  %v5573_v52 = vld [vmem:[%s4566_s27 + $0x18] sm:$0xff]  }
 0x7b9   : > { %v2483_v54 = vmul.f32 %v4158_v27, %v2412_v0  ;;  %vm2489_vm10 = vweird.f32 %v4158_v27 }
 0x7ba   : > { %4159 = vrsqrt.f32 %v2413_v17  ;;  %v2339_v32 = vmul.f32 %v5524_v44, %v5524_v44  ;;  %vm2490_vm12 = vmor %vm2488_vm11, %vm2489_vm10  ;;  %vm2498_vm14 = vweird.f32 %v2413_v17 }
 0x7bb   : > { %v2484_v13 = vmul.f32 %v4158_v27, %v2483_v54 }
 0x7bc   : > { %v2381_v55 = vsel %vm728_vm0, %v2339_v32, 0.0 }
 0x7bd   : > { %v2485_v10 = vmul.f32 0.5, %v2484_v13  ;;  %2382 = vadd.xlane.f32.xlu2 %v2381_v55  ;;  %v2368_v34 = vpop.xlane.xlu1 %2367  ;;  %v2290_v21 = vpop.xlane.xlu0 %2289 }
 0x7be   : > { %v2398_v11 = vmul.f32 %v2368_v34, %v4938_v50  ;;  %v2308_v26 = vmul.f32 %v2290_v21, %v4938_v50 }
 0x7bf   : > { %v2486_v16 = vsub.f32 1.5, %v2485_v10 }
 0x7c0   : > { %v4160_v46 = vpop.eup %4159  ;;  %v2414_v12 = vadd.f32 1e-05, %v2398_v11  ;;  %v5532_v29 = vsub.f32 %v5451_v31, %v2308_v26  ;;  %v5586_v11 = vld [vmem:[%s4566_s27 + $0x20] sm:$0xff]  }
 0x7c1   : > { %v2493_v2 = vmul.f32 %v4160_v46, %v2413_v17  ;;  %v2487_v24 = vmul.f32 %v4158_v27, %v2486_v16  ;;  %vm2499_vm13 = vweird.f32 %v4160_v46  ;;  %v3776_v16 = vunpack.c.l.bf16 %v5573_v52 }
 0x7c2   : > { %4161 = vrsqrt.f32 %v2414_v12  ;;  %v2340_v20 = vmul.f32 %v5532_v29, %v5532_v29  ;;  %vm2500_vm15 = vmor %vm2498_vm14, %vm2499_vm13  ;;  %vm2508_vm2 = vweird.f32 %v2414_v12 }
 0x7c3   : > { %v2494_v43 = vmul.f32 %v4160_v46, %v2493_v2  ;;  %v2491_v41 = vsel %vm2490_vm12, %v4158_v27, %v2487_v24 }
 0x7c4   : > { %v2384_v40 = vsel %vm728_vm0, %v2340_v20, 0.0  ;;  %v2588_v30 = vmul.f32 %v2491_v41, %v5398_v15  ;;  %v5555_v15 = vld [vmem:[%s6172_s13] ss:$0 sm:$0xff] }
 0x7c5   : > { %v2495_v33 = vmul.f32 0.5, %v2494_v43  ;;  %v2293_v62 = vpop.xlane.xlu1 %2292  ;;  %2385 = vadd.xlane.f32.xlu0 %v2384_v40 }
 0x7c6   : > { %v2371_v8 = vpop.xlane.xlu2 %2370  ;;  %v2309_v22 = vmul.f32 %v2293_v62, %v4938_v50  ;;  %v2607_v61 = vmul.f32 %v5444_v58, %v2588_v30  ;;  %v3780_v62 = vunpack.c.l.bf16 %v5586_v11 }
 0x7c7   : > { %v2496_v9 = vsub.f32 1.5, %v2495_v33  ;;  %v2399_v31 = vmul.f32 %v2371_v8, %v4938_v50 }
 0x7c8   : > { %v4162_v23 = vpop.eup %4161  ;;  %v5541_v63 = vsub.f32 %v5474_v6, %v2309_v22  ;;  %v5558_v6 = vld [vmem:[%s4566_s27 + $0x10] sm:$0xff]   ;;  %v2626_v54 = vadd.f32 %v5461_v56, %v2607_v61 }
 0x7c9   : > { %v2497_v1 = vmul.f32 %v4160_v46, %v2496_v9  ;;  %v5543_v18 = vadd.f32 1e-05, %v2399_v31  ;;  %v2503_v57 = vmul.f32 %v4162_v23, %v2414_v12  ;;  %v3772_v59 = vunpack.c.l.bf16 %v5558_v6 }
 0x7ca   : > { %v2341_v47 = vmul.f32 %v5541_v63, %v5541_v63  ;;  %vm2509_vm1 = vweird.f32 %v4162_v23  ;;  %v3765_v9 = vunpack.c.h.bf16 %v5549_v45 }
 0x7cb   : > { %v2501_v19 = vsel %vm2500_vm15, %v4160_v46, %v2497_v1  ;;  %4163 = vrsqrt.f32 %v5543_v18  ;;  %v2504_v48 = vmul.f32 %v4162_v23, %v2503_v57  ;;  %vm5579_vm4 = vmor %vm2508_vm2, %vm2509_vm1  ;;  %vm2518_vm6 = vweird.f32 %v5543_v18 }
 0x7cc   : > { %v2589_v51 = vmul.f32 %v2501_v19, %v5412_v42  ;;  %v2387_v4 = vsel %vm728_vm0, %v2341_v47, 0.0  ;;  %v3764_v42 = vunpack.c.l.bf16 %v5549_v45 }
 0x7cd   : > { %v2505_v36 = vmul.f32 0.5, %v2504_v48  ;;  %2388 = vadd.xlane.f32.xlu1 %v2387_v4 }
 0x7ce   : > { %v2374_v38 = vpop.xlane.xlu2 %2373  ;;  %v2608_v14 = vmul.f32 %v5444_v58, %v2589_v51  ;;  %v3769_v51 = vunpack.c.h.bf16 %v5561_v7  ;;  %v3773_v7 = vunpack.c.h.bf16 %v5558_v6 }
 0x7cf   : > { %v2400_v53 = vmul.f32 %v2374_v38, %v4938_v50  ;;  %v2697_v0 = vpop.f32.mrf.mxu0  ;;  %v2506_v25 = vsub.f32 1.5, %v2505_v36  ;;  %v3777_v38 = vunpack.c.h.bf16 %v5573_v52 }
 0x7d0   : > { %v2698_v28 = vadd.f32 %v5555_v15, %v2697_v0  ;;  %v2627_v60 = vadd.f32 %v5461_v56, %v2608_v14 }
 0x7d1   : > { %v4164_v27 = vpop.eup %4163  ;;  %v5575_v17 = vadd.f32 1e-05, %v2400_v53  ;;  %v2507_v32 = vmul.f32 %v4162_v23, %v2506_v25 }
 0x7d2   : > { %v2513_v13 = vmul.f32 %v4164_v27, %v5543_v18  ;;  %v2897_v55 = vmul.f32 %v3764_v42, %v2698_v28  ;;  %v2639_v34 = vpack.c.bf16 %v2627_v60, %v2626_v54  ;;  %v2901_v21 = vmul.f32 %v3772_v59, %v2698_v28 }
 0x7d3   : > { %4165 = vrsqrt.f32 %v5575_v17  ;;  %v2511_v26 = vsel %vm5579_vm4, %v4162_v23, %v2507_v32  ;;  %v2899_v12 = vmul.f32 %v3768_v37, %v2698_v28  ;;  %vm2519_vm5 = vweird.f32 %v4164_v27 }
 0x7d4   : > { %v2514_v46 = vmul.f32 %v4164_v27, %v2513_v13  ;;  %v2977_v2 = vsel %vm728_vm0, %v2897_v55, 0.0  ;;  %3733 = vmatmul.msk.bf16.gmra.mxu0 %vm728_vm0, %v2639_v34  ;;  %v2989_v24 = vsel %vm728_vm0, %v2901_v21, 0.0  ;;  %v2590_v40 = vmul.f32 %v2511_v26, %v5435_v49  ;;  %vm2520_vm7 = vmor %vm2518_vm6, %vm2519_vm5  ;;  %v5619_v55 = vld [vmem:[%s4566_s27 + $0x38] sm:$0xff]  }
 0x7d5   : > { %2978 = vadd.xlane.f32.xlu2 %v2977_v2  ;;  %v2377_v43 = vpop.xlane.xlu0 %2376  ;;  %2990 = vadd.xlane.f32.xlu0 %v2989_v24  ;;  %v2983_v41 = vsel %vm728_vm0, %v2899_v12, 0.0  ;;  %v2903_v30 = vmul.f32 %v3776_v16, %v2698_v28  ;;  %v2905_v49 = vmul.f32 %v3780_v62, %v2698_v28  ;;  %vm2528_vm8 = vweird.f32 %v5575_v17  ;;  %v3927_v62 = vld [vmem:[%s4566_s27 + $0x30] sm:$0xff]  }
 0x7d6   : > { %v2515_v20 = vmul.f32 0.5, %v2514_v46  ;;  %v2401_v33 = vmul.f32 %v2377_v43, %v4938_v50  ;;  %2984 = vadd.xlane.f32.xlu1 %v2983_v41  ;;  %v2609_v61 = vmul.f32 %v5444_v58, %v2590_v40  ;;  %v3781_v21 = vunpack.c.h.bf16 %v5586_v11 }
 0x7d7   : > { %v2699_v8 = vpop.f32.mrf.mxu0  ;;  %v2995_v4 = vsel %vm728_vm0, %v2903_v30, 0.0  ;;  %v3001_v14 = vsel %vm728_vm0, %v2905_v49, 0.0  ;;  %v3792_v24 = vunpack.c.l.bf16 %v5619_v55 }
 0x7d8   : > { %v2516_v22 = vsub.f32 1.5, %v2515_v20  ;;  %v5598_v31 = vadd.f32 1e-05, %v2401_v33  ;;  %v2700_v23 = vadd.f32 %v5555_v15, %v2699_v8  ;;  %v3929_v8 = vld [vmem:[%s4566_s27 + $0x40] sm:$0xff]  }
 0x7d9   : > { %v4166_v1 = vpop.eup %4165 }
 0x7da   : > { %v2517_v57 = vmul.f32 %v4164_v27, %v2516_v22  ;;  %v2523_v19 = vmul.f32 %v4166_v1, %v5575_v17  ;;  %4167 = vrsqrt.f32 %v5598_v31  ;;  %v2898_v47 = vmul.f32 %v3765_v9, %v2700_v23 }
 0x7db   : > { %v2900_v37 = vmul.f32 %v3769_v51, %v2700_v23  ;;  %vm2529_vm3 = vweird.f32 %v4166_v1  ;;  %v2904_v60 = vmul.f32 %v3777_v38, %v2700_v23  ;;  %v2902_v32 = vmul.f32 %v3773_v7, %v2700_v23 }
 0x7dc   : > { %v2521_v45 = vsel %vm2520_vm7, %v4164_v27, %v2517_v57  ;;  %v2524_v48 = vmul.f32 %v4166_v1, %v2523_v19  ;;  %v2980_v18 = vsel %vm728_vm0, %v2898_v47, 0.0  ;;  %v3926_v27 = vld [vmem:[%s4566_s27 + $0x28] sm:$0xff]   ;;  %vm5621_vm9 = vmor %vm2528_vm8, %vm2529_vm3  ;;  %v2906_v20 = vmul.f32 %v3781_v21, %v2700_v23  ;;  %v3933_v21 = vld [vmem:[%s4566_s27 + $0x60] sm:$0xff]  }
 0x7dd   : > { %v2591_v36 = vmul.f32 %v2521_v45, %v5466_v39  ;;  %2996 = vadd.xlane.f32.xlu2 %v2995_v4  ;;  %2981 = vadd.xlane.f32.xlu0 %v2980_v18  ;;  %v2628_v39 = vadd.f32 %v5461_v56, %v2609_v61  ;;  %v2986_v34 = vsel %vm728_vm0, %v2900_v37, 0.0  ;;  %v3784_v16 = vunpack.c.l.bf16 %v3926_v27  ;;  %v3930_v61 = vld [vmem:[%s4566_s27 + $0x48] sm:$0xff]  }
 0x7de   : > { %v2525_v42 = vmul.f32 0.5, %v2524_v48  ;;  %3002 = vadd.xlane.f32.xlu1 %v3001_v14  ;;  %v2998_v2 = vsel %vm728_vm0, %v2904_v60, 0.0  ;;  %v2992_v12 = vsel %vm728_vm0, %v2902_v32, 0.0  ;;  %vm2538_vm11 = vweird.f32 %v5598_v31 }
 0x7df   : > { %v2610_v53 = vmul.f32 %v5444_v58, %v2591_v36  ;;  %v2702_v28 = vpop.f32.mrf.mxu0  ;;  %v3788_v57 = vunpack.c.l.bf16 %v3927_v62  ;;  %v3796_v23 = vunpack.c.l.bf16 %v3929_v8  ;;  %v3785_v51 = vunpack.c.h.bf16 %v3926_v27 }
 0x7e0   : > { %v4168_v0 = vpop.eup %4167  ;;  %v2526_v59 = vsub.f32 1.5, %v2525_v42  ;;  %v2703_v17 = vadd.f32 %v5555_v15, %v2702_v28  ;;  %v3800_v42 = vunpack.c.l.bf16 %v3930_v61  ;;  %v3789_v7 = vunpack.c.h.bf16 %v3927_v62  ;;  %v3931_v28 = vld [vmem:[%s4566_s27 + $0x50] sm:$0xff]  }
 0x7e1   : > { %v2533_v25 = vmul.f32 %v4168_v0, %v5598_v31  ;;  %v2629_v52 = vadd.f32 %v5461_v56, %v2610_v53  ;;  %vm2539_vm10 = vweird.f32 %v4168_v0  ;;  %v3935_v62 = vld [vmem:[%s4566_s27 + $0x70] sm:$0xff]  }
 0x7e2   : > { %v2527_v54 = vmul.f32 %v4166_v1, %v2526_v59  ;;  %v2907_v41 = vmul.f32 %v3784_v16, %v2703_v17  ;;  %vm2540_vm12 = vmor %vm2538_vm11, %vm2539_vm10  ;;  %v2911_v40 = vmul.f32 %v3792_v24, %v2703_v17  ;;  %v2913_v4 = vmul.f32 %v3796_v23, %v2703_v17 }
 0x7e3   : > { %v2534_v6 = vmul.f32 %v4168_v0, %v2533_v25  ;;  %v2640_v13 = vpack.c.bf16 %v2629_v52, %v2628_v39  ;;  %v2915_v59 = vmul.f32 %v3800_v42, %v2703_v17  ;;  %v3793_v52 = vunpack.c.h.bf16 %v5619_v55 }
 0x7e4   : > { %v2531_v26 = vsel %vm5621_vm9, %v4166_v1, %v2527_v54  ;;  %v3004_v1 = vsel %vm728_vm0, %v2906_v20, 0.0  ;;  %v3019_v49 = vsel %vm728_vm0, %v2911_v40, 0.0  ;;  %v3025_v14 = vsel %vm728_vm0, %v2913_v4, 0.0 }
 0x7e5   : > { %v2535_v46 = vmul.f32 0.5, %v2534_v6  ;;  %2987 = vadd.xlane.f32.xlu2 %v2986_v34  ;;  %3734 = vmatmul.msk.bf16.gmra.mxu0 %vm728_vm0, %v2640_v13  ;;  %v2592_v43 = vmul.f32 %v2531_v26, %v5486_v5  ;;  %v3007_v5 = vsel %vm728_vm0, %v2907_v41, 0.0  ;;  %v3031_v60 = vsel %vm728_vm0, %v2915_v59, 0.0  ;;  %v3932_v26 = vld [vmem:[%s4566_s27 + $0x58] sm:$0xff]  }
 0x7e6   : > { %2999 = vadd.xlane.f32.xlu0 %v2998_v2  ;;  %2993 = vadd.xlane.f32.xlu1 %v2992_v12  ;;  %v3801_v54 = vunpack.c.h.bf16 %v3930_v61  ;;  %v3804_v13 = vunpack.c.l.bf16 %v3931_v28  ;;  %v3808_v12 = vunpack.c.l.bf16 %v3932_v26  ;;  %vm3302_vm10 = vcmask 130112  }
 0x7e7   : > { %v2536_v11 = vsub.f32 1.5, %v2535_v46  ;;  %v2704_v22 = vpop.f32.mrf.mxu0  ;;  %v2611_v19 = vmul.f32 %v5444_v58, %v2592_v43  ;;  %v3934_v46 = vld [vmem:[%s4566_s27 + $0x68] sm:$0xff]   ;;  %vm3421_vm11 = vcmask 1041409  }
 0x7e8   : > { %v2705_v31 = vadd.f32 %v5555_v15, %v2704_v22 }
 0x7e9   : > { %v2537_v33 = vmul.f32 %v4168_v0, %v2536_v11  ;;  %v2630_v45 = vadd.f32 %v5461_v56, %v2611_v19  ;;  %v3816_v11 = vunpack.c.l.bf16 %v3934_v46 }
 0x7ea   : > { %v2908_v18 = vmul.f32 %v3785_v51, %v2705_v31  ;;  %v2910_v37 = vmul.f32 %v3789_v7, %v2705_v31  ;;  %v2912_v10 = vmul.f32 %v3793_v52, %v2705_v31  ;;  %v2916_v34 = vmul.f32 %v3801_v54, %v2705_v31 }
 0x7eb   : > { %v2541_v9 = vsel %vm2540_vm12, %v4168_v0, %v2537_v33  ;;  %v3797_v0 = vunpack.c.h.bf16 %v3929_v8  ;;  %v3813_v51 = vunpack.c.h.bf16 %v3933_v21  ;;  %vm3423_vm12 = vcmask 1042434  }
 0x7ec   : > { %v2593_v30 = vmul.f32 %v2541_v9, %v5498_v35  ;;  %v2909_v35 = vmul.f32 %v3788_v57, %v2703_v17  ;;  %v3010_v53 = vsel %vm728_vm0, %v2908_v18, 0.0  ;;  %v3016_v27 = vsel %vm728_vm0, %v2910_v37, 0.0 }
 0x7ed   : > { %3005 = vadd.xlane.f32.xlu2 %v3004_v1  ;;  %v2914_v39 = vmul.f32 %v3797_v0, %v2705_v31  ;;  %v3022_v55 = vsel %vm728_vm0, %v2912_v10, 0.0  ;;  %v3812_v17 = vunpack.c.l.bf16 %v3933_v21  ;;  %v3034_v2 = vsel %vm728_vm0, %v2916_v34, 0.0 }
 0x7ee   : > { %3008 = vadd.xlane.f32.xlu0 %v3007_v5  ;;  %v2612_v47 = vmul.f32 %v5444_v58, %v2593_v30  ;;  %3020 = vadd.xlane.f32.xlu1 %v3019_v49  ;;  %v3013_v38 = vsel %vm728_vm0, %v2909_v35, 0.0  ;;  %v3805_v9 = vunpack.c.h.bf16 %v3931_v28  ;;  %v3820_v30 = vunpack.c.l.bf16 %v3935_v62 }
 0x7ef   : > { %v3028_v6 = vsel %vm728_vm0, %v2914_v39, 0.0  ;;  %v3809_v57 = vunpack.c.h.bf16 %v3932_v26  ;;  %v3817_v49 = vunpack.c.h.bf16 %v3934_v46 }
 0x7f0   : > { %v2631_v48 = vadd.f32 %v5461_v56, %v2612_v47  ;;  %v2707_v25 = vpop.f32.mrf.mxu0 }
 0x7f1   : > { %v2708_v32 = vadd.f32 %v5555_v15, %v2707_v25 }
 0x7f2   : > { %v2641_v36 = vpack.c.bf16 %v2631_v48, %v2630_v45  ;;  %v3821_v45 = vunpack.c.h.bf16 %v3935_v62 }
 0x7f3   : > { %v2917_v16 = vmul.f32 %v3804_v13, %v2708_v32  ;;  %v2921_v43 = vmul.f32 %v3812_v17, %v2708_v32  ;;  %v2919_v33 = vmul.f32 %v3808_v12, %v2708_v32  ;;  %v2923_v41 = vmul.f32 %v3816_v11, %v2708_v32 }
 0x7f4   : > { %v2925_v5 = vmul.f32 %v3820_v30, %v2708_v32 }
 0x7f5   : > { %3014 = vadd.xlane.f32.xlu2 %v3013_v38  ;;  %3735 = vmatmul.msk.bf16.gmra.mxu0 %vm728_vm0, %v2641_v36  ;;  %v3037_v24 = vsel %vm728_vm0, %v2917_v16, 0.0  ;;  %v3049_v8 = vsel %vm728_vm0, %v2921_v43, 0.0  ;;  %v3043_v22 = vsel %vm728_vm0, %v2919_v33, 0.0  ;;  %v3055_v1 = vsel %vm728_vm0, %v2923_v41, 0.0 }
 0x7f6   : > { %3026 = vadd.xlane.f32.xlu0 %v3025_v14  ;;  %3011 = vadd.xlane.f32.xlu1 %v3010_v53  ;;  %v3061_v47 = vsel %vm728_vm0, %v2925_v5, 0.0  ;;  %v3297_v5 = vlaneseq }
 0x7f8   : > { %v2709_v20 = vpop.f32.mrf.mxu0 }
 0x7f9   : > { %v2710_v40 = vadd.f32 %v5555_v15, %v2709_v20 }
 0x7fb   : > { %v2918_v19 = vmul.f32 %v3805_v9, %v2710_v40  ;;  %v2920_v23 = vmul.f32 %v3809_v57, %v2710_v40  ;;  %v2924_v48 = vmul.f32 %v3817_v49, %v2710_v40  ;;  %v2922_v4 = vmul.f32 %v3813_v51, %v2710_v40  ;;  %v5692_v57 = vld [vmem:[%s4566_s27 + $0x78] sm:$0xff]  }
 0x7fc   : > { %v2926_v61 = vmul.f32 %v3821_v45, %v2710_v40 }
 0x7fd   : > { %3032 = vadd.xlane.f32.xlu2 %v3031_v60  ;;  %v3040_v31 = vsel %vm728_vm0, %v2918_v19, 0.0  ;;  %v3046_v35 = vsel %vm728_vm0, %v2920_v23, 0.0  ;;  %v3058_v36 = vsel %vm728_vm0, %v2924_v48, 0.0  ;;  %v3052_v18 = vsel %vm728_vm0, %v2922_v4, 0.0  ;;  %v5695_v23 = vld [vmem:[%s4566_s27 + $0x88] sm:$0xff]  }
 0x7fe   : > { %3017 = vadd.xlane.f32.xlu0 %v3016_v27  ;;  %3029 = vadd.xlane.f32.xlu1 %v3028_v6  ;;  %v3064_v38 = vsel %vm728_vm0, %v2926_v61, 0.0  ;;  %v3832_v61 = vunpack.c.l.bf16 %v5695_v23 }
 0x805   : > { %3023 = vadd.xlane.f32.xlu2 %v3022_v55 }
 0x806   : > { %3035 = vadd.xlane.f32.xlu0 %v3034_v2  ;;  %3038 = vadd.xlane.f32.xlu1 %v3037_v24 }
 0x80d   : > { %3050 = vadd.xlane.f32.xlu2 %v3049_v8 }
 0x80e   : > { %3044 = vadd.xlane.f32.xlu0 %v3043_v22  ;;  %3056 = vadd.xlane.f32.xlu1 %v3055_v1 }
 0x815   : > { %3041 = vadd.xlane.f32.xlu2 %v3040_v31  ;;  %v5698_v31 = vld [vmem:[%s4566_s27 + $0x80] sm:$0xff]  }
 0x816   : > { %3062 = vadd.xlane.f32.xlu0 %v3061_v47  ;;  %3047 = vadd.xlane.f32.xlu1 %v3046_v35  ;;  %v3824_v35 = vunpack.c.l.bf16 %v5692_v57 }
 0x81d   : > { %3059 = vadd.xlane.f32.xlu2 %v3058_v36  ;;  %v3828_v36 = vunpack.c.l.bf16 %v5698_v31 }
 0x81e   : > { %3053 = vadd.xlane.f32.xlu0 %v3052_v18  ;;  %3065 = vadd.xlane.f32.xlu1 %v3064_v38  ;;  %v5712_v18 = vand.u32 127, %v3297_v5 }
 0x828   : > { %v2380_v42 = vpop.xlane.xlu1 %2379 }
 0x829   : > { %v2402_v14 = vmul.f32 %v2380_v42, %v4938_v50 }
 0x82b   : > { %v2418_v7 = vadd.f32 1e-05, %v2402_v14 }
 0x82d   : > { %4169 = vrsqrt.f32 %v2418_v7  ;;  %vm2548_vm14 = vweird.f32 %v2418_v7 }
 0x830   : > { %v2383_v53 = vpop.xlane.xlu2 %2382 }
 0x831   : > { %v2403_v0 = vmul.f32 %v2383_v53, %v4938_v50  ;;  %v5718_v53 = vld [vmem:[%s4566_s27 + $0x90] sm:$0xff]  }
 0x833   : > { %v4170_v59 = vpop.eup %4169  ;;  %v2419_v37 = vadd.f32 1e-05, %v2403_v0  ;;  %v3940_v0 = vld [vmem:[%s4566_s27 + $0x98] sm:$0xff]  }
 0x834   : > { %v2543_v39 = vmul.f32 %v4170_v59, %v2418_v7  ;;  %vm2549_vm13 = vweird.f32 %v4170_v59 }
 0x835   : > { %4171 = vrsqrt.f32 %v2419_v37  ;;  %vm2550_vm15 = vmor %vm2548_vm14, %vm2549_vm13  ;;  %vm2558_vm2 = vweird.f32 %v2419_v37  ;;  %vm3425_vm13 = vcmask 1043459   ;;  %vm3427_vm14 = vcmask 1044484  }
 0x836   : > { %v2544_v25 = vmul.f32 %v4170_v59, %v2543_v39 }
 0x838   : > { %v2545_v28 = vmul.f32 0.5, %v2544_v25  ;;  %v2386_v52 = vpop.xlane.xlu0 %2385 }
 0x839   : > { %v2404_v54 = vmul.f32 %v2386_v52, %v4938_v50  ;;  %v3836_v52 = vunpack.c.l.bf16 %v5718_v53 }
 0x83a   : > { %v2546_v60 = vsub.f32 1.5, %v2545_v28 }
 0x83b   : > { %v4172_v27 = vpop.eup %4171  ;;  %v2420_v13 = vadd.f32 1e-05, %v2404_v54 }
 0x83c   : > { %v2547_v32 = vmul.f32 %v4170_v59, %v2546_v60  ;;  %v2553_v6 = vmul.f32 %v4172_v27, %v2419_v37  ;;  %vm2559_vm1 = vweird.f32 %v4172_v27  ;;  %v5723_v37 = vadd.s32 4294967288, %v5712_v18 }
 0x83d   : > { %4173 = vrsqrt.f32 %v2420_v13  ;;  %vm2560_vm4 = vmor %vm2558_vm2, %vm2559_vm1  ;;  %vm2568_vm6 = vweird.f32 %v2420_v13 }
 0x83e   : > { %v2554_v10 = vmul.f32 %v4172_v27, %v2553_v6  ;;  %v2551_v34 = vsel %vm2550_vm15, %v4170_v59, %v2547_v32  ;;  %vm3465_vm15 = vcmask 126976  }
 0x83f   : > { %v2594_v55 = vmul.f32 %v2551_v34, %v5516_v3 }
 0x840   : > { %v2555_v21 = vmul.f32 0.5, %v2554_v10  ;;  %v2389_v16 = vpop.xlane.xlu1 %2388 }
 0x841   : > { %v2405_v46 = vmul.f32 %v2389_v16, %v4938_v50  ;;  %v2613_v20 = vmul.f32 %v5444_v58, %v2594_v55  ;;  %v3841_v55 = vunpack.c.h.bf16 %v3940_v0 }
 0x842   : > { %v2556_v26 = vsub.f32 1.5, %v2555_v21 }
 0x843   : > { %v2421_v2 = vadd.f32 1e-05, %v2405_v46  ;;  %v4174_v12 = vpop.eup %4173  ;;  %v2632_v8 = vadd.f32 %v5461_v56, %v2613_v20 }
 0x844   : > { %v2557_v17 = vmul.f32 %v4172_v27, %v2556_v26  ;;  %v2563_v11 = vmul.f32 %v4174_v12, %v2420_v13  ;;  %vm2569_vm5 = vweird.f32 %v4174_v12 }
 0x845   : > { %4175 = vrsqrt.f32 %v2421_v2  ;;  %vm5701_vm7 = vmor %vm2568_vm6, %vm2569_vm5  ;;  %vm2578_vm8 = vweird.f32 %v2421_v2 }
 0x846   : > { %v2561_v24 = vsel %vm2560_vm4, %v4172_v27, %v2557_v17  ;;  %v2564_v33 = vmul.f32 %v4174_v12, %v2563_v11  ;;  %v3840_v27 = vunpack.c.l.bf16 %v3940_v0 }
 0x847   : > { %v2595_v43 = vmul.f32 %v2561_v24, %v5524_v44 }
 0x848   : > { %v5682_v41 = vpop.xlane.xlu2 %2978  ;;  %v5684_v50 = vpop.xlane.xlu0 %2990  ;;  %v2565_v62 = vmul.f32 0.5, %v2564_v33 }
 0x849   : > { %v2614_v3 = vmul.f32 %v5444_v58, %v2595_v43  ;;  %v5687_v40 = vpop.xlane.xlu1 %2984  ;;  %v3299_v17 = vperm.slane %v5682_v41, %v5712_v18 }
 0x84a   : > { %v2566_v44 = vsub.f32 1.5, %v2565_v62  ;;  %v3304_v16 = vperm.slane %v5687_v40, %v5712_v18 }
 0x84b   : > { %v2633_v9 = vadd.f32 %v5461_v56, %v2614_v3  ;;  %v4176_v22 = vpop.eup %4175 }
 0x84c   : > { %v2573_v30 = vmul.f32 %v4176_v22, %v2421_v2  ;;  %v2567_v19 = vmul.f32 %v4174_v12, %v2566_v44  ;;  %vm2579_vm3 = vweird.f32 %v4176_v22  ;;  %v3829_v44 = vunpack.c.h.bf16 %v5698_v31 }
 0x84d   : > { %v2642_v1 = vpack.c.bf16 %v2633_v9, %v2632_v8  ;;  %vm2580_vm9 = vmor %vm2578_vm8, %vm2579_vm3 }
 0x84e   : > { %v2574_v49 = vmul.f32 %v4176_v22, %v2573_v30  ;;  %v2571_v45 = vsel %vm5701_vm7, %v4174_v12, %v2567_v19  ;;  %v5764_v30 = vld [vmem:[%s4566_s27 + $0xa0] sm:$0xff]  }
 0x84f   : > { %3736 = vmatmul.msk.bf16.gmra.mxu0 %vm728_vm0, %v2642_v1  ;;  %v2596_v59 = vmul.f32 %v2571_v45, %v5532_v29 }
 0x850   : > { %v5705_v51 = vpop.xlane.xlu2 %2996  ;;  %v2575_v48 = vmul.f32 0.5, %v2574_v49  ;;  %v2982_v4 = vpop.xlane.xlu0 %2981 }
 0x851   : > { %v5714_v38 = vpop.xlane.xlu1 %3002  ;;  %v2712_v42 = vpop.f32.mrf.mxu0  ;;  %v3301_v10 = vperm.slane %v2982_v4, %v5723_v37  ;;  %v2615_v21 = vmul.f32 %v5444_v58, %v2596_v59  ;;  %v3310_v49 = vperm.slane %v5705_v51, %v5712_v18  ;;  %v3844_v51 = vunpack.c.l.bf16 %v5764_v30 }
 0x852   : > { %v2576_v14 = vsub.f32 1.5, %v2575_v48  ;;  %v2713_v7 = vadd.f32 %v5555_v15, %v2712_v42 }
 0x853   : > { %v3303_v41 = vsel %vm3302_vm10, %v3301_v10, %v3299_v17 }
 0x854   : > { %v2577_v39 = vmul.f32 %v4176_v22, %v2576_v14  ;;  %v2927_v25 = vmul.f32 %v3824_v35, %v2713_v7  ;;  %v2931_v28 = vmul.f32 %v3832_v61, %v2713_v7  ;;  %v2929_v60 = vmul.f32 %v3828_v36, %v2713_v7 }
 0x855   : > { %v2933_v24 = vmul.f32 %v3836_v52, %v2713_v7  ;;  %v2935_v3 = vmul.f32 %v3840_v27, %v2713_v7  ;;  %v3313_v35 = vperm.slane %v5714_v38, %v5712_v18  ;;  %v3837_v27 = vunpack.c.h.bf16 %v5718_v53 }
 0x856   : > { %v2581_v54 = vsel %vm2580_vm9, %v4176_v22, %v2577_v39  ;;  %v3067_v32 = vsel %vm728_vm0, %v2927_v25, 0.0  ;;  %v3079_v6 = vsel %vm728_vm0, %v2931_v28, 0.0  ;;  %v3073_v29 = vsel %vm728_vm0, %v2929_v60, 0.0  ;;  %v5799_v39 = vld [vmem:[%s4566_s27 + $0xb8] sm:$0xff]  }
 0x857   : > { %v2597_v13 = vmul.f32 %v2581_v54, %v5541_v63  ;;  %3068 = vadd.xlane.f32.xlu2 %v3067_v32  ;;  %3080 = vadd.xlane.f32.xlu0 %v3079_v6  ;;  %v3307_v63 = vperm.slane %v5684_v50, %v5712_v18  ;;  %v2634_v50 = vadd.f32 %v5461_v56, %v2615_v21  ;;  %v3085_v1 = vsel %vm728_vm0, %v2933_v24, 0.0  ;;  %v3942_v21 = vld [vmem:[%s4566_s27 + $0xa8] sm:$0xff]  }
 0x858   : > { %v2988_v34 = vpop.xlane.xlu2 %2987  ;;  %3074 = vadd.xlane.f32.xlu1 %v3073_v29  ;;  %v3091_v19 = vsel %vm728_vm0, %v2935_v3, 0.0  ;;  %v3833_v25 = vunpack.c.h.bf16 %v5695_v23  ;;  %v3856_v32 = vunpack.c.l.bf16 %v5799_v39 }
 0x859   : > { %v3000_v26 = vpop.xlane.xlu0 %2999  ;;  %v3305_v46 = vperm.slane %v2988_v34, %v5723_v37  ;;  %v2994_v2 = vpop.xlane.xlu1 %2993  ;;  %v2616_v11 = vmul.f32 %v5444_v58, %v2597_v13  ;;  %v5809_v34 = vld [vmem:[%s4566_s27 + $0xc0] sm:$0xff]  }
 0x85a   : > { %v2714_v12 = vpop.f32.mrf.mxu0  ;;  %v3308_v20 = vperm.slane %v2994_v2, %v5723_v37  ;;  %v3311_v9 = vperm.slane %v3000_v26, %v5723_v37 }
 0x85b   : > { %v3306_v43 = vsel %vm3302_vm10, %v3305_v46, %v3304_v16  ;;  %v2715_v33 = vadd.f32 %v5555_v15, %v2714_v12  ;;  %v2635_v62 = vadd.f32 %v5461_v56, %v2616_v11  ;;  %v3825_v56 = vunpack.c.h.bf16 %v5692_v57 }
 0x85c   : > { %v3422_v58 = vsel %vm3421_vm11, %v3306_v43, %v3303_v41  ;;  %v3309_v40 = vsel %vm3302_vm10, %v3308_v20, %v3307_v63  ;;  %v3312_v48 = vsel %vm3302_vm10, %v3311_v9, %v3310_v49  ;;  %v3860_v46 = vunpack.c.l.bf16 %v5809_v34 }
 0x85d   : > { %v2936_v8 = vmul.f32 %v3841_v55, %v2715_v33  ;;  %v2643_v22 = vpack.c.bf16 %v2635_v62, %v2634_v50  ;;  %v3424_v47 = vsel %vm3423_vm12, %v3309_v40, %v3422_v58  ;;  %v2930_v36 = vmul.f32 %v3829_v44, %v2715_v33 }
 0x85e   : > { %v3426_v38 = vsel %vm3425_vm13, %v3312_v48, %v3424_v47  ;;  %v2928_v7 = vmul.f32 %v3825_v56, %v2715_v33  ;;  %v2932_v13 = vmul.f32 %v3833_v25, %v2715_v33  ;;  %v2934_v10 = vmul.f32 %v3837_v27, %v2715_v33  ;;  %v3943_v33 = vld [vmem:[%s4566_s27 + $0xb0] sm:$0xff]  }
 0x85f   : > { %v3094_v5 = vsel %vm728_vm0, %v2936_v8, 0.0  ;;  %3086 = vadd.xlane.f32.xlu2 %v3085_v1  ;;  %3092 = vadd.xlane.f32.xlu0 %v3091_v19  ;;  %v3076_v28 = vsel %vm728_vm0, %v2930_v36, 0.0  ;;  %v3848_v55 = vunpack.c.l.bf16 %v3942_v21  ;;  %v3849_v12 = vunpack.c.h.bf16 %v3942_v21 }
 0x860   : > { %v3006_v31 = vpop.xlane.xlu2 %3005  ;;  %3095 = vadd.xlane.f32.xlu1 %v3094_v5  ;;  %3737 = vmatmul.msk.bf16.gmra.mxu0 %vm728_vm0, %v2643_v22  ;;  %v3070_v60 = vsel %vm728_vm0, %v2928_v7, 0.0  ;;  %v3082_v26 = vsel %vm728_vm0, %v2932_v13, 0.0  ;;  %v3088_v53 = vsel %vm728_vm0, %v2934_v10, 0.0  ;;  %v3852_v58 = vunpack.c.l.bf16 %v3943_v33 }
 0x861   : > { %v5776_v45 = vpop.xlane.xlu0 %3008  ;;  %v3314_v57 = vperm.slane %v3006_v31, %v5723_v37  ;;  %v5787_v4 = vpop.xlane.xlu1 %3020  ;;  %v3845_v9 = vunpack.c.h.bf16 %v5764_v30  ;;  %v3853_v22 = vunpack.c.h.bf16 %v3943_v33  ;;  %v3857_v27 = vunpack.c.h.bf16 %v5799_v39  ;;  %v3949_v39 = vld [vmem:[%s4566_s27 + $0xe0] sm:$0xff]  }
 0x862   : > { %v2717_v61 = vpop.f32.mrf.mxu0  ;;  %v3316_v44 = vperm.slane %v5776_v45, %v5712_v18  ;;  %v3322_v49 = vperm.slane %v5787_v4, %v5712_v18 }
 0x863   : > { %v3315_v42 = vsel %vm3302_vm10, %v3314_v57, %v3313_v35  ;;  %v5792_v14 = vadd.f32 %v5555_v15, %v2717_v61 }
 0x864   : > { %v3428_v0 = vsel %vm3427_vm14, %v3315_v42, %v3426_v38 }
 0x865   : > { %3466 = vst.msk [vmem:[%s5785_s11] sm:$0x1f] %vm3465_vm15, %v3428_v0  ;;  %v2937_v59 = vmul.f32 %v3844_v51, %v5792_v14  ;;  %v2943_v23 = vmul.f32 %v3856_v32, %v5792_v14  ;;  %v2945_v43 = vmul.f32 %v3860_v46, %v5792_v14  ;;  %v2939_v20 = vmul.f32 %v3848_v55, %v5792_v14 }
 0x866   : > { %v2941_v51 = vmul.f32 %v3852_v58, %v5792_v14  ;;  %v5853_v14 = vld [vmem:[%s4566_s27 + $0xd0] sm:$0xff]   ;;  %v3876_v46 = vunpack.c.l.bf16 %v3949_v39 }
 0x867   : > { %v3097_v52 = vsel %vm728_vm0, %v2937_v59, 0.0  ;;  %3077 = vadd.xlane.f32.xlu2 %v3076_v28  ;;  %3071 = vadd.xlane.f32.xlu0 %v3070_v60  ;;  %v3115_v17 = vsel %vm728_vm0, %v2943_v23, 0.0  ;;  %v3121_v40 = vsel %vm728_vm0, %v2945_v43, 0.0  ;;  %v3103_v8 = vsel %vm728_vm0, %v2939_v20, 0.0 }
 0x868   : > { %v3015_v54 = vpop.xlane.xlu2 %3014  ;;  %3098 = vadd.xlane.f32.xlu1 %v3097_v52  ;;  %v3109_v52 = vsel %vm728_vm0, %v2941_v51, 0.0  ;;  %v3868_v13 = vunpack.c.l.bf16 %v5853_v14 }
 0x869   : > { %v3027_v6 = vpop.xlane.xlu0 %3026  ;;  %v3012_v29 = vpop.xlane.xlu1 %3011  ;;  %v3319_v50 = vperm.slane %v3015_v54, %v5712_v18  ;;  %v3861_v54 = vunpack.c.h.bf16 %v5809_v34  ;;  %v5870_v34 = vld [vmem:[%s4566_s27 + $0xe8] sm:$0xff]  }
 0x86a   : > { %v2719_v16 = vpop.f32.mrf.mxu0  ;;  %v3317_v62 = vperm.slane %v3012_v29, %v5723_v37  ;;  %v3325_v31 = vperm.slane %v3027_v6, %v5712_v18 }
 0x86b   : > { %v5816_v63 = vadd.f32 %v5555_v15, %v2719_v16 }
 0x86c   : > { %v3318_v35 = vsel %vm3302_vm10, %v3317_v62, %v3316_v44 }
 0x86d   : > { %v2940_v41 = vmul.f32 %v3849_v12, %v5816_v63  ;;  %v2938_v36 = vmul.f32 %v3845_v9, %v5816_v63  ;;  %v2942_v7 = vmul.f32 %v3853_v22, %v5816_v63  ;;  %v2944_v21 = vmul.f32 %v3857_v27, %v5816_v63 }
 0x86e   : > { %v2946_v16 = vmul.f32 %v3861_v54, %v5816_v63 }
 0x86f   : > { %3083 = vadd.xlane.f32.xlu2 %v3082_v26  ;;  %3089 = vadd.xlane.f32.xlu0 %v3088_v53  ;;  %v3106_v5 = vsel %vm728_vm0, %v2940_v41, 0.0  ;;  %v3100_v60 = vsel %vm728_vm0, %v2938_v36, 0.0  ;;  %v3112_v6 = vsel %vm728_vm0, %v2942_v7, 0.0  ;;  %v3946_v53 = vld [vmem:[%s4566_s27 + $0xc8] sm:$0xff]   ;;  %v3118_v55 = vsel %vm728_vm0, %v2944_v21, 0.0 }
 0x870   : > { %v3033_v2 = vpop.xlane.xlu2 %3032  ;;  %3116 = vadd.xlane.f32.xlu1 %v3115_v17  ;;  %v3124_v17 = vsel %vm728_vm0, %v2946_v16, 0.0  ;;  %v3881_v21 = vunpack.c.h.bf16 %v5870_v34 }
 0x871   : > { %v3018_v24 = vpop.xlane.xlu0 %3017  ;;  %v3030_v11 = vpop.xlane.xlu1 %3029  ;;  %v3328_v4 = vperm.slane %v3033_v2, %v5712_v18  ;;  %v3864_v2 = vunpack.c.l.bf16 %v3946_v53 }
 0x872   : > { %v3320_v3 = vperm.slane %v3018_v24, %v5723_v37  ;;  %v3326_v19 = vperm.slane %v3030_v11, %v5723_v37  ;;  %v2722_v0 = vpop.f32.mrf.mxu0  ;;  %v3880_v11 = vunpack.c.l.bf16 %v5870_v34  ;;  %v5919_v34 = vld [vmem:[%s6172_s13] ss:$0 sm:$0xff] }
 0x873   : > { %v2723_v32 = vadd.f32 %v5555_v15, %v2722_v0 }
 0x874   : > { %v3321_v1 = vsel %vm3302_vm10, %v3320_v3, %v3319_v50  ;;  %v3327_v38 = vsel %vm3302_vm10, %v3326_v19, %v3325_v31  ;;  %v3948_v3 = vld [vmem:[%s4566_s27 + $0xd8] sm:$0xff]  }
 0x875   : > { %v3429_v48 = vsel %vm3421_vm11, %v3321_v1, %v3318_v35  ;;  %v2949_v26 = vmul.f32 %v3868_v13, %v2723_v32  ;;  %v2953_v20 = vmul.f32 %v3876_v46, %v2723_v32  ;;  %v2947_v33 = vmul.f32 %v3864_v2, %v2723_v32 }
 0x876   : > { %v2955_v50 = vmul.f32 %v3880_v11, %v2723_v32  ;;  %v3872_v9 = vunpack.c.l.bf16 %v3948_v3 }
 0x877   : > { %3122 = vadd.xlane.f32.xlu2 %v3121_v40  ;;  %3104 = vadd.xlane.f32.xlu0 %v3103_v8  ;;  %v3133_v12 = vsel %vm728_vm0, %v2949_v26, 0.0  ;;  %v3145_v40 = vsel %vm728_vm0, %v2953_v20, 0.0  ;;  %v3865_v8 = vunpack.c.h.bf16 %v3946_v53  ;;  %v3127_v19 = vsel %vm728_vm0, %v2947_v33, 0.0  ;;  %v3952_v26 = vld [vmem:[%s4566_s27 + $0xf8] sm:$0xff]   ;;  %v3951_v53 = vld [vmem:[%s4566_s27 + $0xf0] sm:$0xff]  }
 0x878   : > { %v3024_v56 = vpop.xlane.xlu2 %3023  ;;  %3107 = vadd.xlane.f32.xlu1 %v3106_v5  ;;  %v3151_v5 = vsel %vm728_vm0, %v2955_v50, 0.0  ;;  %v3888_v2 = vunpack.c.l.bf16 %v3952_v26 }
 0x879   : > { %v3036_v47 = vpop.xlane.xlu0 %3035  ;;  %v3323_v30 = vperm.slane %v3024_v56, %v5723_v37  ;;  %v5840_v57 = vpop.xlane.xlu1 %3038 }
 0x87a   : > { %v3329_v45 = vperm.slane %v3036_v47, %v5723_v37  ;;  %v2724_v41 = vpop.f32.mrf.mxu0  ;;  %v3331_v22 = vperm.slane %v5840_v57, %v5712_v18 }
 0x87b   : > { %v3324_v61 = vsel %vm3302_vm10, %v3323_v30, %v3322_v49  ;;  %v2725_v44 = vadd.f32 %v5555_v15, %v2724_v41  ;;  %v3877_v49 = vunpack.c.h.bf16 %v3949_v39  ;;  %v3953_v39 = vld [vmem:[%s4566_s27 + $0x100] sm:$0xff]   ;;  %v5926_v41 = vld [vmem:[%s4566_s27 + $0x110] sm:$0xff]  }
 0x87c   : > { %v3430_v42 = vsel %vm3423_vm12, %v3324_v61, %v3429_v48  ;;  %v3330_v59 = vsel %vm3302_vm10, %v3329_v45, %v3328_v4  ;;  %v2951_v48 = vmul.f32 %v3872_v9, %v2723_v32  ;;  %v3869_v32 = vunpack.c.h.bf16 %v5853_v14 }
 0x87d   : > { %v3431_v25 = vsel %vm3425_vm13, %v3327_v38, %v3430_v42  ;;  %v2948_v38 = vmul.f32 %v3865_v8, %v2725_v44  ;;  %v2954_v0 = vmul.f32 %v3877_v49, %v2725_v44  ;;  %v2956_v14 = vmul.f32 %v3881_v21, %v2725_v44 }
 0x87e   : > { %v3432_v28 = vsel %vm3427_vm14, %v3330_v59, %v3431_v25  ;;  %v3139_v54 = vsel %vm728_vm0, %v2951_v48, 0.0  ;;  %v2950_v13 = vmul.f32 %v3869_v32, %v2725_v44  ;;  %v3900_v8 = vunpack.c.l.bf16 %v5926_v41 }
 0x87f   : > { %3467 = vst.msk [vmem:[%s5785_s11 + $0x8] sm:$0x1f] %vm3465_vm15, %v3432_v28  ;;  %3101 = vadd.xlane.f32.xlu2 %v3100_v60  ;;  %3110 = vadd.xlane.f32.xlu0 %v3109_v52  ;;  %v3873_v60 = vunpack.c.h.bf16 %v3948_v3  ;;  %v3130_v27 = vsel %vm728_vm0, %v2948_v38, 0.0  ;;  %v3154_v16 = vsel %vm728_vm0, %v2956_v14, 0.0 }
 0x880   : > { %v3051_v29 = vpop.xlane.xlu2 %3050  ;;  %3113 = vadd.xlane.f32.xlu1 %v3112_v6  ;;  %v3148_v6 = vsel %vm728_vm0, %v2954_v0, 0.0 }
 0x881   : > { %v3045_v10 = vpop.xlane.xlu0 %3044  ;;  %v3057_v23 = vpop.xlane.xlu1 %3056  ;;  %v3337_v45 = vperm.slane %v3051_v29, %v5712_v18  ;;  %v2952_v29 = vmul.f32 %v3873_v60, %v2725_v44  ;;  %v3885_v44 = vunpack.c.h.bf16 %v3951_v53 }
 0x882   : > { %v3334_v1 = vperm.slane %v3045_v10, %v5712_v18  ;;  %v3340_v47 = vperm.slane %v3057_v23, %v5712_v18  ;;  %v3136_v23 = vsel %vm728_vm0, %v2950_v13, 0.0 }
 0x883   : > { %v3142_v10 = vsel %vm728_vm0, %v2952_v29, 0.0 }
 0x887   : > { %3119 = vadd.xlane.f32.xlu2 %v3118_v55  ;;  %3125 = vadd.xlane.f32.xlu0 %v3124_v17  ;;  %v3892_v17 = vunpack.c.l.bf16 %v3953_v39 }
 0x888   : > { %v3042_v24 = vpop.xlane.xlu2 %3041  ;;  %3134 = vadd.xlane.f32.xlu1 %v3133_v12  ;;  %v3884_v12 = vunpack.c.l.bf16 %v3951_v53 }
 0x889   : > { %v3063_v63 = vpop.xlane.xlu0 %3062  ;;  %v3048_v43 = vpop.xlane.xlu1 %3047  ;;  %v3332_v62 = vperm.slane %v3042_v24, %v5723_v37 }
 0x88a   : > { %v3335_v58 = vperm.slane %v3048_v43, %v5723_v37  ;;  %v3343_v4 = vperm.slane %v3063_v63, %v5712_v18  ;;  %v5923_v43 = vld [vmem:[%s4566_s27 + $0x108] sm:$0xff]  }
 0x88b   : > { %v3333_v30 = vsel %vm3302_vm10, %v3332_v62, %v3331_v22  ;;  %v3897_v29 = vunpack.c.h.bf16 %v5923_v43 }
 0x88c   : > { %v3336_v31 = vsel %vm3302_vm10, %v3335_v58, %v3334_v1 }
 0x88d   : > { %v3433_v42 = vsel %vm3421_vm11, %v3336_v31, %v3333_v30 }
 0x88f   : > { %3146 = vadd.xlane.f32.xlu0 %v3145_v40  ;;  %3128 = vadd.xlane.f32.xlu2 %v3127_v19  ;;  %v3896_v40 = vunpack.c.l.bf16 %v5923_v43 }
 0x890   : > { %v3060_v56 = vpop.xlane.xlu2 %3059  ;;  %3152 = vadd.xlane.f32.xlu1 %v3151_v5 }
 0x891   : > { %v3054_v35 = vpop.xlane.xlu0 %3053  ;;  %v3341_v15 = vperm.slane %v3060_v56, %v5723_v37  ;;  %v3066_v51 = vpop.xlane.xlu1 %3065 }
 0x892   : > { %v3338_v57 = vperm.slane %v3054_v35, %v5723_v37  ;;  %v3344_v36 = vperm.slane %v3066_v51, %v5723_v37  ;;  %v3893_v35 = vunpack.c.h.bf16 %v3953_v39 }
 0x893   : > { %v3342_v61 = vsel %vm3302_vm10, %v3341_v15, %v3340_v47 }
 0x894   : > { %v3339_v7 = vsel %vm3302_vm10, %v3338_v57, %v3337_v45  ;;  %v3345_v25 = vsel %vm3302_vm10, %v3344_v36, %v3343_v4  ;;  %v3956_v45 = vld [vmem:[%s4566_s27 + $0x118] sm:$0xff]   ;;  %v3889_v57 = vunpack.c.h.bf16 %v3952_v26 }
 0x895   : > { %v3434_v59 = vsel %vm3423_vm12, %v3339_v7, %v3433_v42 }
 0x896   : > { %v3435_v28 = vsel %vm3425_vm13, %v3342_v61, %v3434_v59  ;;  %v3904_v61 = vunpack.c.l.bf16 %v3956_v45 }
 0x897   : > { %v3436_v52 = vsel %vm3427_vm14, %v3345_v25, %v3435_v28  ;;  %3131 = vadd.xlane.f32.xlu0 %v3130_v27  ;;  %3140 = vadd.xlane.f32.xlu2 %v3139_v54  ;;  %v3959_v25 = vld [vmem:[%s4566_s27 + $0x130] sm:$0xff]  }
 0x898   : > { %3468 = vst.msk [vmem:[%s5785_s11 + $0x10] sm:$0x1f] %vm3465_vm15, %v3436_v52  ;;  %3149 = vadd.xlane.f32.xlu1 %v3148_v6  ;;  %v3916_v6 = vunpack.c.l.bf16 %v3959_v25 }
 0x89f   : > { %3143 = vadd.xlane.f32.xlu0 %v3142_v10  ;;  %3137 = vadd.xlane.f32.xlu2 %v3136_v23 }
 0x8a7   : > { %3155 = vadd.xlane.f32.xlu2 %v3154_v16 }
 0x8ca   : > { %v5914_v46 = vpop.xlane.xlu0 %3080  ;;  %v3069_v55 = vpop.xlane.xlu2 %3068 }
 0x8cb   : > { %v3075_v24 = vpop.xlane.xlu1 %3074  ;;  %v3346_v60 = vperm.slane %v3069_v55, %v5712_v18  ;;  %v3352_v54 = vperm.slane %v5914_v46, %v5712_v18 }
 0x8cc   : > { %v2727_v11 = vpop.f32.mrf.mxu0  ;;  %v3349_v28 = vperm.slane %v3075_v24, %v5712_v18 }
 0x8cd   : > { %v2728_v63 = vadd.f32 %v5919_v34, %v2727_v11 }
 0x8cf   : > { %v2961_v20 = vmul.f32 %v3892_v17, %v2728_v63  ;;  %v2959_v33 = vmul.f32 %v3888_v2, %v2728_v63  ;;  %v2957_v3 = vmul.f32 %v3884_v12, %v2728_v63  ;;  %v2963_v56 = vmul.f32 %v3896_v40, %v2728_v63 }
 0x8d0   : > { %v2965_v49 = vmul.f32 %v3900_v8, %v2728_v63  ;;  %v3905_v17 = vunpack.c.h.bf16 %v3956_v45 }
 0x8d1   : > { %v3169_v50 = vsel %vm728_vm0, %v2961_v20, 0.0  ;;  %v3163_v62 = vsel %vm728_vm0, %v2959_v33, 0.0  ;;  %v3157_v58 = vsel %vm728_vm0, %v2957_v3, 0.0  ;;  %v3175_v31 = vsel %vm728_vm0, %v2963_v56, 0.0  ;;  %v3957_v3 = vld [vmem:[%s4566_s27 + $0x120] sm:$0xff]  }
 0x8d2   : > { %3170 = vadd.xlane.f32.xlu1 %v3169_v50  ;;  %3164 = vadd.xlane.f32.xlu2 %v3163_v62  ;;  %v5933_v9 = vpop.xlane.xlu0 %3092  ;;  %v3087_v22 = vpop.xlane.xlu2 %3086  ;;  %v3181_v15 = vsel %vm728_vm0, %v2965_v49, 0.0  ;;  %v3917_v56 = vunpack.c.h.bf16 %v3959_v25 }
 0x8d3   : > { %3158 = vadd.xlane.f32.xlu0 %v3157_v58  ;;  %v3096_v1 = vpop.xlane.xlu1 %3095  ;;  %v3358_v13 = vperm.slane %v5933_v9, %v5712_v18  ;;  %v3355_v26 = vperm.slane %v3087_v22, %v5712_v18  ;;  %v3908_v9 = vunpack.c.l.bf16 %v3957_v3 }
 0x8d4   : > { %v2729_v19 = vpop.f32.mrf.mxu0  ;;  %v3359_v39 = vperm.slane %v3096_v1, %v5723_v37 }
 0x8d5   : > { %v5936_v5 = vadd.f32 %v5919_v34, %v2729_v19  ;;  %v3909_v19 = vunpack.c.h.bf16 %v3957_v3 }
 0x8d6   : > { %v3360_v50 = vsel %vm3302_vm10, %v3359_v39, %v3358_v13  ;;  %v3901_v13 = vunpack.c.h.bf16 %v5926_v41 }
 0x8d7   : > { %v2958_v47 = vmul.f32 %v3885_v44, %v5936_v5  ;;  %v2962_v36 = vmul.f32 %v3893_v35, %v5936_v5  ;;  %v2960_v42 = vmul.f32 %v3889_v57, %v5936_v5  ;;  %v2964_v63 = vmul.f32 %v3897_v29, %v5936_v5  ;;  %v3958_v35 = vld [vmem:[%s4566_s27 + $0x128] sm:$0xff]  }
 0x8d9   : > { %v3160_v30 = vsel %vm728_vm0, %v2958_v47, 0.0  ;;  %v3172_v27 = vsel %vm728_vm0, %v2962_v36, 0.0  ;;  %v3166_v32 = vsel %vm728_vm0, %v2960_v42, 0.0  ;;  %v3178_v8 = vsel %vm728_vm0, %v2964_v63, 0.0 }
 0x8da   : > { %3161 = vadd.xlane.f32.xlu1 %v3160_v30  ;;  %3176 = vadd.xlane.f32.xlu2 %v3175_v31  ;;  %v3072_v51 = vpop.xlane.xlu0 %3071  ;;  %v3078_v48 = vpop.xlane.xlu2 %3077  ;;  %v3913_v42 = vunpack.c.h.bf16 %v3958_v35  ;;  %v2966_v63 = vmul.f32 %v3901_v13, %v5936_v5 }
 0x8db   : > { %3182 = vadd.xlane.f32.xlu0 %v3181_v15  ;;  %v5943_v4 = vpop.xlane.xlu1 %3098  ;;  %v3347_v7 = vperm.slane %v3072_v51, %v5723_v37  ;;  %v3350_v0 = vperm.slane %v3078_v48, %v5723_v37  ;;  %v3960_v15 = vld [vmem:[%s4566_s27 + $0x138] sm:$0xff]   ;;  %v3912_v51 = vunpack.c.l.bf16 %v3958_v35 }
 0x8dc   : > { %v3920_v57 = vunpack.c.l.bf16 %v3960_v15  ;;  %v3361_v25 = vperm.slane %v5943_v4, %v5712_v18 }
 0x8dd   : > { %v2732_v38 = vpop.f32.mrf.mxu0  ;;  %v3348_v10 = vsel %vm3302_vm10, %v3347_v7, %v3346_v60  ;;  %v3351_v23 = vsel %vm3302_vm10, %v3350_v0, %v3349_v28 }
 0x8de   : > { %v5950_v59 = vadd.f32 %v5919_v34, %v2732_v38  ;;  %v3437_v2 = vsel %vm3421_vm11, %v3351_v23, %v3348_v10 }
 0x8e0   : > { %v2967_v52 = vmul.f32 %v3904_v61, %v5950_v59  ;;  %v2973_v33 = vmul.f32 %v3916_v6, %v5950_v59  ;;  %v2969_v47 = vmul.f32 %v3908_v9, %v5950_v59 }
 0x8e2   : > { %3173 = vadd.xlane.f32.xlu2 %v3172_v27  ;;  %v3090_v21 = vpop.xlane.xlu0 %3089  ;;  %v3187_v14 = vsel %vm728_vm0, %v2967_v52, 0.0  ;;  %v3084_v16 = vpop.xlane.xlu2 %3083  ;;  %v3205_v22 = vsel %vm728_vm0, %v2973_v33, 0.0  ;;  %v3193_v45 = vsel %vm728_vm0, %v2969_v47, 0.0  ;;  %v2975_v52 = vmul.f32 %v3920_v57, %v5950_v59 }
 0x8e3   : > { %3167 = vadd.xlane.f32.xlu0 %v3166_v32  ;;  %v3356_v53 = vperm.slane %v3090_v21, %v5723_v37  ;;  %v5969_v46 = vpop.xlane.xlu1 %3116  ;;  %3188 = vadd.xlane.f32.xlu1 %v3187_v14  ;;  %v3353_v55 = vperm.slane %v3084_v16, %v5723_v37  ;;  %v2971_v27 = vmul.f32 %v3912_v51, %v5950_v59  ;;  %v3921_v21 = vunpack.c.h.bf16 %v3960_v15 }
 0x8e4   : > { %v3211_v10 = vsel %vm728_vm0, %v2975_v52, 0.0  ;;  %v3370_v59 = vperm.slane %v5969_v46, %v5712_v18 }
 0x8e5   : > { %v3357_v12 = vsel %vm3302_vm10, %v3356_v53, %v3355_v26  ;;  %v3354_v24 = vsel %vm3302_vm10, %v3353_v55, %v3352_v54  ;;  %v2734_v11 = vpop.f32.mrf.mxu0  ;;  %v3199_v23 = vsel %vm728_vm0, %v2971_v27, 0.0 }
 0x8e6   : > { %v3438_v43 = vsel %vm3423_vm12, %v3354_v24, %v3437_v2  ;;  %v5978_v20 = vadd.f32 %v5919_v34, %v2734_v11 }
 0x8e7   : > { %v3439_v62 = vsel %vm3425_vm13, %v3357_v12, %v3438_v43 }
 0x8e8   : > { %v3440_v58 = vsel %vm3427_vm14, %v3360_v50, %v3439_v62  ;;  %v2968_v40 = vmul.f32 %v3905_v17, %v5978_v20  ;;  %v2970_v30 = vmul.f32 %v3909_v19, %v5978_v20  ;;  %v2974_v31 = vmul.f32 %v3917_v56, %v5978_v20 }
 0x8e9   : > { %3469 = vst.msk [vmem:[%s5785_s11 + $0x18] sm:$0x1f] %vm3465_vm15, %v3440_v58  ;;  %v2972_v6 = vmul.f32 %v3913_v42, %v5978_v20  ;;  %v2976_v24 = vmul.f32 %v3921_v21, %v5978_v20  ;;  %v3184_v62 = vsel %vm728_vm0, %v2966_v63, 0.0 }
 0x8ea   : > { %v3105_v34 = vpop.xlane.xlu0 %3104  ;;  %v3190_v44 = vsel %vm728_vm0, %v2968_v40, 0.0  ;;  %v3123_v1 = vpop.xlane.xlu2 %3122  ;;  %v3196_v61 = vsel %vm728_vm0, %v2970_v30, 0.0  ;;  %v3208_v36 = vsel %vm728_vm0, %v2974_v31, 0.0 }
 0x8eb   : > { %3179 = vadd.xlane.f32.xlu0 %v3178_v8  ;;  %v3108_v49 = vpop.xlane.xlu1 %3107  ;;  %3206 = vadd.xlane.f32.xlu1 %v3205_v22  ;;  %v3364_v28 = vperm.slane %v3105_v34, %v5712_v18  ;;  %v3202_v26 = vsel %vm728_vm0, %v2972_v6, 0.0  ;;  %v3373_v53 = vperm.slane %v3123_v1, %v5712_v18  ;;  %v3214_v3 = vsel %vm728_vm0, %v2976_v24, 0.0 }
 0x8ec   : > { %3191 = vadd.xlane.f32.xlu2 %v3190_v44  ;;  %v3365_v60 = vperm.slane %v3108_v49, %v5723_v37 }
 0x8ee   : > { %v3366_v4 = vsel %vm3302_vm10, %v3365_v60, %v3364_v28 }
 0x8f2   : > { %v3111_v48 = vpop.xlane.xlu0 %3110  ;;  %v3102_v38 = vpop.xlane.xlu2 %3101 }
 0x8f3   : > { %3194 = vadd.xlane.f32.xlu0 %v3193_v45  ;;  %v3114_v7 = vpop.xlane.xlu1 %3113  ;;  %3197 = vadd.xlane.f32.xlu1 %v3196_v61  ;;  %v3362_v0 = vperm.slane %v3102_v38, %v5723_v37  ;;  %v3367_v54 = vperm.slane %v3111_v48, %v5712_v18 }
 0x8f4   : > { %3209 = vadd.xlane.f32.xlu2 %v3208_v36  ;;  %v3368_v32 = vperm.slane %v3114_v7, %v5723_v37 }
 0x8f5   : > { %v3363_v29 = vsel %vm3302_vm10, %v3362_v0, %v3361_v25 }
 0x8f6   : > { %v3369_v14 = vsel %vm3302_vm10, %v3368_v32, %v3367_v54  ;;  %v3441_v16 = vsel %vm3421_vm11, %v3366_v4, %v3363_v29 }
 0x8f7   : > { %v3442_v2 = vsel %vm3423_vm12, %v3369_v14, %v3441_v16 }
 0x8fa   : > { %v3126_v39 = vpop.xlane.xlu0 %3125  ;;  %v3120_v41 = vpop.xlane.xlu2 %3119 }
 0x8fb   : > { %3200 = vadd.xlane.f32.xlu0 %v3199_v23  ;;  %v3374_v55 = vperm.slane %v3126_v39, %v5723_v37  ;;  %3203 = vadd.xlane.f32.xlu1 %v3202_v26  ;;  %v3371_v17 = vperm.slane %v3120_v41, %v5723_v37  ;;  %v3135_v33 = vpop.xlane.xlu1 %3134 }
 0x8fc   : > { %3212 = vadd.xlane.f32.xlu2 %v3211_v10  ;;  %v3379_v22 = vperm.slane %v3135_v33, %v5712_v18 }
 0x8fd   : > { %v3375_v46 = vsel %vm3302_vm10, %v3374_v55, %v3373_v53  ;;  %v3372_v12 = vsel %vm3302_vm10, %v3371_v17, %v3370_v59 }
 0x8fe   : > { %v3443_v11 = vsel %vm3425_vm13, %v3372_v12, %v3442_v2 }
 0x8ff   : > { %v3444_v43 = vsel %vm3427_vm14, %v3375_v46, %v3443_v11 }
 0x900   : > { %3470 = vst.msk [vmem:[%s5785_s11 + $0x20] sm:$0x1f] %vm3465_vm15, %v3444_v43 }
 0x902   : > { %v3147_v50 = vpop.xlane.xlu0 %3146  ;;  %v3129_v58 = vpop.xlane.xlu2 %3128 }
 0x903   : > { %3215 = vadd.xlane.f32.xlu0 %v3214_v3  ;;  %3185 = vadd.xlane.f32.xlu1 %v3184_v62  ;;  %v3153_v20 = vpop.xlane.xlu1 %3152  ;;  %v3376_v19 = vperm.slane %v3129_v58, %v5712_v18  ;;  %v3385_v45 = vperm.slane %v3147_v50, %v5712_v18 }
 0x904   : > { %v3388_v48 = vperm.slane %v3153_v20, %v5712_v18 }
 0x90a   : > { %v3132_v40 = vpop.xlane.xlu0 %3131  ;;  %v3141_v8 = vpop.xlane.xlu2 %3140 }
 0x90b   : > { %v3377_v9 = vperm.slane %v3132_v40, %v5723_v37  ;;  %v3150_v56 = vpop.xlane.xlu1 %3149  ;;  %v3382_v49 = vperm.slane %v3141_v8, %v5712_v18 }
 0x90c   : > { %v3386_v15 = vperm.slane %v3150_v56, %v5723_v37 }
 0x90d   : > { %v3378_v30 = vsel %vm3302_vm10, %v3377_v9, %v3376_v19 }
 0x90e   : > { %v3387_v36 = vsel %vm3302_vm10, %v3386_v15, %v3385_v45 }
 0x912   : > { %v3144_v34 = vpop.xlane.xlu0 %3143  ;;  %v3138_v5 = vpop.xlane.xlu2 %3137 }
 0x913   : > { %v3383_v44 = vperm.slane %v3144_v34, %v5723_v37  ;;  %v3380_v1 = vperm.slane %v3138_v5, %v5723_v37 }
 0x915   : > { %v3381_v47 = vsel %vm3302_vm10, %v3380_v1, %v3379_v22  ;;  %v3384_v31 = vsel %vm3302_vm10, %v3383_v44, %v3382_v49 }
 0x916   : > { %v3445_v35 = vsel %vm3421_vm11, %v3381_v47, %v3378_v30 }
 0x917   : > { %v3446_v57 = vsel %vm3423_vm12, %v3384_v31, %v3445_v35 }
 0x918   : > { %v3447_v38 = vsel %vm3425_vm13, %v3387_v36, %v3446_v57 }
 0x91a   : > { %v3156_v51 = vpop.xlane.xlu2 %3155 }
 0x91b   : > { %v3389_v61 = vperm.slane %v3156_v51, %v5723_v37 }
 0x91d   : > { %v3390_v42 = vsel %vm3302_vm10, %v3389_v61, %v3388_v48 }
 0x91e   : > { %v3448_v7 = vsel %vm3427_vm14, %v3390_v42, %v3447_v38 }
 0x91f   : > { %3471 = vst.msk [vmem:[%s5785_s11 + $0x28] sm:$0x1f] %vm3465_vm15, %v3448_v7 }
 0x945   : > { %v3171_v0 = vpop.xlane.xlu1 %3170  ;;  %v3165_v25 = vpop.xlane.xlu2 %3164 }
 0x946   : > { %v3159_v28 = vpop.xlane.xlu0 %3158  ;;  %v3394_v17 = vperm.slane %v3165_v25, %v5712_v18  ;;  %v3397_v3 = vperm.slane %v3171_v0, %v5712_v18 }
 0x947   : > { %v3391_v11 = vperm.slane %v3159_v28, %v5712_v18 }
 0x94d   : > { %v3162_v60 = vpop.xlane.xlu1 %3161  ;;  %v3177_v52 = vpop.xlane.xlu2 %3176 }
 0x94e   : > { %v3183_v27 = vpop.xlane.xlu0 %3182  ;;  %v3392_v46 = vperm.slane %v3162_v60, %v5723_v37  ;;  %v3400_v8 = vperm.slane %v3177_v52, %v5712_v18 }
 0x94f   : > { %v3403_v47 = vperm.slane %v3183_v27, %v5712_v18 }
 0x950   : > { %v3393_v40 = vsel %vm3302_vm10, %v3392_v46, %v3391_v11 }
 0x955   : > { %v3174_v32 = vpop.xlane.xlu2 %3173 }
 0x956   : > { %v3168_v54 = vpop.xlane.xlu0 %3167  ;;  %v3189_v6 = vpop.xlane.xlu1 %3188  ;;  %v3398_v12 = vperm.slane %v3174_v32, %v5723_v37 }
 0x957   : > { %v3395_v39 = vperm.slane %v3168_v54, %v5723_v37  ;;  %v3406_v2 = vperm.slane %v3189_v6, %v5712_v18 }
 0x958   : > { %v3399_v34 = vsel %vm3302_vm10, %v3398_v12, %v3397_v3 }
 0x959   : > { %v3396_v63 = vsel %vm3302_vm10, %v3395_v39, %v3394_v17 }
 0x95a   : > { %v3449_v9 = vsel %vm3421_vm11, %v3396_v63, %v3393_v40 }
 0x95b   : > { %v3450_v35 = vsel %vm3423_vm12, %v3399_v34, %v3449_v9 }
 0x95e   : > { %v3180_v29 = vpop.xlane.xlu0 %3179  ;;  %v3207_v13 = vpop.xlane.xlu1 %3206 }
 0x95f   : > { %v3192_v4 = vpop.xlane.xlu2 %3191  ;;  %v3401_v43 = vperm.slane %v3180_v29, %v5723_v37  ;;  %v3415_v5 = vperm.slane %v3207_v13, %v5712_v18 }
 0x960   : > { %v3407_v53 = vperm.slane %v3192_v4, %v5723_v37 }
 0x961   : > { %v3402_v1 = vsel %vm3302_vm10, %v3401_v43, %v3400_v8 }
 0x962   : > { %v3408_v50 = vsel %vm3302_vm10, %v3407_v53, %v3406_v2  ;;  %v3451_v57 = vsel %vm3425_vm13, %v3402_v1, %v3450_v35 }
 0x966   : > { %v3195_v10 = vpop.xlane.xlu0 %3194  ;;  %v3198_v23 = vpop.xlane.xlu1 %3197 }
 0x967   : > { %v3210_v21 = vpop.xlane.xlu2 %3209  ;;  %v3410_v59 = vperm.slane %v3198_v23, %v5723_v37  ;;  %v3409_v14 = vperm.slane %v3195_v10, %v5712_v18 }
 0x968   : > { %v3416_v62 = vperm.slane %v3210_v21, %v5723_v37 }
 0x969   : > { %v3411_v24 = vsel %vm3302_vm10, %v3410_v59, %v3409_v14 }
 0x96a   : > { %v3453_v20 = vsel %vm3421_vm11, %v3411_v24, %v3408_v50  ;;  %v3417_v30 = vsel %vm3302_vm10, %v3416_v62, %v3415_v5 }
 0x96e   : > { %v3201_v16 = vpop.xlane.xlu0 %3200  ;;  %v3204_v26 = vpop.xlane.xlu1 %3203 }
 0x96f   : > { %v3412_v41 = vperm.slane %v3201_v16, %v5712_v18  ;;  %v3413_v55 = vperm.slane %v3204_v26, %v5723_v37  ;;  %v3213_v58 = vpop.xlane.xlu2 %3212 }
 0x970   : > { %v3418_v19 = vperm.slane %v3213_v58, %v5712_v18 }
 0x971   : > { %v3414_v33 = vsel %vm3302_vm10, %v3413_v55, %v3412_v41 }
 0x972   : > { %v3454_v22 = vsel %vm3423_vm12, %v3414_v33, %v3453_v20 }
 0x973   : > { %v3455_v45 = vsel %vm3425_vm13, %v3417_v30, %v3454_v22 }
 0x976   : > { %v3216_v44 = vpop.xlane.xlu0 %3215  ;;  %v3186_v56 = vpop.xlane.xlu1 %3185 }
 0x977   : > { %v3419_v49 = vperm.slane %v3216_v44, %v5723_v37  ;;  %v3404_v31 = vperm.slane %v3186_v56, %v5723_v37 }
 0x979   : > { %v3420_v15 = vsel %vm3302_vm10, %v3419_v49, %v3418_v19  ;;  %v3405_v51 = vsel %vm3302_vm10, %v3404_v31, %v3403_v47 }
 0x97a   : > { %v3456_v48 = vsel %vm3427_vm14, %v3420_v15, %v3455_v45  ;;  %v3452_v61 = vsel %vm3427_vm14, %v3405_v51, %v3451_v57 }
 0x97b   : > { %3473 = vst.msk [vmem:[%s5785_s11 + $0x38] sm:$0x1f] %vm3465_vm15, %v3456_v48 }
 0x97c   : > { %3472 = vst.msk [vmem:[%s5785_s11 + $0x30] sm:$0x1f] %vm3465_vm15, %v3452_v61 }
 0x97d PF: > { %s6181_s27 = sld [smem:[#allocation14_spill]]  ;;  %s6184_s24 = smov %s4336_s25 }
 0x97e   : > { %s6182_s16 = sld [smem:[#allocation13_spill]] }
 0x97f   : > { %s6183_s26 = sld [smem:[#allocation15_spill]] }
 0x983   : > { %p31_p4 = scmp.ge.s32.totalorder %s6181_s27, 4  }
 0x984   : > { %s6185_s25 = smov %s6182_s16 }
 0x985   :  { %33 = sbr.rel (!%p31_p4) target bundleno = 19 (0x13), region = 149 }
 0x98a   :  { %3496 = vsyncpa [#allocation3], 1 }
 0x98b   :  { %3498 = vsyncpa [#allocation3 + $0x1], 1 }
 0x98c   :  { %3499 = vsyncpa [#allocation5], 1 }
 0x98d   :  { %3501 = vsyncpa [#allocation5 + $0x1], 1 }
 0x98e   :  { %3502 = vsyncpa [#allocation8], 1 }

</bundles_post_ra>
